<compile_context>
chip_gen: v7x
topology: tpu7x:2x2x1
jax: 0.10.0
libtpu: 0.0.40
codegen_flags: <defaults>
</compile_context>

<pallas_src>
import functools
import math

import jax
import jax.numpy as jnp
import numpy as np
from jax.experimental import pallas as pl
from jax.experimental.pallas import tpu as pltpu

# Small synthetic configuration (consistent with the module's constraints:
# hdim % heads == 0, spatial dims divisible by downscaling factors, patch grids
# divisible by the window sizes).
IN_CH = 4
HDIM = 32
HEADS = 2
HEAD_DIM = HDIM // HEADS
DOWNSCALING = (8, 4, 2)
WINDOWS = (2, 2, 4)
LN_EPS = 1e-5
NEG_INF = -1e30


# ----------------------------- in-kernel helpers ----------------------------

def _mm(a_bf, b_bf):
    """MXU matmul, operands already bf16, f32 accumulation."""
    return jnp.dot(a_bf, b_bf, preferred_element_type=jnp.float32)


def _mm_nt(a_bf, b_bf):
    """a @ b.T on the MXU (contract last dims), operands already bf16."""
    return jax.lax.dot_general(a_bf, b_bf, (((1,), (1,)), ((), ())),
                               preferred_element_type=jnp.float32)


def _layernorm(x, g, b):
    mean = jnp.mean(x, axis=-1, keepdims=True)
    var = jnp.mean(jnp.square(x - mean), axis=-1, keepdims=True)
    return (x - mean) * jax.lax.rsqrt(var + LN_EPS) * g + b


def _gelu(x):
    # TODO(synk): PyTorch nn.GELU defaults to the exact erf form; the tanh
    # approximation is used because erf lowering is not guaranteed in Mosaic.
    c = math.sqrt(2.0 / math.pi)
    return 0.5 * x * (1.0 + jnp.tanh(c * (x + 0.044715 * x * x * x)))


def _softmax_rows(s):
    """Row softmax over the last axis (expects additive -inf-style masking)."""
    s = s - jnp.max(s, axis=-1, keepdims=True)
    p = jnp.exp(s)
    return p * pl.reciprocal(jnp.sum(p, axis=-1, keepdims=True), approx=True)


def _rep_spec(shape):
    """BlockSpec for an operand replicated across the (batch) grid."""
    zero = (0,) * len(shape)
    return pl.BlockSpec(shape, lambda b: zero)


# ------------------------------ fused kernels --------------------------------
# Weight-plane layout for the per-scale stack (n_planes = 2*HEADS + 4):
#   [0..H-1]   : per-head Q weight, pre-scaled by head_dim**-0.5 and lane-masked
#   [H]        : K weight
#   [H+1..2H]  : per-head V weight, lane-masked
#   [2H+1]     : attention output projection
#   [2H+2]     : MLP first linear
#   [2H+3]     : MLP second linear
# Vector layout ([8, D]): patch_b, attn_ln_g, attn_ln_b, out_b,
#                         mlp_ln_g, mlp_ln_b, mlp_b1, mlp_b2

def _scale_kernel(x_ref, pw_ref, w_ref, vec_ref, bias_ref, o_ref, *, heads):
    """One scale branch for ALL batch elements (batch folded into rows)."""
    bf16 = jnp.bfloat16
    x = x_ref[0]                                      # [R, Fp] bf16
    w = w_ref[0]                                      # [n_planes, D, D] bf16
    vec = vec_ref[0]                                  # [8, D] f32
    bias = bias_ref[0]                                # [R, R] f32

    # PatchMerging linear.
    t = _mm(x, pw_ref[0]) + vec[0:1]                  # [R, D] f32
    # PreNorm + window attention (block-diag bias => per-window / per-batch).
    tn_bf = _layernorm(t, vec[1:2], vec[2:3]).astype(bf16)
    k_bf = _mm(tn_bf, w[heads]).astype(bf16)          # [R, D]
    attn = jnp.zeros_like(t)
    for h in range(heads):                            # scale & head masks are
        q_bf = _mm(tn_bf, w[h]).astype(bf16)          # folded into the weights
        v_bf = _mm(tn_bf, w[heads + 1 + h]).astype(bf16)
        s = _mm_nt(q_bf, k_bf) + bias                 # [R, R]
        p = _softmax_rows(s)
        attn = attn + _mm(p.astype(bf16), v_bf)
    # TODO(synk): ST_TR WindowAttention's relative positional-bias term is not
    # reproduced - its exact source is not provided in the snippet.
    y = _mm(attn.astype(bf16), w[2 * heads + 1]) + vec[3:4] + t
    # PreNorm + FeedForward + residual.
    yn_bf = _layernorm(y, vec[4:5], vec[5:6]).astype(bf16)
    hmid = _gelu(_mm(yn_bf, w[2 * heads + 2]) + vec[6:7])
    z = _mm(hmid.astype(bf16), w[2 * heads + 3]) + vec[7:8] + y
    o_ref[0] = z.astype(o_ref.dtype)


# Cross weight-plane layout ([6, D, D]): q_w (pre-scaled), k_w, v_w, o_w,
#                                        inner mlp w1, inner mlp w2
# Cross vector layout ([10, D]): ln_g, ln_b, q_b (pre-scaled), k_b, v_b, o_b,
#                                inner_ln_g, inner_ln_b, inner_b1, inner_b2

def _cross_kernel(x1_ref, nb_ref, bias_ref, w_ref, vec_ref, o_ref):
    """Shared LN + CrossAtten + residual + Residual(PreNorm(FeedForward))."""
    bf16 = jnp.bfloat16
    x1 = x1_ref[0].astype(jnp.float32)                # [N, D]
    nb = nb_ref[0].astype(jnp.float32)                # [N*K, D]
    w = w_ref[...]                                    # [6, D, D] bf16
    vec = vec_ref[...]                                # [10, D] f32

    x1n_bf = _layernorm(x1, vec[0:1], vec[1:2]).astype(bf16)
    nbn_bf = _layernorm(nb, vec[0:1], vec[1:2]).astype(bf16)
    # TODO(synk): CrossAtten source not in the snippet; implemented as
    # single-head scaled-dot-product cross attention with q/k/v/out projections.
    q = _mm(x1n_bf, w[0]) + vec[2:3]                  # scale folded into w/bias
    k = _mm(nbn_bf, w[1]) + vec[3:4]
    v = _mm(nbn_bf, w[2]) + vec[4:5]
    s = _mm_nt(q.astype(bf16), k.astype(bf16)) + bias_ref[...]   # [N, N*K]
    p = _softmax_rows(s)                              # each query on its own K
    o = _mm(p.astype(bf16), v.astype(bf16))
    o = _mm(o.astype(bf16), w[3]) + vec[5:6]
    out = o + x1
    on_bf = _layernorm(out, vec[6:7], vec[7:8]).astype(bf16)
    hmid = _gelu(_mm(on_bf, w[4]) + vec[8:9])
    z = _mm(hmid.astype(bf16), w[5]) + vec[9:10] + out
    o_ref[0] = z.astype(o_ref.dtype)


# --------------------------- layout glue (plain JAX) -------------------------

def window_major_patches(x, df, ws):
    """NCHW -> [b, tokens(window-major), c*df*df] with nn.Unfold's (c,kh,kw) order."""
    b, c, h, w = x.shape
    nh, nw = h // df, w // df
    nwh, nww = nh // ws, nw // ws
    t = x.reshape(b, c, nwh, ws, df, nww, ws, df)
    t = jnp.transpose(t, (0, 2, 5, 3, 6, 1, 4, 7))
    return t.reshape(b, nwh * nww * ws * ws, c * df * df), (nh, nw, nwh, nww)


def window_major_to_grid(t, nwh, nww, ws):
    """[b, tokens(window-major), d] -> [b, nh, nw, d]."""
    b, _, d = t.shape
    t = t.reshape(b, nwh, nww, ws, ws, d)
    t = jnp.transpose(t, (0, 1, 3, 2, 4, 5))
    return t.reshape(b, nwh * ws, nww * ws, d)


def unfold_nonoverlap(x_nchw, k):
    """F.unfold with kernel==stride==k on a padded NCHW tensor (pure reshape)."""
    b, c, h, w = x_nchw.shape
    oh, ow = h // k, w // k
    t = x_nchw.reshape(b, c, oh, k, ow, k)
    t = jnp.transpose(t, (0, 1, 3, 5, 2, 4))          # [b, c, kh, kw, oh, ow]
    return t.reshape(b, c * k * k, oh * ow)


# ------------------------------ pallas wrappers ------------------------------

def fused_scale_pallas(x, packed):
    """Runs all scale branches in one pallas_call.  Returns list of
    [bs, nh_s, nw_s, HDIM] bf16 grids (one per scale)."""
    bs = x.shape[0]
    d = HDIM
    bf16 = jnp.bfloat16

    per_scale = []
    for df, ws in zip(DOWNSCALING, WINDOWS):
        tokens, meta = window_major_patches(x, df, ws)
        per_scale.append((tokens, meta, ws))

    m_pad = max(t.shape[1] for t, _, _ in per_scale)
    fin_pad = packed["scale_pw"].shape[1]
    n_scales = len(per_scale)
    r = bs * m_pad                                    # rows per grid step

    tok_list = []
    bias_np = np.empty((n_scales, r, r), np.float32)
    for s_idx, (tokens, _, ws) in enumerate(per_scale):
        m_s, fin_s = tokens.shape[1], tokens.shape[2]
        t = jnp.pad(tokens, ((0, 0), (0, m_pad - m_s), (0, fin_pad - fin_s)))
        tok_list.append(t.reshape(r, fin_pad))
        # Window ids: real token -> (batch, window) id; padded token -> unique
        # id (attends only to itself -> finite garbage, sliced off later).
        win_tok = ws * ws
        pos = np.arange(m_pad)[None, :]
        b_idx = np.arange(bs)[:, None]
        wid = np.where(pos < m_s,
                       b_idx * (m_pad + 1) + pos // win_tok,
                       bs * (m_pad + 1) + b_idx * m_pad + pos).reshape(-1)
        bias_np[s_idx] = np.where(wid[:, None] == wid[None, :], 0.0, NEG_INF)

    tok_stack = jnp.stack(tok_list).astype(bf16)      # [S, R, Fp]
    bias_stack = jnp.asarray(bias_np)                 # [S, R, R]
    n_planes = packed["scale_w"].shape[1]
    n_vecs = packed["scale_vec"].shape[1]

    out = pl.pallas_call(
        functools.partial(_scale_kernel, heads=HEADS),
        out_shape=jax.ShapeDtypeStruct((n_scales, r, d), bf16),
        grid=(n_scales,),
        in_specs=[
            pl.BlockSpec((1, r, fin_pad), lambda s: (s, 0, 0)),
            pl.BlockSpec((1, fin_pad, d), lambda s: (s, 0, 0)),
            pl.BlockSpec((1, n_planes, d, d), lambda s: (s, 0, 0, 0)),
            pl.BlockSpec((1, n_vecs, d), lambda s: (s, 0, 0)),
            pl.BlockSpec((1, r, r), lambda s: (s, 0, 0)),
        ],
        out_specs=pl.BlockSpec((1, r, d), lambda s: (s, 0, 0)),
        compiler_params=pltpu.CompilerParams(
            dimension_semantics=("parallel",)),
    )(tok_stack, packed["scale_pw"], packed["scale_w"], packed["scale_vec"],
      bias_stack)

    patch_x = []
    for s_idx, (tokens, (nh, nw, nwh, nww), ws) in enumerate(per_scale):
        m_s = tokens.shape[1]
        t = out[s_idx].reshape(bs, m_pad, d)[:, :m_s, :]
        patch_x.append(window_major_to_grid(t, nwh, nww, ws))
    return patch_x


def cross_block_pallas(x1, nb, packed):
    """x1: [bs, N, D]; nb: [bs, N*K, D] (query-major) -> [bs, N, D] f32."""
    bs, n_q, d = x1.shape
    nk = nb.shape[1]
    k_nb = nk // n_q
    bf16 = jnp.bfloat16

    owner = np.repeat(np.arange(n_q), k_nb)
    bias = jnp.asarray(
        np.where(np.arange(n_q)[:, None] == owner[None, :], 0.0, NEG_INF)
        .astype(np.float32))                           # [N, N*K]

    return pl.pallas_call(
        _cross_kernel,
        out_shape=jax.ShapeDtypeStruct((bs, n_q, d), jnp.float32),
        grid=(bs,),
        in_specs=[
            pl.BlockSpec((1, n_q, d), lambda b: (b, 0, 0)),
            pl.BlockSpec((1, nk, d), lambda b: (b, 0, 0)),
            _rep_spec((n_q, nk)),
            _rep_spec(packed["cross_w"].shape),
            _rep_spec(packed["cross_vec"].shape),
        ],
        out_specs=pl.BlockSpec((1, n_q, d), lambda b: (b, 0, 0)),
        compiler_params=pltpu.CompilerParams(
            dimension_semantics=("parallel",)),
    )(x1.astype(bf16), nb.astype(bf16), bias,
      packed["cross_w"], packed["cross_vec"])


# ------------------------------ forward pass ---------------------------------

def multi_scale_cross_attn(x, packed):
    """x: [bs, c, h, w] (NCHW) -> [bs, h1*w1, 1, hdim]."""
    bs = x.shape[0]
    patch_x = fused_scale_pallas(x, packed)

    x1 = patch_x[0]
    bs, h1, w1, hdim = x1.shape
    unfold_x = []
    for p_x in patch_x[1:]:
        _, ph, pw, _ = p_x.shape
        stride = math.ceil(ph / h1)
        kernel = stride
        pad = stride * h1 - ph
        p_nchw = jnp.transpose(p_x, (0, 3, 1, 2))
        p_nchw = jnp.pad(p_nchw, ((0, 0), (0, 0),
                                  (pad // 2, pad - pad // 2),
                                  (pad // 2, pad - pad // 2)))
        cols = unfold_nonoverlap(p_nchw, kernel)                 # [bs, hdim*k*k, L]
        p_u = cols.reshape(bs, kernel * kernel, hdim, h1 * w1)   # torch .reshape(bs,-1,hdim,L)
        p_u = jnp.transpose(p_u, (0, 3, 1, 2))                   # [bs, L, k*k, hdim]
        unfold_x.append(p_u)

    n_tok = h1 * w1
    x1_tok = x1.reshape(bs, n_tok, hdim)
    neighbors = jnp.concatenate(unfold_x, axis=-2)               # [bs, N, K, hdim]
    nb_flat = neighbors.reshape(bs, n_tok * neighbors.shape[2], hdim)

    out = cross_block_pallas(x1_tok, nb_flat, packed)
    return out.reshape(bs, n_tok, 1, hdim)


# ------------------------------ parameter prep -------------------------------

def init_params(key):
    keys = jax.random.split(key, 64)
    it = iter(keys)

    def dense(fan_in, fan_out, bias=True):
        kw, kb = next(it), next(it)
        bound = 1.0 / math.sqrt(fan_in)           # PyTorch nn.Linear default init
        w = jax.random.uniform(kw, (fan_in, fan_out), jnp.float32, -bound, bound)
        b = (jax.random.uniform(kb, (fan_out,), jnp.float32, -bound, bound)
             if bias else jnp.zeros((fan_out,), jnp.float32))
        return w, b

    ones = jnp.ones((HDIM,), jnp.float32)
    zeros = jnp.zeros((HDIM,), jnp.float32)

    params = {"layers": []}
    for df in DOWNSCALING:
        pw, pb = dense(IN_CH * df * df, HDIM)
        qkv_w, _ = dense(HDIM, 3 * HDIM, bias=False)
        ow, ob = dense(HDIM, HDIM)
        w1, b1 = dense(HDIM, HDIM)
        w2, b2 = dense(HDIM, HDIM)
        params["layers"].append({
            "patch_w": pw, "patch_b": pb,
            "attn_ln_g": ones, "attn_ln_b": zeros,
            "qkv_w": qkv_w, "out_w": ow, "out_b": ob,
            "mlp_ln_g": ones, "mlp_ln_b": zeros,
            "mlp_w1": w1, "mlp_b1": b1, "mlp_w2": w2, "mlp_b2": b2,
        })

    qw, qb = dense(HDIM, HDIM)
    kw_, kb_ = dense(HDIM, HDIM)
    vw, vb = dense(HDIM, HDIM)
    cow, cob = dense(HDIM, HDIM)
    params["cross"] = {"q_w": qw, "q_b": qb, "k_w": kw_, "k_b": kb_,
                       "v_w": vw, "v_b": vb, "o_w": cow, "o_b": cob}
    params["ln_g"], params["ln_b"] = ones, zeros
    params["inner_mlp_ln_g"], params["inner_mlp_ln_b"] = ones, zeros
    w1, b1 = dense(HDIM, HDIM)
    w2, b2 = dense(HDIM, HDIM)
    params["inner_mlp_w1"], params["inner_mlp_b1"] = w1, b1
    params["inner_mlp_w2"], params["inner_mlp_b2"] = w2, b2
    return params


def pack_params(params):
    """One-time transform: pad / stack / pre-scale / pre-mask / pre-cast weights
    into the few operands the fused kernels take (done outside jit)."""
    d = HDIM
    bf16 = jnp.bfloat16
    fin_pad = IN_CH * max(DOWNSCALING) ** 2
    lane_head = np.arange(d) // HEAD_DIM
    hmask = [(lane_head == h).astype(np.float32) for h in range(HEADS)]
    scale = HEAD_DIM ** -0.5

    pw_stack, w_stack, vec_stack = [], [], []
    for p in params["layers"]:
        pw_stack.append(jnp.pad(p["patch_w"],
                                ((0, fin_pad - p["patch_w"].shape[0]), (0, 0))))
        qkv = p["qkv_w"].reshape(d, 3, d)
        wq, wk, wv = qkv[:, 0, :], qkv[:, 1, :], qkv[:, 2, :]
        planes = [wq * hmask[h][None, :] * scale for h in range(HEADS)]   # Q
        planes.append(wk)                                                 # K
        planes += [wv * hmask[h][None, :] for h in range(HEADS)]          # V
        planes += [p["out_w"], p["mlp_w1"], p["mlp_w2"]]
        w_stack.append(jnp.stack(planes))
        vec_stack.append(jnp.stack([p["patch_b"], p["attn_ln_g"], p["attn_ln_b"],
                                    p["out_b"], p["mlp_ln_g"], p["mlp_ln_b"],
                                    p["mlp_b1"], p["mlp_b2"]]))

    cp = params["cross"]
    cscale = d ** -0.5
    cross_w = jnp.stack([cp["q_w"] * cscale, cp["k_w"], cp["v_w"], cp["o_w"],
                         params["inner_mlp_w1"], params["inner_mlp_w2"]])
    cross_vec = jnp.stack([params["ln_g"], params["ln_b"],
                           cp["q_b"] * cscale, cp["k_b"], cp["v_b"], cp["o_b"],
                           params["inner_mlp_ln_g"], params["inner_mlp_ln_b"],
                           params["inner_mlp_b1"], params["inner_mlp_b2"]])

    return {
        "scale_pw": jnp.stack(pw_stack).astype(bf16),     # [S, fin_pad, D]
        "scale_w": jnp.stack(w_stack).astype(bf16),       # [S, 2H+4, D, D]
        "scale_vec": jnp.stack(vec_stack).astype(jnp.float32),   # [S, 8, D]
        "cross_w": cross_w.astype(bf16),                  # [6, D, D]
        "cross_vec": cross_vec.astype(jnp.float32),       # [10, D]
    }


if __name__ == "__main__":
    key = jax.random.PRNGKey(0)
    kx, kp = jax.random.split(key)
    x = jax.random.normal(kx, (2, IN_CH, 16, 16), jnp.float32)   # [bs, c, h, w]
    params = init_params(kp)
    packed = pack_params(params)

    out = jax.jit(multi_scale_cross_attn)(x, packed)
    out = jax.block_until_ready(out)

    # x1 grid is (16/8)x(16/8)=2x2 -> N=4 tokens; output [bs, N, 1, hdim]
    assert out.shape == (2, 4, 1, HDIM), out.shape
    assert bool(jnp.all(jnp.isfinite(out)))
    print("KERNEL_OK")
</pallas_src>

<mosaic_0001>
module attributes {stable_mosaic.version = 11 : i64} {
  func.func @_scale_kernel(%arg0: i32, %arg1: memref<1x128x256xbf16, #tpu.memory_space<vmem>>, %arg2: memref<1x256x32xbf16, #tpu.memory_space<vmem>>, %arg3: memref<1x8x32x32xbf16, #tpu.memory_space<vmem>>, %arg4: memref<1x8x32xf32, #tpu.memory_space<vmem>>, %arg5: memref<1x128x128xf32, #tpu.memory_space<vmem>>, %arg6: memref<1x128x32xbf16, #tpu.memory_space<vmem>>) attributes {dimension_semantics = [#tpu.dimension_semantics<parallel>], iteration_bounds = array<i64: 3>, scalar_prefetch = 0 : i64, scratch_operands = 0 : i64, tpu.core_type = #tpu.core_type<tc>, window_params = [{transform_indices = @transform_0, window_bounds = array<i64: 1, 128, 256>}, {transform_indices = @transform_1, window_bounds = array<i64: 1, 256, 32>}, {transform_indices = @transform_2, window_bounds = array<i64: 1, 8, 32, 32>}, {transform_indices = @transform_3, window_bounds = array<i64: 1, 8, 32>}, {transform_indices = @transform_4, window_bounds = array<i64: 1, 128, 128>}, {transform_indices = @transform_5, window_bounds = array<i64: 1, 128, 32>}]} {
    %c0 = arith.constant 0 : index
    %c0_0 = arith.constant 0 : index
    %c0_1 = arith.constant 0 : index
    %0 = vector.load %arg1[%c0, %c0_0, %c0_1] : memref<1x128x256xbf16, #tpu.memory_space<vmem>>, vector<1x128x256xbf16>
    %1 = vector.shape_cast %0 : vector<1x128x256xbf16> to vector<128x256xbf16>
    %c0_2 = arith.constant 0 : index
    %c0_3 = arith.constant 0 : index
    %c0_4 = arith.constant 0 : index
    %c0_5 = arith.constant 0 : index
    %2 = vector.load %arg3[%c0_2, %c0_3, %c0_4, %c0_5] : memref<1x8x32x32xbf16, #tpu.memory_space<vmem>>, vector<1x8x32x32xbf16>
    %3 = vector.shape_cast %2 : vector<1x8x32x32xbf16> to vector<8x32x32xbf16>
    %c0_6 = arith.constant 0 : index
    %c0_7 = arith.constant 0 : index
    %c0_8 = arith.constant 0 : index
    %4 = vector.load %arg4[%c0_6, %c0_7, %c0_8] : memref<1x8x32xf32, #tpu.memory_space<vmem>>, vector<1x8x32xf32>
    %5 = vector.shape_cast %4 : vector<1x8x32xf32> to vector<8x32xf32>
    %c0_9 = arith.constant 0 : index
    %c0_10 = arith.constant 0 : index
    %c0_11 = arith.constant 0 : index
    %6 = vector.load %arg5[%c0_9, %c0_10, %c0_11] : memref<1x128x128xf32, #tpu.memory_space<vmem>>, vector<1x128x128xf32>
    %7 = vector.shape_cast %6 : vector<1x128x128xf32> to vector<128x128xf32>
    %c0_12 = arith.constant 0 : index
    %c0_13 = arith.constant 0 : index
    %c0_14 = arith.constant 0 : index
    %8 = vector.load %arg2[%c0_12, %c0_13, %c0_14] : memref<1x256x32xbf16, #tpu.memory_space<vmem>>, vector<1x256x32xbf16>
    %9 = vector.shape_cast %8 : vector<1x256x32xbf16> to vector<256x32xbf16>
    %cst = arith.constant dense<0.000000e+00> : vector<128x32xf32>
    %10 = tpu.matmul %1, %9, %cst {dimension_numbers = #tpu.dot_dimension_numbers<[1], [0], [0], [1], [0, 0, 1, 1], [], []>} : vector<128x256xbf16>, vector<256x32xbf16>, vector<128x32xf32> -> vector<128x32xf32>
    %11 = vector.extract_strided_slice %5 {offsets = [0, 0], sizes = [1, 32], strides = [1, 1]} : vector<8x32xf32> to vector<1x32xf32>
    %12 = vector.broadcast %11 : vector<1x32xf32> to vector<128x32xf32>
    %13 = arith.addf %10, %12 : vector<128x32xf32>
    %14 = vector.extract_strided_slice %5 {offsets = [1, 0], sizes = [1, 32], strides = [1, 1]} : vector<8x32xf32> to vector<1x32xf32>
    %15 = vector.extract_strided_slice %5 {offsets = [2, 0], sizes = [1, 32], strides = [1, 1]} : vector<8x32xf32> to vector<1x32xf32>
    %cst_15 = arith.constant dense<0.000000e+00> : vector<128xf32>
    %16 = vector.multi_reduction <add>, %13, %cst_15 [1] : vector<128x32xf32> to vector<128xf32>
    %17 = vector.shape_cast %16 : vector<128xf32> to vector<128x1xf32>
    %cst_16 = arith.constant 3.200000e+01 : f32
    %18 = vector.broadcast %cst_16 : f32 to vector<128x1xf32>
    %19 = arith.divf %17, %18 : vector<128x1xf32>
    %20 = vector.broadcast %19 : vector<128x1xf32> to vector<128x32xf32>
    %21 = arith.subf %13, %20 : vector<128x32xf32>
    %22 = arith.mulf %21, %21 : vector<128x32xf32>
    %cst_17 = arith.constant dense<0.000000e+00> : vector<128xf32>
    %23 = vector.multi_reduction <add>, %22, %cst_17 [1] : vector<128x32xf32> to vector<128xf32>
    %24 = vector.shape_cast %23 : vector<128xf32> to vector<128x1xf32>
    %cst_18 = arith.constant 3.200000e+01 : f32
    %25 = vector.broadcast %cst_18 : f32 to vector<128x1xf32>
    %26 = arith.divf %24, %25 : vector<128x1xf32>
    %27 = vector.broadcast %19 : vector<128x1xf32> to vector<128x32xf32>
    %28 = arith.subf %13, %27 : vector<128x32xf32>
    %cst_19 = arith.constant 9.99999974E-6 : f32
    %29 = vector.broadcast %cst_19 : f32 to vector<128x1xf32>
    %30 = arith.addf %26, %29 : vector<128x1xf32>
    %31 = math.rsqrt %30 : vector<128x1xf32>
    %32 = vector.broadcast %31 : vector<128x1xf32> to vector<128x32xf32>
    %33 = arith.mulf %28, %32 : vector<128x32xf32>
    %34 = vector.broadcast %14 : vector<1x32xf32> to vector<128x32xf32>
    %35 = arith.mulf %33, %34 : vector<128x32xf32>
    %36 = vector.broadcast %15 : vector<1x32xf32> to vector<128x32xf32>
    %37 = arith.addf %35, %36 : vector<128x32xf32>
    %38 = arith.truncf %37 : vector<128x32xf32> to vector<128x32xbf16>
    %39 = vector.extract_strided_slice %3 {offsets = [2, 0, 0], sizes = [1, 32, 32], strides = [1, 1, 1]} : vector<8x32x32xbf16> to vector<1x32x32xbf16>
    %40 = vector.shape_cast %39 : vector<1x32x32xbf16> to vector<32x32xbf16>
    %cst_20 = arith.constant dense<0.000000e+00> : vector<128x32xf32>
    %41 = tpu.matmul %38, %40, %cst_20 {dimension_numbers = #tpu.dot_dimension_numbers<[1], [0], [0], [1], [0, 0, 1, 1], [], []>} : vector<128x32xbf16>, vector<32x32xbf16>, vector<128x32xf32> -> vector<128x32xf32>
    %42 = arith.truncf %41 : vector<128x32xf32> to vector<128x32xbf16>
    %cst_21 = arith.constant 0.000000e+00 : f32
    %43 = vector.broadcast %cst_21 : f32 to vector<128x32xf32>
    %44 = vector.extract_strided_slice %3 {offsets = [0, 0, 0], sizes = [1, 32, 32], strides = [1, 1, 1]} : vector<8x32x32xbf16> to vector<1x32x32xbf16>
    %45 = vector.shape_cast %44 : vector<1x32x32xbf16> to vector<32x32xbf16>
    %cst_22 = arith.constant dense<0.000000e+00> : vector<128x32xf32>
    %46 = tpu.matmul %38, %45, %cst_22 {dimension_numbers = #tpu.dot_dimension_numbers<[1], [0], [0], [1], [0, 0, 1, 1], [], []>} : vector<128x32xbf16>, vector<32x32xbf16>, vector<128x32xf32> -> vector<128x32xf32>
    %47 = arith.truncf %46 : vector<128x32xf32> to vector<128x32xbf16>
    %48 = vector.extract_strided_slice %3 {offsets = [3, 0, 0], sizes = [1, 32, 32], strides = [1, 1, 1]} : vector<8x32x32xbf16> to vector<1x32x32xbf16>
    %49 = vector.shape_cast %48 : vector<1x32x32xbf16> to vector<32x32xbf16>
    %cst_23 = arith.constant dense<0.000000e+00> : vector<128x32xf32>
    %50 = tpu.matmul %38, %49, %cst_23 {dimension_numbers = #tpu.dot_dimension_numbers<[1], [0], [0], [1], [0, 0, 1, 1], [], []>} : vector<128x32xbf16>, vector<32x32xbf16>, vector<128x32xf32> -> vector<128x32xf32>
    %51 = arith.truncf %50 : vector<128x32xf32> to vector<128x32xbf16>
    %cst_24 = arith.constant dense<0.000000e+00> : vector<128x128xf32>
    %52 = tpu.matmul %47, %42, %cst_24 {dimension_numbers = #tpu.dot_dimension_numbers<[1], [1], [0], [0], [0, 0, 1, 0], [], []>} : vector<128x32xbf16>, vector<128x32xbf16>, vector<128x128xf32> -> vector<128x128xf32>
    %53 = arith.addf %52, %7 : vector<128x128xf32>
    %cst_25 = arith.constant dense<0xFF800000> : vector<128xf32>
    %54 = vector.multi_reduction <maximumf>, %53, %cst_25 [1] : vector<128x128xf32> to vector<128xf32>
    %55 = vector.shape_cast %54 : vector<128xf32> to vector<128x1xf32>
    %56 = vector.broadcast %55 : vector<128x1xf32> to vector<128x128xf32>
    %57 = arith.subf %53, %56 : vector<128x128xf32>
    %58 = math.exp %57 : vector<128x128xf32>
    %cst_26 = arith.constant dense<0.000000e+00> : vector<128xf32>
    %59 = vector.multi_reduction <add>, %58, %cst_26 [1] : vector<128x128xf32> to vector<128xf32>
    %60 = vector.shape_cast %59 : vector<128xf32> to vector<128x1xf32>
    %61 = tpu.reciprocal %60 {approx = true} : vector<128x1xf32> -> vector<128x1xf32>
    %62 = vector.broadcast %61 : vector<128x1xf32> to vector<128x128xf32>
    %63 = arith.mulf %58, %62 : vector<128x128xf32>
    %64 = arith.truncf %63 : vector<128x128xf32> to vector<128x128xbf16>
    %cst_27 = arith.constant dense<0.000000e+00> : vector<128x32xf32>
    %65 = tpu.matmul %64, %51, %cst_27 {dimension_numbers = #tpu.dot_dimension_numbers<[1], [0], [0], [1], [0, 0, 1, 1], [], []>} : vector<128x128xbf16>, vector<128x32xbf16>, vector<128x32xf32> -> vector<128x32xf32>
    %66 = arith.addf %43, %65 : vector<128x32xf32>
    %67 = vector.extract_strided_slice %3 {offsets = [1, 0, 0], sizes = [1, 32, 32], strides = [1, 1, 1]} : vector<8x32x32xbf16> to vector<1x32x32xbf16>
    %68 = vector.shape_cast %67 : vector<1x32x32xbf16> to vector<32x32xbf16>
    %cst_28 = arith.constant dense<0.000000e+00> : vector<128x32xf32>
    %69 = tpu.matmul %38, %68, %cst_28 {dimension_numbers = #tpu.dot_dimension_numbers<[1], [0], [0], [1], [0, 0, 1, 1], [], []>} : vector<128x32xbf16>, vector<32x32xbf16>, vector<128x32xf32> -> vector<128x32xf32>
    %70 = arith.truncf %69 : vector<128x32xf32> to vector<128x32xbf16>
    %71 = vector.extract_strided_slice %3 {offsets = [4, 0, 0], sizes = [1, 32, 32], strides = [1, 1, 1]} : vector<8x32x32xbf16> to vector<1x32x32xbf16>
    %72 = vector.shape_cast %71 : vector<1x32x32xbf16> to vector<32x32xbf16>
    %cst_29 = arith.constant dense<0.000000e+00> : vector<128x32xf32>
    %73 = tpu.matmul %38, %72, %cst_29 {dimension_numbers = #tpu.dot_dimension_numbers<[1], [0], [0], [1], [0, 0, 1, 1], [], []>} : vector<128x32xbf16>, vector<32x32xbf16>, vector<128x32xf32> -> vector<128x32xf32>
    %74 = arith.truncf %73 : vector<128x32xf32> to vector<128x32xbf16>
    %cst_30 = arith.constant dense<0.000000e+00> : vector<128x128xf32>
    %75 = tpu.matmul %70, %42, %cst_30 {dimension_numbers = #tpu.dot_dimension_numbers<[1], [1], [0], [0], [0, 0, 1, 0], [], []>} : vector<128x32xbf16>, vector<128x32xbf16>, vector<128x128xf32> -> vector<128x128xf32>
    %76 = arith.addf %75, %7 : vector<128x128xf32>
    %cst_31 = arith.constant dense<0xFF800000> : vector<128xf32>
    %77 = vector.multi_reduction <maximumf>, %76, %cst_31 [1] : vector<128x128xf32> to vector<128xf32>
    %78 = vector.shape_cast %77 : vector<128xf32> to vector<128x1xf32>
    %79 = vector.broadcast %78 : vector<128x1xf32> to vector<128x128xf32>
    %80 = arith.subf %76, %79 : vector<128x128xf32>
    %81 = math.exp %80 : vector<128x128xf32>
    %cst_32 = arith.constant dense<0.000000e+00> : vector<128xf32>
    %82 = vector.multi_reduction <add>, %81, %cst_32 [1] : vector<128x128xf32> to vector<128xf32>
    %83 = vector.shape_cast %82 : vector<128xf32> to vector<128x1xf32>
    %84 = tpu.reciprocal %83 {approx = true} : vector<128x1xf32> -> vector<128x1xf32>
    %85 = vector.broadcast %84 : vector<128x1xf32> to vector<128x128xf32>
    %86 = arith.mulf %81, %85 : vector<128x128xf32>
    %87 = arith.truncf %86 : vector<128x128xf32> to vector<128x128xbf16>
    %cst_33 = arith.constant dense<0.000000e+00> : vector<128x32xf32>
    %88 = tpu.matmul %87, %74, %cst_33 {dimension_numbers = #tpu.dot_dimension_numbers<[1], [0], [0], [1], [0, 0, 1, 1], [], []>} : vector<128x128xbf16>, vector<128x32xbf16>, vector<128x32xf32> -> vector<128x32xf32>
    %89 = arith.addf %66, %88 : vector<128x32xf32>
    %90 = arith.truncf %89 : vector<128x32xf32> to vector<128x32xbf16>
    %91 = vector.extract_strided_slice %3 {offsets = [5, 0, 0], sizes = [1, 32, 32], strides = [1, 1, 1]} : vector<8x32x32xbf16> to vector<1x32x32xbf16>
    %92 = vector.shape_cast %91 : vector<1x32x32xbf16> to vector<32x32xbf16>
    %cst_34 = arith.constant dense<0.000000e+00> : vector<128x32xf32>
    %93 = tpu.matmul %90, %92, %cst_34 {dimension_numbers = #tpu.dot_dimension_numbers<[1], [0], [0], [1], [0, 0, 1, 1], [], []>} : vector<128x32xbf16>, vector<32x32xbf16>, vector<128x32xf32> -> vector<128x32xf32>
    %94 = vector.extract_strided_slice %5 {offsets = [3, 0], sizes = [1, 32], strides = [1, 1]} : vector<8x32xf32> to vector<1x32xf32>
    %95 = vector.broadcast %94 : vector<1x32xf32> to vector<128x32xf32>
    %96 = arith.addf %93, %95 : vector<128x32xf32>
    %97 = arith.addf %96, %13 : vector<128x32xf32>
    %98 = vector.extract_strided_slice %5 {offsets = [4, 0], sizes = [1, 32], strides = [1, 1]} : vector<8x32xf32> to vector<1x32xf32>
    %99 = vector.extract_strided_slice %5 {offsets = [5, 0], sizes = [1, 32], strides = [1, 1]} : vector<8x32xf32> to vector<1x32xf32>
    %cst_35 = arith.constant dense<0.000000e+00> : vector<128xf32>
    %100 = vector.multi_reduction <add>, %97, %cst_35 [1] : vector<128x32xf32> to vector<128xf32>
    %101 = vector.shape_cast %100 : vector<128xf32> to vector<128x1xf32>
    %cst_36 = arith.constant 3.200000e+01 : f32
    %102 = vector.broadcast %cst_36 : f32 to vector<128x1xf32>
    %103 = arith.divf %101, %102 : vector<128x1xf32>
    %104 = vector.broadcast %103 : vector<128x1xf32> to vector<128x32xf32>
    %105 = arith.subf %97, %104 : vector<128x32xf32>
    %106 = arith.mulf %105, %105 : vector<128x32xf32>
    %cst_37 = arith.constant dense<0.000000e+00> : vector<128xf32>
    %107 = vector.multi_reduction <add>, %106, %cst_37 [1] : vector<128x32xf32> to vector<128xf32>
    %108 = vector.shape_cast %107 : vector<128xf32> to vector<128x1xf32>
    %cst_38 = arith.constant 3.200000e+01 : f32
    %109 = vector.broadcast %cst_38 : f32 to vector<128x1xf32>
    %110 = arith.divf %108, %109 : vector<128x1xf32>
    %111 = vector.broadcast %103 : vector<128x1xf32> to vector<128x32xf32>
    %112 = arith.subf %97, %111 : vector<128x32xf32>
    %cst_39 = arith.constant 9.99999974E-6 : f32
    %113 = vector.broadcast %cst_39 : f32 to vector<128x1xf32>
    %114 = arith.addf %110, %113 : vector<128x1xf32>
    %115 = math.rsqrt %114 : vector<128x1xf32>
    %116 = vector.broadcast %115 : vector<128x1xf32> to vector<128x32xf32>
    %117 = arith.mulf %112, %116 : vector<128x32xf32>
    %118 = vector.broadcast %98 : vector<1x32xf32> to vector<128x32xf32>
    %119 = arith.mulf %117, %118 : vector<128x32xf32>
    %120 = vector.broadcast %99 : vector<1x32xf32> to vector<128x32xf32>
    %121 = arith.addf %119, %120 : vector<128x32xf32>
    %122 = arith.truncf %121 : vector<128x32xf32> to vector<128x32xbf16>
    %123 = vector.extract_strided_slice %3 {offsets = [6, 0, 0], sizes = [1, 32, 32], strides = [1, 1, 1]} : vector<8x32x32xbf16> to vector<1x32x32xbf16>
    %124 = vector.shape_cast %123 : vector<1x32x32xbf16> to vector<32x32xbf16>
    %cst_40 = arith.constant dense<0.000000e+00> : vector<128x32xf32>
    %125 = tpu.matmul %122, %124, %cst_40 {dimension_numbers = #tpu.dot_dimension_numbers<[1], [0], [0], [1], [0, 0, 1, 1], [], []>} : vector<128x32xbf16>, vector<32x32xbf16>, vector<128x32xf32> -> vector<128x32xf32>
    %126 = vector.extract_strided_slice %5 {offsets = [6, 0], sizes = [1, 32], strides = [1, 1]} : vector<8x32xf32> to vector<1x32xf32>
    %127 = vector.broadcast %126 : vector<1x32xf32> to vector<128x32xf32>
    %128 = arith.addf %125, %127 : vector<128x32xf32>
    %cst_41 = arith.constant 5.000000e-01 : f32
    %129 = vector.broadcast %cst_41 : f32 to vector<128x32xf32>
    %130 = arith.mulf %129, %128 : vector<128x32xf32>
    %cst_42 = arith.constant 4.471500e-02 : f32
    %131 = vector.broadcast %cst_42 : f32 to vector<128x32xf32>
    %132 = arith.mulf %131, %128 : vector<128x32xf32>
    %133 = arith.mulf %132, %128 : vector<128x32xf32>
    %134 = arith.mulf %133, %128 : vector<128x32xf32>
    %135 = arith.addf %128, %134 : vector<128x32xf32>
    %cst_43 = arith.constant 0.797884583 : f32
    %136 = vector.broadcast %cst_43 : f32 to vector<128x32xf32>
    %137 = arith.mulf %136, %135 : vector<128x32xf32>
    %138 = math.tanh %137 : vector<128x32xf32>
    %cst_44 = arith.constant 1.000000e+00 : f32
    %139 = vector.broadcast %cst_44 : f32 to vector<128x32xf32>
    %140 = arith.addf %139, %138 : vector<128x32xf32>
    %141 = arith.mulf %130, %140 : vector<128x32xf32>
    %142 = arith.truncf %141 : vector<128x32xf32> to vector<128x32xbf16>
    %143 = vector.extract_strided_slice %3 {offsets = [7, 0, 0], sizes = [1, 32, 32], strides = [1, 1, 1]} : vector<8x32x32xbf16> to vector<1x32x32xbf16>
    %144 = vector.shape_cast %143 : vector<1x32x32xbf16> to vector<32x32xbf16>
    %cst_45 = arith.constant dense<0.000000e+00> : vector<128x32xf32>
    %145 = tpu.matmul %142, %144, %cst_45 {dimension_numbers = #tpu.dot_dimension_numbers<[1], [0], [0], [1], [0, 0, 1, 1], [], []>} : vector<128x32xbf16>, vector<32x32xbf16>, vector<128x32xf32> -> vector<128x32xf32>
    %146 = vector.extract_strided_slice %5 {offsets = [7, 0], sizes = [1, 32], strides = [1, 1]} : vector<8x32xf32> to vector<1x32xf32>
    %147 = vector.broadcast %146 : vector<1x32xf32> to vector<128x32xf32>
    %148 = arith.addf %145, %147 : vector<128x32xf32>
    %149 = arith.addf %148, %97 : vector<128x32xf32>
    %150 = arith.truncf %149 : vector<128x32xf32> to vector<128x32xbf16>
    %c0_46 = arith.constant 0 : index
    %c0_47 = arith.constant 0 : index
    %c0_48 = arith.constant 0 : index
    %151 = vector.load %arg6[%c0_46, %c0_47, %c0_48] : memref<1x128x32xbf16, #tpu.memory_space<vmem>>, vector<1x128x32xbf16>
    %152 = vector.shape_cast %151 : vector<1x128x32xbf16> to vector<128x32xbf16>
    %153 = vector.shape_cast %150 : vector<128x32xbf16> to vector<1x128x32xbf16>
    tpu.vector_store %arg6[%c0_46, %c0_47, %c0_48], %153 {strides = array<i32>} : memref<1x128x32xbf16, #tpu.memory_space<vmem>>, vector<1x128x32xbf16>,
    return
  }
  func.func @transform_0(%arg0: i32) -> (i32, i32, i32) {
    %c0_i32 = arith.constant 0 : i32
    %c0_i32_0 = arith.constant 0 : i32
    %c0_i32_1 = arith.constant 0 : i32
    return %arg0, %c0_i32, %c0_i32_0 : i32, i32, i32
  }
  func.func @transform_1(%arg0: i32) -> (i32, i32, i32) {
    %c0_i32 = arith.constant 0 : i32
    %c0_i32_0 = arith.constant 0 : i32
    %c0_i32_1 = arith.constant 0 : i32
    return %arg0, %c0_i32, %c0_i32_0 : i32, i32, i32
  }
  func.func @transform_2(%arg0: i32) -> (i32, i32, i32, i32) {
    %c0_i32 = arith.constant 0 : i32
    %c0_i32_0 = arith.constant 0 : i32
    %c0_i32_1 = arith.constant 0 : i32
    %c0_i32_2 = arith.constant 0 : i32
    return %arg0, %c0_i32, %c0_i32_0, %c0_i32_1 : i32, i32, i32, i32
  }
  func.func @transform_3(%arg0: i32) -> (i32, i32, i32) {
    %c0_i32 = arith.constant 0 : i32
    %c0_i32_0 = arith.constant 0 : i32
    %c0_i32_1 = arith.constant 0 : i32
    return %arg0, %c0_i32, %c0_i32_0 : i32, i32, i32
  }
  func.func @transform_4(%arg0: i32) -> (i32, i32, i32) {
    %c0_i32 = arith.constant 0 : i32
    %c0_i32_0 = arith.constant 0 : i32
    %c0_i32_1 = arith.constant 0 : i32
    return %arg0, %c0_i32, %c0_i32_0 : i32, i32, i32
  }
  func.func @transform_5(%arg0: i32) -> (i32, i32, i32) {
    %c0_i32 = arith.constant 0 : i32
    %c0_i32_0 = arith.constant 0 : i32
    %c0_i32_1 = arith.constant 0 : i32
    return %arg0, %c0_i32, %c0_i32_0 : i32, i32, i32
  }
}

module attributes {stable_mosaic.version = 11 : i64} {
  func.func @_cross_kernel(%arg0: i32, %arg1: memref<1x4x32xbf16, #tpu.memory_space<vmem>>, %arg2: memref<1x80x32xbf16, #tpu.memory_space<vmem>>, %arg3: memref<4x80xf32, #tpu.memory_space<vmem>>, %arg4: memref<6x32x32xbf16, #tpu.memory_space<vmem>>, %arg5: memref<10x32xf32, #tpu.memory_space<vmem>>, %arg6: memref<1x4x32xf32, #tpu.memory_space<vmem>>) attributes {dimension_semantics = [#tpu.dimension_semantics<parallel>], iteration_bounds = array<i64: 2>, scalar_prefetch = 0 : i64, scratch_operands = 0 : i64, tpu.core_type = #tpu.core_type<tc>, window_params = [{transform_indices = @transform_0, window_bounds = array<i64: 1, 4, 32>}, {transform_indices = @transform_1, window_bounds = array<i64: 1, 80, 32>}, {pipeline_mode = #tpu.pipeline_mode<synchronous>, transform_indices = @transform_2, window_bounds = array<i64: 4, 80>}, {pipeline_mode = #tpu.pipeline_mode<synchronous>, transform_indices = @transform_3, window_bounds = array<i64: 6, 32, 32>}, {pipeline_mode = #tpu.pipeline_mode<synchronous>, transform_indices = @transform_4, window_bounds = array<i64: 10, 32>}, {transform_indices = @transform_5, window_bounds = array<i64: 1, 4, 32>}]} {
    %c0 = arith.constant 0 : index
    %c0_0 = arith.constant 0 : index
    %c0_1 = arith.constant 0 : index
    %0 = vector.load %arg1[%c0, %c0_0, %c0_1] : memref<1x4x32xbf16, #tpu.memory_space<vmem>>, vector<1x4x32xbf16>
    %1 = vector.shape_cast %0 : vector<1x4x32xbf16> to vector<4x32xbf16>
    %2 = arith.extf %1 : vector<4x32xbf16> to vector<4x32xf32>
    %c0_2 = arith.constant 0 : index
    %c0_3 = arith.constant 0 : index
    %c0_4 = arith.constant 0 : index
    %3 = vector.load %arg2[%c0_2, %c0_3, %c0_4] : memref<1x80x32xbf16, #tpu.memory_space<vmem>>, vector<1x80x32xbf16>
    %4 = vector.shape_cast %3 : vector<1x80x32xbf16> to vector<80x32xbf16>
    %5 = arith.extf %4 : vector<80x32xbf16> to vector<80x32xf32>
    %c0_5 = arith.constant 0 : index
    %c0_6 = arith.constant 0 : index
    %c0_7 = arith.constant 0 : index
    %6 = vector.load %arg4[%c0_5, %c0_6, %c0_7] : memref<6x32x32xbf16, #tpu.memory_space<vmem>>, vector<6x32x32xbf16>
    %c0_8 = arith.constant 0 : index
    %c0_9 = arith.constant 0 : index
    %7 = vector.load %arg5[%c0_8, %c0_9] : memref<10x32xf32, #tpu.memory_space<vmem>>, vector<10x32xf32>
    %8 = vector.extract_strided_slice %7 {offsets = [0, 0], sizes = [1, 32], strides = [1, 1]} : vector<10x32xf32> to vector<1x32xf32>
    %9 = vector.extract_strided_slice %7 {offsets = [1, 0], sizes = [1, 32], strides = [1, 1]} : vector<10x32xf32> to vector<1x32xf32>
    %cst = arith.constant dense<0.000000e+00> : vector<4xf32>
    %10 = vector.multi_reduction <add>, %2, %cst [1] : vector<4x32xf32> to vector<4xf32>
    %11 = vector.shape_cast %10 : vector<4xf32> to vector<4x1xf32>
    %cst_10 = arith.constant 3.200000e+01 : f32
    %12 = vector.broadcast %cst_10 : f32 to vector<4x1xf32>
    %13 = arith.divf %11, %12 : vector<4x1xf32>
    %14 = vector.broadcast %13 : vector<4x1xf32> to vector<4x32xf32>
    %15 = arith.subf %2, %14 : vector<4x32xf32>
    %16 = arith.mulf %15, %15 : vector<4x32xf32>
    %cst_11 = arith.constant dense<0.000000e+00> : vector<4xf32>
    %17 = vector.multi_reduction <add>, %16, %cst_11 [1] : vector<4x32xf32> to vector<4xf32>
    %18 = vector.shape_cast %17 : vector<4xf32> to vector<4x1xf32>
    %cst_12 = arith.constant 3.200000e+01 : f32
    %19 = vector.broadcast %cst_12 : f32 to vector<4x1xf32>
    %20 = arith.divf %18, %19 : vector<4x1xf32>
    %21 = vector.broadcast %13 : vector<4x1xf32> to vector<4x32xf32>
    %22 = arith.subf %2, %21 : vector<4x32xf32>
    %cst_13 = arith.constant 9.99999974E-6 : f32
    %23 = vector.broadcast %cst_13 : f32 to vector<4x1xf32>
    %24 = arith.addf %20, %23 : vector<4x1xf32>
    %25 = math.rsqrt %24 : vector<4x1xf32>
    %26 = vector.broadcast %25 : vector<4x1xf32> to vector<4x32xf32>
    %27 = arith.mulf %22, %26 : vector<4x32xf32>
    %28 = vector.broadcast %8 : vector<1x32xf32> to vector<4x32xf32>
    %29 = arith.mulf %27, %28 : vector<4x32xf32>
    %30 = vector.broadcast %9 : vector<1x32xf32> to vector<4x32xf32>
    %31 = arith.addf %29, %30 : vector<4x32xf32>
    %32 = arith.truncf %31 : vector<4x32xf32> to vector<4x32xbf16>
    %33 = vector.extract_strided_slice %7 {offsets = [0, 0], sizes = [1, 32], strides = [1, 1]} : vector<10x32xf32> to vector<1x32xf32>
    %34 = vector.extract_strided_slice %7 {offsets = [1, 0], sizes = [1, 32], strides = [1, 1]} : vector<10x32xf32> to vector<1x32xf32>
    %cst_14 = arith.constant dense<0.000000e+00> : vector<80xf32>
    %35 = vector.multi_reduction <add>, %5, %cst_14 [1] : vector<80x32xf32> to vector<80xf32>
    %36 = vector.shape_cast %35 : vector<80xf32> to vector<80x1xf32>
    %cst_15 = arith.constant 3.200000e+01 : f32
    %37 = vector.broadcast %cst_15 : f32 to vector<80x1xf32>
    %38 = arith.divf %36, %37 : vector<80x1xf32>
    %39 = vector.broadcast %38 : vector<80x1xf32> to vector<80x32xf32>
    %40 = arith.subf %5, %39 : vector<80x32xf32>
    %41 = arith.mulf %40, %40 : vector<80x32xf32>
    %cst_16 = arith.constant dense<0.000000e+00> : vector<80xf32>
    %42 = vector.multi_reduction <add>, %41, %cst_16 [1] : vector<80x32xf32> to vector<80xf32>
    %43 = vector.shape_cast %42 : vector<80xf32> to vector<80x1xf32>
    %cst_17 = arith.constant 3.200000e+01 : f32
    %44 = vector.broadcast %cst_17 : f32 to vector<80x1xf32>
    %45 = arith.divf %43, %44 : vector<80x1xf32>
    %46 = vector.broadcast %38 : vector<80x1xf32> to vector<80x32xf32>
    %47 = arith.subf %5, %46 : vector<80x32xf32>
    %cst_18 = arith.constant 9.99999974E-6 : f32
    %48 = vector.broadcast %cst_18 : f32 to vector<80x1xf32>
    %49 = arith.addf %45, %48 : vector<80x1xf32>
    %50 = math.rsqrt %49 : vector<80x1xf32>
    %51 = vector.broadcast %50 : vector<80x1xf32> to vector<80x32xf32>
    %52 = arith.mulf %47, %51 : vector<80x32xf32>
    %53 = vector.broadcast %33 : vector<1x32xf32> to vector<80x32xf32>
    %54 = arith.mulf %52, %53 : vector<80x32xf32>
    %55 = vector.broadcast %34 : vector<1x32xf32> to vector<80x32xf32>
    %56 = arith.addf %54, %55 : vector<80x32xf32>
    %57 = arith.truncf %56 : vector<80x32xf32> to vector<80x32xbf16>
    %58 = vector.extract_strided_slice %6 {offsets = [0, 0, 0], sizes = [1, 32, 32], strides = [1, 1, 1]} : vector<6x32x32xbf16> to vector<1x32x32xbf16>
    %59 = vector.shape_cast %58 : vector<1x32x32xbf16> to vector<32x32xbf16>
    %cst_19 = arith.constant dense<0.000000e+00> : vector<4x32xf32>
    %60 = tpu.matmul %32, %59, %cst_19 {dimension_numbers = #tpu.dot_dimension_numbers<[1], [0], [0], [1], [0, 0, 1, 1], [], []>} : vector<4x32xbf16>, vector<32x32xbf16>, vector<4x32xf32> -> vector<4x32xf32>
    %61 = vector.extract_strided_slice %7 {offsets = [2, 0], sizes = [1, 32], strides = [1, 1]} : vector<10x32xf32> to vector<1x32xf32>
    %62 = vector.broadcast %61 : vector<1x32xf32> to vector<4x32xf32>
    %63 = arith.addf %60, %62 : vector<4x32xf32>
    %64 = vector.extract_strided_slice %6 {offsets = [1, 0, 0], sizes = [1, 32, 32], strides = [1, 1, 1]} : vector<6x32x32xbf16> to vector<1x32x32xbf16>
    %65 = vector.shape_cast %64 : vector<1x32x32xbf16> to vector<32x32xbf16>
    %cst_20 = arith.constant dense<0.000000e+00> : vector<80x32xf32>
    %66 = tpu.matmul %57, %65, %cst_20 {dimension_numbers = #tpu.dot_dimension_numbers<[1], [0], [0], [1], [0, 0, 1, 1], [], []>} : vector<80x32xbf16>, vector<32x32xbf16>, vector<80x32xf32> -> vector<80x32xf32>
    %67 = vector.extract_strided_slice %7 {offsets = [3, 0], sizes = [1, 32], strides = [1, 1]} : vector<10x32xf32> to vector<1x32xf32>
    %68 = vector.broadcast %67 : vector<1x32xf32> to vector<80x32xf32>
    %69 = arith.addf %66, %68 : vector<80x32xf32>
    %70 = vector.extract_strided_slice %6 {offsets = [2, 0, 0], sizes = [1, 32, 32], strides = [1, 1, 1]} : vector<6x32x32xbf16> to vector<1x32x32xbf16>
    %71 = vector.shape_cast %70 : vector<1x32x32xbf16> to vector<32x32xbf16>
    %cst_21 = arith.constant dense<0.000000e+00> : vector<80x32xf32>
    %72 = tpu.matmul %57, %71, %cst_21 {dimension_numbers = #tpu.dot_dimension_numbers<[1], [0], [0], [1], [0, 0, 1, 1], [], []>} : vector<80x32xbf16>, vector<32x32xbf16>, vector<80x32xf32> -> vector<80x32xf32>
    %73 = vector.extract_strided_slice %7 {offsets = [4, 0], sizes = [1, 32], strides = [1, 1]} : vector<10x32xf32> to vector<1x32xf32>
    %74 = vector.broadcast %73 : vector<1x32xf32> to vector<80x32xf32>
    %75 = arith.addf %72, %74 : vector<80x32xf32>
    %76 = arith.truncf %63 : vector<4x32xf32> to vector<4x32xbf16>
    %77 = arith.truncf %69 : vector<80x32xf32> to vector<80x32xbf16>
    %cst_22 = arith.constant dense<0.000000e+00> : vector<4x80xf32>
    %78 = tpu.matmul %76, %77, %cst_22 {dimension_numbers = #tpu.dot_dimension_numbers<[1], [1], [0], [0], [0, 0, 1, 0], [], []>} : vector<4x32xbf16>, vector<80x32xbf16>, vector<4x80xf32> -> vector<4x80xf32>
    %c0_23 = arith.constant 0 : index
    %c0_24 = arith.constant 0 : index
    %79 = vector.load %arg3[%c0_23, %c0_24] : memref<4x80xf32, #tpu.memory_space<vmem>>, vector<4x80xf32>
    %80 = arith.addf %78, %79 : vector<4x80xf32>
    %cst_25 = arith.constant dense<0xFF800000> : vector<4xf32>
    %81 = vector.multi_reduction <maximumf>, %80, %cst_25 [1] : vector<4x80xf32> to vector<4xf32>
    %82 = vector.shape_cast %81 : vector<4xf32> to vector<4x1xf32>
    %83 = vector.broadcast %82 : vector<4x1xf32> to vector<4x80xf32>
    %84 = arith.subf %80, %83 : vector<4x80xf32>
    %85 = math.exp %84 : vector<4x80xf32>
    %cst_26 = arith.constant dense<0.000000e+00> : vector<4xf32>
    %86 = vector.multi_reduction <add>, %85, %cst_26 [1] : vector<4x80xf32> to vector<4xf32>
    %87 = vector.shape_cast %86 : vector<4xf32> to vector<4x1xf32>
    %88 = tpu.reciprocal %87 {approx = true} : vector<4x1xf32> -> vector<4x1xf32>
    %89 = vector.broadcast %88 : vector<4x1xf32> to vector<4x80xf32>
    %90 = arith.mulf %85, %89 : vector<4x80xf32>
    %91 = arith.truncf %90 : vector<4x80xf32> to vector<4x80xbf16>
    %92 = arith.truncf %75 : vector<80x32xf32> to vector<80x32xbf16>
    %cst_27 = arith.constant dense<0.000000e+00> : vector<4x32xf32>
    %93 = tpu.matmul %91, %92, %cst_27 {dimension_numbers = #tpu.dot_dimension_numbers<[1], [0], [0], [1], [0, 0, 1, 1], [], []>} : vector<4x80xbf16>, vector<80x32xbf16>, vector<4x32xf32> -> vector<4x32xf32>
    %94 = arith.truncf %93 : vector<4x32xf32> to vector<4x32xbf16>
    %95 = vector.extract_strided_slice %6 {offsets = [3, 0, 0], sizes = [1, 32, 32], strides = [1, 1, 1]} : vector<6x32x32xbf16> to vector<1x32x32xbf16>
    %96 = vector.shape_cast %95 : vector<1x32x32xbf16> to vector<32x32xbf16>
    %cst_28 = arith.constant dense<0.000000e+00> : vector<4x32xf32>
    %97 = tpu.matmul %94, %96, %cst_28 {dimension_numbers = #tpu.dot_dimension_numbers<[1], [0], [0], [1], [0, 0, 1, 1], [], []>} : vector<4x32xbf16>, vector<32x32xbf16>, vector<4x32xf32> -> vector<4x32xf32>
    %98 = vector.extract_strided_slice %7 {offsets = [5, 0], sizes = [1, 32], strides = [1, 1]} : vector<10x32xf32> to vector<1x32xf32>
    %99 = vector.broadcast %98 : vector<1x32xf32> to vector<4x32xf32>
    %100 = arith.addf %97, %99 : vector<4x32xf32>
    %101 = arith.addf %100, %2 : vector<4x32xf32>
    %102 = vector.extract_strided_slice %7 {offsets = [6, 0], sizes = [1, 32], strides = [1, 1]} : vector<10x32xf32> to vector<1x32xf32>
    %103 = vector.extract_strided_slice %7 {offsets = [7, 0], sizes = [1, 32], strides = [1, 1]} : vector<10x32xf32> to vector<1x32xf32>
    %cst_29 = arith.constant dense<0.000000e+00> : vector<4xf32>
    %104 = vector.multi_reduction <add>, %101, %cst_29 [1] : vector<4x32xf32> to vector<4xf32>
    %105 = vector.shape_cast %104 : vector<4xf32> to vector<4x1xf32>
    %cst_30 = arith.constant 3.200000e+01 : f32
    %106 = vector.broadcast %cst_30 : f32 to vector<4x1xf32>
    %107 = arith.divf %105, %106 : vector<4x1xf32>
    %108 = vector.broadcast %107 : vector<4x1xf32> to vector<4x32xf32>
    %109 = arith.subf %101, %108 : vector<4x32xf32>
    %110 = arith.mulf %109, %109 : vector<4x32xf32>
    %cst_31 = arith.constant dense<0.000000e+00> : vector<4xf32>
    %111 = vector.multi_reduction <add>, %110, %cst_31 [1] : vector<4x32xf32> to vector<4xf32>
    %112 = vector.shape_cast %111 : vector<4xf32> to vector<4x1xf32>
    %cst_32 = arith.constant 3.200000e+01 : f32
    %113 = vector.broadcast %cst_32 : f32 to vector<4x1xf32>
    %114 = arith.divf %112, %113 : vector<4x1xf32>
    %115 = vector.broadcast %107 : vector<4x1xf32> to vector<4x32xf32>
    %116 = arith.subf %101, %115 : vector<4x32xf32>
    %cst_33 = arith.constant 9.99999974E-6 : f32
    %117 = vector.broadcast %cst_33 : f32 to vector<4x1xf32>
    %118 = arith.addf %114, %117 : vector<4x1xf32>
    %119 = math.rsqrt %118 : vector<4x1xf32>
    %120 = vector.broadcast %119 : vector<4x1xf32> to vector<4x32xf32>
    %121 = arith.mulf %116, %120 : vector<4x32xf32>
    %122 = vector.broadcast %102 : vector<1x32xf32> to vector<4x32xf32>
    %123 = arith.mulf %121, %122 : vector<4x32xf32>
    %124 = vector.broadcast %103 : vector<1x32xf32> to vector<4x32xf32>
    %125 = arith.addf %123, %124 : vector<4x32xf32>
    %126 = arith.truncf %125 : vector<4x32xf32> to vector<4x32xbf16>
    %127 = vector.extract_strided_slice %6 {offsets = [4, 0, 0], sizes = [1, 32, 32], strides = [1, 1, 1]} : vector<6x32x32xbf16> to vector<1x32x32xbf16>
    %128 = vector.shape_cast %127 : vector<1x32x32xbf16> to vector<32x32xbf16>
    %cst_34 = arith.constant dense<0.000000e+00> : vector<4x32xf32>
    %129 = tpu.matmul %126, %128, %cst_34 {dimension_numbers = #tpu.dot_dimension_numbers<[1], [0], [0], [1], [0, 0, 1, 1], [], []>} : vector<4x32xbf16>, vector<32x32xbf16>, vector<4x32xf32> -> vector<4x32xf32>
    %130 = vector.extract_strided_slice %7 {offsets = [8, 0], sizes = [1, 32], strides = [1, 1]} : vector<10x32xf32> to vector<1x32xf32>
    %131 = vector.broadcast %130 : vector<1x32xf32> to vector<4x32xf32>
    %132 = arith.addf %129, %131 : vector<4x32xf32>
    %cst_35 = arith.constant 5.000000e-01 : f32
    %133 = vector.broadcast %cst_35 : f32 to vector<4x32xf32>
    %134 = arith.mulf %133, %132 : vector<4x32xf32>
    %cst_36 = arith.constant 4.471500e-02 : f32
    %135 = vector.broadcast %cst_36 : f32 to vector<4x32xf32>
    %136 = arith.mulf %135, %132 : vector<4x32xf32>
    %137 = arith.mulf %136, %132 : vector<4x32xf32>
    %138 = arith.mulf %137, %132 : vector<4x32xf32>
    %139 = arith.addf %132, %138 : vector<4x32xf32>
    %cst_37 = arith.constant 0.797884583 : f32
    %140 = vector.broadcast %cst_37 : f32 to vector<4x32xf32>
    %141 = arith.mulf %140, %139 : vector<4x32xf32>
    %142 = math.tanh %141 : vector<4x32xf32>
    %cst_38 = arith.constant 1.000000e+00 : f32
    %143 = vector.broadcast %cst_38 : f32 to vector<4x32xf32>
    %144 = arith.addf %143, %142 : vector<4x32xf32>
    %145 = arith.mulf %134, %144 : vector<4x32xf32>
    %146 = arith.truncf %145 : vector<4x32xf32> to vector<4x32xbf16>
    %147 = vector.extract_strided_slice %6 {offsets = [5, 0, 0], sizes = [1, 32, 32], strides = [1, 1, 1]} : vector<6x32x32xbf16> to vector<1x32x32xbf16>
    %148 = vector.shape_cast %147 : vector<1x32x32xbf16> to vector<32x32xbf16>
    %cst_39 = arith.constant dense<0.000000e+00> : vector<4x32xf32>
    %149 = tpu.matmul %146, %148, %cst_39 {dimension_numbers = #tpu.dot_dimension_numbers<[1], [0], [0], [1], [0, 0, 1, 1], [], []>} : vector<4x32xbf16>, vector<32x32xbf16>, vector<4x32xf32> -> vector<4x32xf32>
    %150 = vector.extract_strided_slice %7 {offsets = [9, 0], sizes = [1, 32], strides = [1, 1]} : vector<10x32xf32> to vector<1x32xf32>
    %151 = vector.broadcast %150 : vector<1x32xf32> to vector<4x32xf32>
    %152 = arith.addf %149, %151 : vector<4x32xf32>
    %153 = arith.addf %152, %101 : vector<4x32xf32>
    %c0_40 = arith.constant 0 : index
    %c0_41 = arith.constant 0 : index
    %c0_42 = arith.constant 0 : index
    %154 = vector.load %arg6[%c0_40, %c0_41, %c0_42] : memref<1x4x32xf32, #tpu.memory_space<vmem>>, vector<1x4x32xf32>
    %155 = vector.shape_cast %154 : vector<1x4x32xf32> to vector<4x32xf32>
    %156 = vector.shape_cast %153 : vector<4x32xf32> to vector<1x4x32xf32>
    tpu.vector_store %arg6[%c0_40, %c0_41, %c0_42], %156 {strides = array<i32>} : memref<1x4x32xf32, #tpu.memory_space<vmem>>, vector<1x4x32xf32>,
    return
  }
  func.func @transform_0(%arg0: i32) -> (i32, i32, i32) {
    %c0_i32 = arith.constant 0 : i32
    %c0_i32_0 = arith.constant 0 : i32
    %c0_i32_1 = arith.constant 0 : i32
    return %arg0, %c0_i32, %c0_i32_0 : i32, i32, i32
  }
  func.func @transform_1(%arg0: i32) -> (i32, i32, i32) {
    %c0_i32 = arith.constant 0 : i32
    %c0_i32_0 = arith.constant 0 : i32
    %c0_i32_1 = arith.constant 0 : i32
    return %arg0, %c0_i32, %c0_i32_0 : i32, i32, i32
  }
  func.func @transform_2(%arg0: i32) -> (i32, i32) {
    %c0_i32 = arith.constant 0 : i32
    %c0_i32_0 = arith.constant 0 : i32
    %c0_i32_1 = arith.constant 0 : i32
    return %c0_i32, %c0_i32_0 : i32, i32
  }
  func.func @transform_3(%arg0: i32) -> (i32, i32, i32) {
    %c0_i32 = arith.constant 0 : i32
    %c0_i32_0 = arith.constant 0 : i32
    %c0_i32_1 = arith.constant 0 : i32
    %c0_i32_2 = arith.constant 0 : i32
    return %c0_i32, %c0_i32_0, %c0_i32_1 : i32, i32, i32
  }
  func.func @transform_4(%arg0: i32) -> (i32, i32) {
    %c0_i32 = arith.constant 0 : i32
    %c0_i32_0 = arith.constant 0 : i32
    %c0_i32_1 = arith.constant 0 : i32
    return %c0_i32, %c0_i32_0 : i32, i32
  }
  func.func @transform_5(%arg0: i32) -> (i32, i32, i32) {
    %c0_i32 = arith.constant 0 : i32
    %c0_i32_0 = arith.constant 0 : i32
    %c0_i32_1 = arith.constant 0 : i32
    return %arg0, %c0_i32, %c0_i32_0 : i32, i32, i32
  }
}

</mosaic_0001>

<bundles_post_ra>
// kernel: multi_scale_cross_attn.2
= control target key start
LH: loop header
LB: loop body
LE: loop exit
PB: predicated region body
PF: predicated region fallthrough
CT: control target
= control target key end

     0   :  { %s4390_s18 = smov 0   ;;  %s5700_s0 = inlined_call_operand.vmem [shape: bf16[3,128,256], index: 0, kind: input, shape index: {}]   ;;  %s5701_s1 = inlined_call_operand.vmem [shape: bf16[3,256,32], index: 1, kind: input, shape index: {}]   ;;  %s5702_s2 = inlined_call_operand.vmem [shape: bf16[3,8,32,32], index: 2, kind: input, shape index: {}]   ;;  %s5703_s3 = inlined_call_operand.vmem [shape: f32[3,8,32], index: 3, kind: input, shape index: {}]   ;;  %s5704_s4 = inlined_call_operand.vmem [shape: f32[3,128,128], index: 4, kind: input, shape index: {}]   ;;  %s5705_s5 = inlined_call_operand.vmem [shape: bf16[3,128,32], index: 5, kind: output, shape index: {}]  }
   0x1 LB: > { %s3351_s19 = sadd.s32 4294967295, %s4358_s18   ;;  %p3355_p0 = scmp.ge.s32.totalorder %s4358_s18, 1  ;;  %s4358_s18 = sphi %s4390_s18, %s15_s18  }
   0x2   : > { %p226_p1 = scmp.lt.s32.totalorder %s4358_s18, 4 }
   0x4   : > { %p227_p2 = pnand %p3355_p0, %p226_p1 }
   0x6   : > { %230 = sbr.rel (%p227_p2) target bundleno = 2750 (0xabe), region = 40 }
   0xd   : > { %p273_p3 = scmp.lt.s32.totalorder %s3351_s19, 2  ;;  %v400_v32 = vlaneseq  ;;  %vm677_vm0 = vcmask 261120   ;;  %vm3231_vm1 = vcmask 257024  }
   0xf   : > { %s5746_s19 = smov (!%p273_p3, %s3351_s19), 2  ;;  %v4448_v33 = vshrl.u32 %v400_v32, 7 }
  0x10   : > { %s4401_s20 = sshll.u32 %s5746_s19, 7  ;;  %s3362_s27 = sshll.u32 %s5746_s19, 3 }
  0x11   : > { %s4407_s23 = scalar_lea.vmem %s5701_s1, %s4401_s20  ;;  %s4422_s26 = scalar_lea.vmem %s5700_s0, %s4401_s20  ;;  %v402_v34 = vsub.s32 0, %v4448_v33 }
  0x12   : > { %v4070_v0 = vld [vmem:[%s4407_s23 + $0x40] sm:$0xff]   ;;  %v4072_v2 = vld [vmem:[%s4407_s23 + $0x48] sm:$0xff]   ;;  %v4074_v4 = vld [vmem:[%s4407_s23 + $0x50] sm:$0xff]   ;;  %s4453_s30 = scalar_lea.vmem %s5703_s3, %s3362_s27  ;;  %s4614_s8 = scalar_lea.vmem %s5702_s2, %s4401_s20 }
  0x13   : > { %v4071_v1 = vld [vmem:[%s4407_s23] sm:$0xff]   ;;  %3534 = vmatprep.subr.bf16.mxu0 %v4070_v0  ;;  %v4073_v3 = vld [vmem:[%s4407_s23 + $0x8] sm:$0xff]   ;;  %v4075_v5 = vld [vmem:[%s4407_s23 + $0x10] sm:$0xff]   ;;  %s4906_s11 = scalar_lea.vmem %s5704_s4, %s4401_s20  ;;  %s3517_s12 = sshll.u32 %s5746_s19, 6 }
  0x14   : > { %3535 = vmatpush3.bf16.msra.mxu0 %v4071_v1  ;;  %v4076_v6 = vld [vmem:[%s4407_s23 + $0x58] sm:$0xff]   ;;  %v4078_v8 = vld [vmem:[%s4407_s23 + $0x60] sm:$0xff]   ;;  %v4080_v10 = vld [vmem:[%s4407_s23 + $0x68] sm:$0xff]   ;;  %s5635_s15 = scalar_lea.vmem %s5705_s5, %s3517_s12 }
  0x15   : > { %3536 = vmatprep.subr.bf16.mxu0 %v4072_v2  ;;  %v4077_v7 = vld [vmem:[%s4407_s23 + $0x18] sm:$0xff]   ;;  %v4079_v9 = vld [vmem:[%s4407_s23 + $0x20] sm:$0xff]   ;;  %v4081_v12 = vld [vmem:[%s4407_s23 + $0x28] sm:$0xff]  }
  0x16   : > { %v4088_v11 = vld [vmem:[%s4422_s26 + $0x4] ss:$8 sps:$4 sm:$0xff]   ;;  %v4082_v13 = vld [vmem:[%s4407_s23 + $0x70] sm:$0xff]   ;;  %v4084_v15 = vld [vmem:[%s4407_s23 + $0x78] sm:$0xff]  }
  0x17   : > { %612 = vmatprep.mubr.bf16.mxu0 %v4088_v11  ;;  %v4083_v14 = vld [vmem:[%s4407_s23 + $0x30] sm:$0xff]   ;;  %v4085_v16 = vld [vmem:[%s4407_s23 + $0x38] sm:$0xff]   ;;  %v4086_v17 = vld [vmem:[%s4422_s26] ss:$8 sps:$4 sm:$0xff]  }
  0x18   : > { %3537 = vmatpush3.bf16.msra.mxu0 %v4073_v3  ;;  %v4089_v18 = vld [vmem:[%s4422_s26 + $0x14] ss:$8 sps:$4 sm:$0xff]   ;;  %v4091_v19 = vld [vmem:[%s4422_s26 + $0x10] ss:$8 sps:$4 sm:$0xff]   ;;  %v4092_v20 = vld [vmem:[%s4422_s26 + $0x24] ss:$8 sps:$4 sm:$0xff]  }
  0x19   : > { %3538 = vmatprep.subr.bf16.mxu0 %v4074_v4  ;;  %v4094_v21 = vld [vmem:[%s4422_s26 + $0x20] ss:$8 sps:$4 sm:$0xff]   ;;  %v4095_v22 = vld [vmem:[%s4422_s26 + $0x34] ss:$8 sps:$4 sm:$0xff]   ;;  %v4097_v23 = vld [vmem:[%s4422_s26 + $0x30] ss:$8 sps:$4 sm:$0xff]  }
  0x1a   : > { %v4098_v24 = vld [vmem:[%s4422_s26 + $0x44] ss:$8 sps:$4 sm:$0xff]   ;;  %v4100_v25 = vld [vmem:[%s4422_s26 + $0x40] ss:$8 sps:$4 sm:$0xff]   ;;  %v4101_v26 = vld [vmem:[%s4422_s26 + $0x54] ss:$8 sps:$4 sm:$0xff]  }
  0x1b   : > { %v4103_v27 = vld [vmem:[%s4422_s26 + $0x50] ss:$8 sps:$4 sm:$0xff]   ;;  %v4104_v28 = vld [vmem:[%s4422_s26 + $0x64] ss:$8 sps:$4 sm:$0xff]   ;;  %v4106_v29 = vld [vmem:[%s4422_s26 + $0x60] ss:$8 sps:$4 sm:$0xff]  }
  0x1c   : > { %3539 = vmatpush3.bf16.msra.mxu0 %v4075_v5  ;;  %v4107_v30 = vld [vmem:[%s4422_s26 + $0x74] ss:$8 sps:$4 sm:$0xff]   ;;  %v4109_v31 = vld [vmem:[%s4422_s26 + $0x70] ss:$8 sps:$4 sm:$0xff]   ;;  %v4457_v35 = vld [vmem:[%s4453_s30] sm:$0xff] }
  0x1d   : > { %3540 = vmatprep.subr.bf16.mxu0 %v4076_v6  ;;  %v4460_v37 = vrot.slane %v4457_v35, %v402_v34 }
  0x20   : > { %3541 = vmatpush3.bf16.msra.mxu0 %v4077_v7 }
  0x21   : > { %3542 = vmatprep.subr.bf16.mxu0 %v4078_v8 }
  0x24   : > { %3543 = vmatpush3.bf16.msra.mxu0 %v4079_v9 }
  0x25   : > { %3544 = vmatprep.subr.bf16.mxu0 %v4080_v10 }
  0x28   : > { %3545 = vmatpush3.bf16.msra.mxu0 %v4081_v12 }
  0x29   : > { %3546 = vmatprep.subr.bf16.mxu0 %v4082_v13 }
  0x2c   : > { %3547 = vmatpush3.bf16.msra.mxu0 %v4083_v14 }
  0x2d   : > { %3548 = vmatprep.subr.bf16.mxu0 %v4084_v15 }
  0x30   : > { %3549 = vmatpush3.bf16.msra.mxu0 %v4085_v16 }
  0x33   : > { %613 = vmatmul.mubr.bf16.vlgmr.msra.gmra.mrb[0].mxu0 %v4086_v17 }
  0x34   : > { %620 = vmatprep.mubr.bf16.mxu0 %v4089_v18 }
  0x3b   : > { %621 = vmatmul.mubr.bf16.gmra.mrb[4].mxu0 %v4091_v19 }
  0x3c   : > { %628 = vmatprep.mubr.bf16.mxu0 %v4092_v20 }
  0x43   : > { %629 = vmatmul.mubr.bf16.gmra.mrb[8].mxu0 %v4094_v21 }
  0x44   : > { %636 = vmatprep.mubr.bf16.mxu0 %v4095_v22 }
  0x4b   : > { %637 = vmatmul.mubr.bf16.gmra.mrb[12].mxu0 %v4097_v23 }
  0x4c   : > { %644 = vmatprep.mubr.bf16.mxu0 %v4098_v24 }
  0x53   : > { %645 = vmatmul.mubr.bf16.gmra.mrb[16].mxu0 %v4100_v25 }
  0x54   : > { %652 = vmatprep.mubr.bf16.mxu0 %v4101_v26 }
  0x5b   : > { %653 = vmatmul.mubr.bf16.gmra.mrb[20].mxu0 %v4103_v27 }
  0x5c   : > { %660 = vmatprep.mubr.bf16.mxu0 %v4104_v28 }
  0x63   : > { %661 = vmatmul.mubr.bf16.gmra.mrb[24].mxu0 %v4106_v29 }
  0x64   : > { %668 = vmatprep.mubr.bf16.mxu0 %v4107_v30 }
  0x6b   : > { %669 = vmatmul.mubr.bf16.gmra.mrb[28].mxu0 %v4109_v31 }
 0x106   : > { %v3550_v36 = vpop.f32.mrb[0].mxu0 }
 0x107   : > { %v3551_v38 = vpop.f32.mrb[1].mxu0 }
 0x108   : > { %v3552_v39 = vadd.f32 %v3551_v38, %v3550_v36  ;;  %v3553_v40 = vpop.f32.mrb[2].mxu0 }
 0x109   : > { %v3554_v41 = vpop.f32.mrb[3].mxu0 }
 0x10a   : > { %v4463_v42 = vadd.f32 %v3552_v39, %v4460_v37  ;;  %v3555_v43 = vadd.f32 %v3554_v41, %v3553_v40 }
 0x10c   : > { %v4466_v44 = vadd.f32 %v3555_v43, %v4460_v37  ;;  %v678_v45 = vsel %vm677_vm0, %v4463_v42, 0.0 }
 0x10d   : > { %679 = vadd.xlane.f32.xlu0 %v678_v45 }
 0x10e   : > { %v3556_v46 = vpop.f32.mrb[4].mxu0  ;;  %v681_v50 = vsel %vm677_vm0, %v4466_v44, 0.0 }
 0x10f   : > { %v3557_v47 = vpop.f32.mrb[5].mxu0 }
 0x110   : > { %v3558_v48 = vadd.f32 %v3557_v47, %v3556_v46  ;;  %v3559_v49 = vpop.f32.mrb[6].mxu0 }
 0x111   : > { %v3560_v51 = vpop.f32.mrb[7].mxu0  ;;  %682 = vadd.xlane.f32.xlu0 %v681_v50 }
 0x112   : > { %v4473_v52 = vadd.f32 %v3558_v48, %v4460_v37  ;;  %v3561_v53 = vadd.f32 %v3560_v51, %v3559_v49 }
 0x114   : > { %v4476_v54 = vadd.f32 %v3561_v53, %v4460_v37  ;;  %v684_v55 = vsel %vm677_vm0, %v4473_v52, 0.0 }
 0x115   : > { %685 = vadd.xlane.f32.xlu1 %v684_v55 }
 0x116   : > { %5719 = vst [vmem:[#allocation2_spill] sm:$0xff] %v4476_v54  ;;  %v3562_v56 = vpop.f32.mrb[8].mxu0  ;;  %v687_v60 = vsel %vm677_vm0, %v4476_v54, 0.0 }
 0x117   : > { %v3563_v57 = vpop.f32.mrb[9].mxu0 }
 0x118   : > { %v3564_v58 = vadd.f32 %v3563_v57, %v3562_v56  ;;  %v3565_v59 = vpop.f32.mrb[10].mxu0 }
 0x119   : > { %v3566_v61 = vpop.f32.mrb[11].mxu0  ;;  %688 = vadd.xlane.f32.xlu1 %v687_v60 }
 0x11a   : > { %v4483_v62 = vadd.f32 %v3564_v58, %v4460_v37  ;;  %v3567_v63 = vadd.f32 %v3566_v61, %v3565_v59 }
 0x11c   : > { %5720 = vst [vmem:[#allocation3_spill] sm:$0xff] %v4483_v62  ;;  %v4486_v0 = vadd.f32 %v3567_v63, %v4460_v37  ;;  %v690_v1 = vsel %vm677_vm0, %v4483_v62, 0.0 }
 0x11d   : > { %691 = vadd.xlane.f32.xlu0 %v690_v1 }
 0x11e   : > { %5721 = vst [vmem:[#allocation4_spill] sm:$0xff] %v4486_v0  ;;  %v3568_v2 = vpop.f32.mrb[12].mxu0  ;;  %v693_v3 = vsel %vm677_vm0, %v4486_v0, 0.0 }
 0x11f   : > { %v3569_v4 = vpop.f32.mrb[13].mxu0  ;;  %694 = vadd.xlane.f32.xlu1 %v693_v3 }
 0x120   : > { %v3570_v5 = vadd.f32 %v3569_v4, %v3568_v2  ;;  %v3571_v6 = vpop.f32.mrb[14].mxu0 }
 0x121   : > { %v3572_v7 = vpop.f32.mrb[15].mxu0 }
 0x122   : > { %v4493_v8 = vadd.f32 %v3570_v5, %v4460_v37  ;;  %v3573_v9 = vadd.f32 %v3572_v7, %v3571_v6 }
 0x124   : > { %5722 = vst [vmem:[#allocation5_spill] sm:$0xff] %v4493_v8  ;;  %v4496_v10 = vadd.f32 %v3573_v9, %v4460_v37  ;;  %v696_v11 = vsel %vm677_vm0, %v4493_v8, 0.0 }
 0x125   : > { %697 = vadd.xlane.f32.xlu0 %v696_v11 }
 0x126   : > { %5723 = vst [vmem:[#allocation6_spill] sm:$0xff] %v4496_v10  ;;  %v3574_v12 = vpop.f32.mrb[16].mxu0  ;;  %v699_v13 = vsel %vm677_vm0, %v4496_v10, 0.0 }
 0x127   : > { %v3575_v14 = vpop.f32.mrb[17].mxu0  ;;  %700 = vadd.xlane.f32.xlu1 %v699_v13 }
 0x128   : > { %v3576_v15 = vadd.f32 %v3575_v14, %v3574_v12  ;;  %v3577_v16 = vpop.f32.mrb[18].mxu0 }
 0x129   : > { %v3578_v17 = vpop.f32.mrb[19].mxu0 }
 0x12a   : > { %v4503_v18 = vadd.f32 %v3576_v15, %v4460_v37  ;;  %v3579_v19 = vadd.f32 %v3578_v17, %v3577_v16 }
 0x12c   : > { %5724 = vst [vmem:[#allocation7_spill] sm:$0xff] %v4503_v18  ;;  %v4506_v20 = vadd.f32 %v3579_v19, %v4460_v37  ;;  %v702_v21 = vsel %vm677_vm0, %v4503_v18, 0.0 }
 0x12d   : > { %703 = vadd.xlane.f32.xlu0 %v702_v21 }
 0x12e   : > { %5725 = vst [vmem:[#allocation8_spill] sm:$0xff] %v4506_v20  ;;  %v3580_v22 = vpop.f32.mrb[20].mxu0  ;;  %v705_v23 = vsel %vm677_vm0, %v4506_v20, 0.0 }
 0x12f   : > { %v3581_v24 = vpop.f32.mrb[21].mxu0  ;;  %706 = vadd.xlane.f32.xlu1 %v705_v23 }
 0x130   : > { %v3582_v25 = vadd.f32 %v3581_v24, %v3580_v22  ;;  %v3583_v26 = vpop.f32.mrb[22].mxu0 }
 0x131   : > { %v3584_v27 = vpop.f32.mrb[23].mxu0 }
 0x132   : > { %v4513_v28 = vadd.f32 %v3582_v25, %v4460_v37  ;;  %v3585_v29 = vadd.f32 %v3584_v27, %v3583_v26 }
 0x134   : > { %5726 = vst [vmem:[#allocation9_spill] sm:$0xff] %v4513_v28  ;;  %v4516_v30 = vadd.f32 %v3585_v29, %v4460_v37  ;;  %v708_v31 = vsel %vm677_vm0, %v4513_v28, 0.0 }
 0x135   : > { %709 = vadd.xlane.f32.xlu0 %v708_v31 }
 0x136   : > { %5727 = vst [vmem:[#allocation10_spill] sm:$0xff] %v4516_v30  ;;  %v3586_v32 = vpop.f32.mrb[24].mxu0  ;;  %v711_v34 = vsel %vm677_vm0, %v4516_v30, 0.0 }
 0x137   : > { %v3587_v36 = vpop.f32.mrb[25].mxu0  ;;  %712 = vadd.xlane.f32.xlu1 %v711_v34 }
 0x138   : > { %v3588_v38 = vadd.f32 %v3587_v36, %v3586_v32  ;;  %v3589_v39 = vpop.f32.mrb[26].mxu0 }
 0x139   : > { %v3590_v40 = vpop.f32.mrb[27].mxu0 }
 0x13a   : > { %v4523_v41 = vadd.f32 %v3588_v38, %v4460_v37  ;;  %v3591_v43 = vadd.f32 %v3590_v40, %v3589_v39 }
 0x13c   : > { %5728 = vst [vmem:[#allocation11_spill] sm:$0xff] %v4523_v41  ;;  %v4526_v45 = vadd.f32 %v3591_v43, %v4460_v37  ;;  %v714_v46 = vsel %vm677_vm0, %v4523_v41, 0.0 }
 0x13d   : > { %715 = vadd.xlane.f32.xlu0 %v714_v46 }
 0x13e   : > { %5729 = vst [vmem:[#allocation12_spill] sm:$0xff] %v4526_v45  ;;  %v3592_v47 = vpop.f32.mrb[28].mxu0  ;;  %v717_v48 = vsel %vm677_vm0, %v4526_v45, 0.0 }
 0x13f   : > { %v3593_v49 = vpop.f32.mrb[29].mxu0  ;;  %718 = vadd.xlane.f32.xlu1 %v717_v48 }
 0x140   : > { %v3594_v50 = vadd.f32 %v3593_v49, %v3592_v47  ;;  %v3595_v51 = vpop.f32.mrb[30].mxu0 }
 0x141   : > { %v3596_v53 = vpop.f32.mrb[31].mxu0 }
 0x142   : > { %v4533_v55 = vadd.f32 %v3594_v50, %v4460_v37  ;;  %v3597_v56 = vadd.f32 %v3596_v53, %v3595_v51 }
 0x144   : > { %5730 = vst [vmem:[#allocation13_spill] sm:$0xff] %v4533_v55  ;;  %v4536_v57 = vadd.f32 %v3597_v56, %v4460_v37  ;;  %v720_v58 = vsel %vm677_vm0, %v4533_v55, 0.0 }
 0x145   : > { %721 = vadd.xlane.f32.xlu0 %v720_v58 }
 0x146   : > { %5731 = vst [vmem:[#allocation14_spill] sm:$0xff] %v4536_v57  ;;  %v723_v59 = vsel %vm677_vm0, %v4536_v57, 0.0 }
 0x147   : > { %724 = vadd.xlane.f32.xlu1 %v723_v59 }
 0x19a   : > { %v680_v60 = vpop.xlane.xlu0 %679 }
 0x19b   : > { %v727_v61 = vmul.f32 0.03125, %v680_v60 }
 0x19d   : > { %v4543_v63 = vsub.f32 %v4463_v42, %v727_v61 }
 0x19e   : > { %v683_v1 = vpop.xlane.xlu0 %682 }
 0x19f   : > { %v728_v2 = vmul.f32 0.03125, %v683_v1  ;;  %v759_v3 = vmul.f32 %v4543_v63, %v4543_v63 }
 0x1a1   : > { %v4548_v37 = vsub.f32 %v4466_v44, %v728_v2  ;;  %v775_v4 = vsel %vm677_vm0, %v759_v3, 0.0 }
 0x1a2   : > { %v686_v5 = vpop.xlane.xlu1 %685  ;;  %776 = vadd.xlane.f32.xlu0 %v775_v4 }
 0x1a3   : > { %v729_v6 = vmul.f32 0.03125, %v686_v5  ;;  %v760_v7 = vmul.f32 %v4548_v37, %v4548_v37 }
 0x1a5   : > { %v4554_v9 = vsub.f32 %v4473_v52, %v729_v6  ;;  %v778_v11 = vsel %vm677_vm0, %v760_v7, 0.0 }
 0x1a6   : > { %v689_v12 = vpop.xlane.xlu1 %688  ;;  %779 = vadd.xlane.f32.xlu1 %v778_v11 }
 0x1a7   : > { %v730_v13 = vmul.f32 0.03125, %v689_v12  ;;  %v761_v14 = vmul.f32 %v4554_v9, %v4554_v9 }
 0x1a9   : > { %v4560_v15 = vsub.f32 %v4476_v54, %v730_v13  ;;  %v781_v16 = vsel %vm677_vm0, %v761_v14, 0.0 }
 0x1aa   : > { %782 = vadd.xlane.f32.xlu0 %v781_v16  ;;  %v692_v17 = vpop.xlane.xlu0 %691  ;;  %v4110_v16 = vld [vmem:[%s4614_s8 + $0x20] sm:$0xff]  }
 0x1ab   : > { %v731_v19 = vmul.f32 0.03125, %v692_v17  ;;  %v762_v21 = vmul.f32 %v4560_v15, %v4560_v15  ;;  %3742 = vmatprep.subr.bf16.mxu1 %v4110_v16 }
 0x1ac   : > { %v695_v22 = vpop.xlane.xlu1 %694  ;;  %3743 = vmatpush3.bf16.msra.mxu1 %v4110_v16 }
 0x1ad   : > { %v4566_v23 = vsub.f32 %v4483_v62, %v731_v19  ;;  %v732_v24 = vmul.f32 0.03125, %v695_v22  ;;  %v784_v25 = vsel %vm677_vm0, %v762_v21, 0.0 }
 0x1ae   : > { %785 = vadd.xlane.f32.xlu1 %v784_v25 }
 0x1af   : > { %v4570_v26 = vsub.f32 %v4486_v0, %v732_v24  ;;  %v763_v27 = vmul.f32 %v4566_v23, %v4566_v23 }
 0x1b1   : > { %v787_v29 = vsel %vm677_vm0, %v763_v27, 0.0  ;;  %v764_v31 = vmul.f32 %v4570_v26, %v4570_v26  ;;  %v4111_v27 = vld [vmem:[%s4614_s8 + $0x28] sm:$0xff]  }
 0x1b2   : > { %788 = vadd.xlane.f32.xlu0 %v787_v29  ;;  %v698_v32 = vpop.xlane.xlu0 %697  ;;  %3744 = vmatprep.subr.bf16.mxu1 %v4111_v27 }
 0x1b3   : > { %v733_v34 = vmul.f32 0.03125, %v698_v32  ;;  %v790_v36 = vsel %vm677_vm0, %v764_v31, 0.0  ;;  %3745 = vmatpush3.bf16.msra.mxu1 %v4111_v27 }
 0x1b4   : > { %v701_v38 = vpop.xlane.xlu1 %700  ;;  %791 = vadd.xlane.f32.xlu1 %v790_v36 }
 0x1b5   : > { %v4579_v39 = vsub.f32 %v4493_v8, %v733_v34  ;;  %v734_v40 = vmul.f32 0.03125, %v701_v38  ;;  %v366_v8 = vld [vmem:[%s4906_s11 + $0x70] sm:$0xff] }
 0x1b7   : > { %v4582_v43 = vsub.f32 %v4496_v10, %v734_v40  ;;  %v765_v46 = vmul.f32 %v4579_v39, %v4579_v39  ;;  %v365_v10 = vld [vmem:[%s4906_s11 + $0x68] sm:$0xff] }
 0x1b9   : > { %v793_v47 = vsel %vm677_vm0, %v765_v46, 0.0  ;;  %v766_v48 = vmul.f32 %v4582_v43, %v4582_v43 }
 0x1ba   : > { %794 = vadd.xlane.f32.xlu0 %v793_v47  ;;  %v704_v49 = vpop.xlane.xlu0 %703 }
 0x1bb   : > { %v735_v50 = vmul.f32 0.03125, %v704_v49  ;;  %v796_v51 = vsel %vm677_vm0, %v766_v48, 0.0 }
 0x1bc   : > { %v707_v53 = vpop.xlane.xlu1 %706  ;;  %797 = vadd.xlane.f32.xlu1 %v796_v51 }
 0x1bd   : > { %v4591_v56 = vsub.f32 %v4503_v18, %v735_v50  ;;  %v736_v58 = vmul.f32 0.03125, %v707_v53 }
 0x1bf   : > { %v4594_v59 = vsub.f32 %v4506_v20, %v736_v58  ;;  %v767_v60 = vmul.f32 %v4591_v56, %v4591_v56  ;;  %v364_v20 = vld [vmem:[%s4906_s11 + $0x60] sm:$0xff] }
 0x1c1   : > { %v799_v61 = vsel %vm677_vm0, %v767_v60, 0.0  ;;  %v768_v1 = vmul.f32 %v4594_v59, %v4594_v59  ;;  %v4647_v60 = vld [vmem:[%s4614_s8] sm:$0xff]  }
 0x1c2   : > { %800 = vadd.xlane.f32.xlu0 %v799_v61  ;;  %v710_v2 = vpop.xlane.xlu0 %709  ;;  %3762 = vmatprep.subr.bf16.mxu1 %v4647_v60 }
 0x1c3   : > { %v737_v3 = vmul.f32 0.03125, %v710_v2  ;;  %v802_v4 = vsel %vm677_vm0, %v768_v1, 0.0 }
 0x1c4   : > { %v713_v5 = vpop.xlane.xlu1 %712  ;;  %803 = vadd.xlane.f32.xlu1 %v802_v4 }
 0x1c5   : > { %v4603_v6 = vsub.f32 %v4513_v28, %v737_v3  ;;  %v738_v7 = vmul.f32 0.03125, %v713_v5 }
 0x1c7   : > { %v4606_v11 = vsub.f32 %v4516_v30, %v738_v7  ;;  %v769_v12 = vmul.f32 %v4603_v6, %v4603_v6 }
 0x1c9   : > { %v805_v13 = vsel %vm677_vm0, %v769_v12, 0.0  ;;  %v770_v14 = vmul.f32 %v4606_v11, %v4606_v11 }
 0x1ca   : > { %806 = vadd.xlane.f32.xlu0 %v805_v13  ;;  %v716_v17 = vpop.xlane.xlu0 %715 }
 0x1cb   : > { %v739_v19 = vmul.f32 0.03125, %v716_v17  ;;  %v808_v21 = vsel %vm677_vm0, %v770_v14, 0.0  ;;  %v889_v14 = vsub.s32 1, %v4448_v33 }
 0x1cc   : > { %v719_v22 = vpop.xlane.xlu1 %718  ;;  %809 = vadd.xlane.f32.xlu1 %v808_v21 }
 0x1cd   : > { %v4622_v24 = vsub.f32 %v4523_v41, %v739_v19  ;;  %v740_v25 = vmul.f32 0.03125, %v719_v22  ;;  %v4652_v22 = vrot.slane %v4457_v35, %v889_v14  ;;  %v363_v41 = vld [vmem:[%s4906_s11 + $0x58] sm:$0xff] }
 0x1cf   : > { %v4626_v29 = vsub.f32 %v4526_v45, %v740_v25  ;;  %v771_v31 = vmul.f32 %v4622_v24, %v4622_v24 }
 0x1d1   : > { %v811_v32 = vsel %vm677_vm0, %v771_v31, 0.0  ;;  %v772_v34 = vmul.f32 %v4626_v29, %v4626_v29  ;;  %v909_v31 = vsub.s32 2, %v4448_v33 }
 0x1d2   : > { %812 = vadd.xlane.f32.xlu0 %v811_v32  ;;  %v722_v36 = vpop.xlane.xlu0 %721 }
 0x1d3   : > { %v741_v38 = vmul.f32 0.03125, %v722_v36  ;;  %v814_v40 = vsel %vm677_vm0, %v772_v34, 0.0 }
 0x1d4   : > { %v725_v46 = vpop.xlane.xlu1 %724  ;;  %815 = vadd.xlane.f32.xlu1 %v814_v40 }
 0x1d5   : > { %v4635_v47 = vsub.f32 %v4533_v55, %v741_v38  ;;  %v742_v48 = vmul.f32 0.03125, %v725_v46 }
 0x1d7   : > { %v4638_v49 = vsub.f32 %v4536_v57, %v742_v48  ;;  %v773_v50 = vmul.f32 %v4635_v47, %v4635_v47  ;;  %v361_v57 = vld [vmem:[%s4906_s11 + $0x48] sm:$0xff] }
 0x1d9   : > { %v817_v51 = vsel %vm677_vm0, %v773_v50, 0.0  ;;  %v774_v53 = vmul.f32 %v4638_v49, %v4638_v49  ;;  %v4659_v50 = vrot.slane %v4457_v35, %v909_v31 }
 0x1da   : > { %818 = vadd.xlane.f32.xlu0 %v817_v51 }
 0x1db   : > { %v820_v58 = vsel %vm677_vm0, %v774_v53, 0.0 }
 0x1dc   : > { %821 = vadd.xlane.f32.xlu1 %v820_v58 }
 0x22f   : > { %v777_v61 = vpop.xlane.xlu0 %776 }
 0x230   : > { %v823_v1 = vmul.f32 0.03125, %v777_v61 }
 0x232   : > { %v839_v2 = vadd.f32 1e-05, %v823_v1 }
 0x233   : > { %v780_v3 = vpop.xlane.xlu1 %779 }
 0x234   : > { %4126 = vrsqrt.f32 %v839_v2  ;;  %v824_v4 = vmul.f32 0.03125, %v780_v3 }
 0x236   : > { %v840_v5 = vadd.f32 1e-05, %v824_v4 }
 0x237   : > { %v783_v7 = vpop.xlane.xlu0 %782 }
 0x238   : > { %4128 = vrsqrt.f32 %v840_v5  ;;  %v825_v12 = vmul.f32 0.03125, %v783_v7 }
 0x23a   : > { %v841_v13 = vadd.f32 1e-05, %v825_v12 }
 0x23b   : > { %v786_v16 = vpop.xlane.xlu1 %785 }
 0x23c   : > { %4130 = vrsqrt.f32 %v841_v13  ;;  %v826_v17 = vmul.f32 0.03125, %v786_v16 }
 0x23e   : > { %v4127_v19 = vpop.eup %4126  ;;  %v842_v21 = vadd.f32 1e-05, %v826_v17 }
 0x23f   : > { %v871_v25 = vmul.f32 %v4127_v19, %v4543_v63  ;;  %v789_v27 = vpop.xlane.xlu0 %788 }
 0x240   : > { %4132 = vrsqrt.f32 %v842_v21  ;;  %v827_v32 = vmul.f32 0.03125, %v789_v27 }
 0x241   : > { %v792_v34 = vpop.xlane.xlu1 %791  ;;  %v891_v46 = vmul.f32 %v4652_v22, %v871_v25 }
 0x242   : > { %v4129_v36 = vpop.eup %4128  ;;  %v843_v38 = vadd.f32 1e-05, %v827_v32  ;;  %v828_v40 = vmul.f32 0.03125, %v792_v34 }
 0x243   : > { %v872_v48 = vmul.f32 %v4129_v36, %v4548_v37  ;;  %v911_v1 = vadd.f32 %v4659_v50, %v891_v46 }
 0x244   : > { %4134 = vrsqrt.f32 %v843_v38  ;;  %v844_v51 = vadd.f32 1e-05, %v828_v40  ;;  %v4113_v38 = vld [vmem:[%s4614_s8 + $0x8] sm:$0xff]  }
 0x245   : > { %v892_v63 = vmul.f32 %v4652_v22, %v872_v48 }
 0x246   : > { %v4131_v53 = vpop.eup %4130  ;;  %4136 = vrsqrt.f32 %v844_v51 }
 0x247   : > { %v873_v58 = vmul.f32 %v4131_v53, %v4554_v9  ;;  %v795_v61 = vpop.xlane.xlu0 %794  ;;  %v912_v2 = vadd.f32 %v4659_v50, %v892_v63 }
 0x248   : > { %v829_v3 = vmul.f32 0.03125, %v795_v61 }
 0x249   : > { %v798_v4 = vpop.xlane.xlu1 %797  ;;  %v4665_v5 = vpack.c.bf16 %v912_v2, %v911_v1  ;;  %v893_v12 = vmul.f32 %v4652_v22, %v873_v58 }
 0x24a   : > { %v4133_v37 = vpop.eup %4132  ;;  %v845_v35 = vadd.f32 1e-05, %v829_v3  ;;  %v830_v7 = vmul.f32 0.03125, %v798_v4 }
 0x24b   : > { %v874_v13 = vmul.f32 %v4133_v37, %v4560_v15  ;;  %3746 = vmatprep.mubr.msk.bf16.mxu1 %vm677_vm0, %v4665_v5  ;;  %v913_v21 = vadd.f32 %v4659_v50, %v893_v12 }
 0x24c   : > { %4138 = vrsqrt.f32 %v845_v35  ;;  %v846_v9 = vadd.f32 1e-05, %v830_v7 }
 0x24d   : > { %v894_v14 = vmul.f32 %v4652_v22, %v874_v13 }
 0x24e   : > { %v4135_v16 = vpop.eup %4134  ;;  %4140 = vrsqrt.f32 %v846_v9 }
 0x24f   : > { %v875_v17 = vmul.f32 %v4135_v16, %v4566_v23  ;;  %v801_v19 = vpop.xlane.xlu0 %800  ;;  %v914_v25 = vadd.f32 %v4659_v50, %v894_v14 }
 0x250   : > { %v4137_v27 = vpop.eup %4136  ;;  %v831_v31 = vmul.f32 0.03125, %v801_v19 }
 0x251   : > { %v895_v15 = vmul.f32 %v4652_v22, %v875_v17  ;;  %v876_v32 = vmul.f32 %v4137_v27, %v4570_v26  ;;  %v804_v34 = vpop.xlane.xlu1 %803  ;;  %v4677_v36 = vpack.c.bf16 %v914_v25, %v913_v21  ;;  %v4687_v26 = vld [vmem:[%s4614_s8 + $0x30] sm:$0xff]  }
 0x252   : > { %v847_v40 = vadd.f32 1e-05, %v831_v31  ;;  %v832_v46 = vmul.f32 0.03125, %v804_v34 }
 0x253   : > { %v896_v23 = vmul.f32 %v4652_v22, %v876_v32  ;;  %3747 = vmatmul.mubr.msk.bf16.vlgmr.msra.gmra.mrb[0].mxu1 %vm677_vm0, %v4677_v36  ;;  %v915_v51 = vadd.f32 %v4659_v50, %v895_v15 }
 0x254   : > { %4142 = vrsqrt.f32 %v847_v40  ;;  %v848_v48 = vadd.f32 1e-05, %v832_v46  ;;  %3763 = vmatpush3.bf16.msra.mxu1 %v4647_v60 }
 0x255   : > { %v916_v63 = vadd.f32 %v4659_v50, %v896_v23  ;;  %3764 = vmatprep.subr.bf16.mxu1 %v4113_v38 }
 0x256   : > { %v4139_v53 = vpop.eup %4138  ;;  %4144 = vrsqrt.f32 %v848_v48 }
 0x257   : > { %v877_v58 = vmul.f32 %v4139_v53, %v4579_v39  ;;  %v807_v61 = vpop.xlane.xlu0 %806  ;;  %v4690_v1 = vpack.c.bf16 %v916_v63, %v915_v51 }
 0x258   : > { %v4141_v2 = vpop.eup %4140  ;;  %v833_v3 = vmul.f32 0.03125, %v807_v61  ;;  %3765 = vmatpush3.bf16.msra.mxu1 %v4113_v38 }
 0x259   : > { %v897_v4 = vmul.f32 %v4652_v22, %v877_v58  ;;  %v878_v60 = vmul.f32 %v4141_v2, %v4582_v43  ;;  %v810_v37 = vpop.xlane.xlu1 %809  ;;  %3750 = vmatprep.mubr.msk.bf16.mxu1 %vm677_vm0, %v4690_v1  ;;  %3782 = vmatprep.subr.bf16.mxu1 %v4687_v26 }
 0x25a   : > { %v849_v35 = vadd.f32 1e-05, %v833_v3  ;;  %v834_v7 = vmul.f32 0.03125, %v810_v37 }
 0x25b   : > { %v898_v39 = vmul.f32 %v4652_v22, %v878_v60  ;;  %v917_v13 = vadd.f32 %v4659_v50, %v897_v4 }
 0x25c   : > { %4146 = vrsqrt.f32 %v849_v35  ;;  %v850_v12 = vadd.f32 1e-05, %v834_v7 }
 0x25d   : > { %v918_v9 = vadd.f32 %v4659_v50, %v898_v39 }
 0x25e   : > { %v4143_v14 = vpop.eup %4142  ;;  %4148 = vrsqrt.f32 %v850_v12 }
 0x25f   : > { %v879_v43 = vmul.f32 %v4143_v14, %v4591_v56  ;;  %v813_v16 = vpop.xlane.xlu0 %812  ;;  %v4701_v17 = vpack.c.bf16 %v918_v9, %v917_v13 }
 0x260   : > { %v4145_v19 = vpop.eup %4144  ;;  %v835_v21 = vmul.f32 0.03125, %v813_v16 }
 0x261   : > { %v899_v25 = vmul.f32 %v4652_v22, %v879_v43  ;;  %v880_v27 = vmul.f32 %v4145_v19, %v4594_v59  ;;  %v816_v31 = vpop.xlane.xlu1 %815  ;;  %3751 = vmatmul.mubr.msk.bf16.gmra.mrb[4].mxu1 %vm677_vm0, %v4701_v17 }
 0x262   : > { %v851_v15 = vadd.f32 1e-05, %v835_v21  ;;  %v836_v32 = vmul.f32 0.03125, %v816_v31 }
 0x263   : > { %v900_v34 = vmul.f32 %v4652_v22, %v880_v27  ;;  %v919_v56 = vadd.f32 %v4659_v50, %v899_v25 }
 0x264   : > { %4150 = vrsqrt.f32 %v851_v15  ;;  %v852_v38 = vadd.f32 1e-05, %v836_v32 }
 0x265   : > { %v920_v40 = vadd.f32 %v4659_v50, %v900_v34 }
 0x266   : > { %v4147_v46 = vpop.eup %4146  ;;  %4152 = vrsqrt.f32 %v852_v38 }
 0x267   : > { %v881_v23 = vmul.f32 %v4147_v46, %v4603_v6  ;;  %v819_v48 = vpop.xlane.xlu0 %818  ;;  %v4711_v59 = vpack.c.bf16 %v920_v40, %v919_v56 }
 0x268   : > { %v4149_v51 = vpop.eup %4148  ;;  %v837_v63 = vmul.f32 0.03125, %v819_v48 }
 0x269   : > { %v901_v53 = vmul.f32 %v4652_v22, %v881_v23  ;;  %v882_v58 = vmul.f32 %v4149_v51, %v4606_v11  ;;  %v822_v61 = vpop.xlane.xlu1 %821  ;;  %3754 = vmatprep.mubr.msk.bf16.mxu1 %vm677_vm0, %v4711_v59 }
 0x26a   : > { %v853_v2 = vadd.f32 1e-05, %v837_v63  ;;  %v838_v3 = vmul.f32 0.03125, %v822_v61 }
 0x26b   : > { %v902_v4 = vmul.f32 %v4652_v22, %v882_v58  ;;  %v921_v6 = vadd.f32 %v4659_v50, %v901_v53 }
 0x26c   : > { %4154 = vrsqrt.f32 %v853_v2  ;;  %v854_v60 = vadd.f32 1e-05, %v838_v3 }
 0x26d   : > { %v922_v37 = vadd.f32 %v4659_v50, %v902_v4 }
 0x26e   : > { %v4151_v35 = vpop.eup %4150  ;;  %4156 = vrsqrt.f32 %v854_v60 }
 0x26f   : > { %v883_v7 = vmul.f32 %v4151_v35, %v4622_v24  ;;  %v4721_v39 = vpack.c.bf16 %v922_v37, %v921_v6 }
 0x270   : > { %v4153_v11 = vpop.eup %4152 }
 0x271   : > { %v903_v12 = vmul.f32 %v4652_v22, %v883_v7  ;;  %v884_v13 = vmul.f32 %v4153_v11, %v4626_v29  ;;  %3755 = vmatmul.mubr.msk.bf16.gmra.mrb[8].mxu1 %vm677_vm0, %v4721_v39 }
 0x273   : > { %v904_v9 = vmul.f32 %v4652_v22, %v884_v13  ;;  %v923_v14 = vadd.f32 %v4659_v50, %v903_v12 }
 0x275   : > { %v924_v43 = vadd.f32 %v4659_v50, %v904_v9 }
 0x276   : > { %v4155_v16 = vpop.eup %4154 }
 0x277   : > { %v885_v24 = vmul.f32 %v4155_v16, %v4635_v47  ;;  %v4731_v19 = vpack.c.bf16 %v924_v43, %v923_v14  ;;  %v4115_v47 = vld [vmem:[%s4614_s8 + $0x38] sm:$0xff]  }
 0x278   : > { %v4157_v21 = vpop.eup %4156 }
 0x279   : > { %v905_v25 = vmul.f32 %v4652_v22, %v885_v24  ;;  %v886_v29 = vmul.f32 %v4157_v21, %v4638_v49  ;;  %3758 = vmatprep.mubr.msk.bf16.mxu1 %vm677_vm0, %v4731_v19  ;;  %v4116_v49 = vld [vmem:[%s4614_s8 + $0x10] sm:$0xff]  }
 0x27b   : > { %v906_v27 = vmul.f32 %v4652_v22, %v886_v29  ;;  %v925_v31 = vadd.f32 %v4659_v50, %v905_v25  ;;  %v4117_v22 = vld [vmem:[%s4614_s8 + $0x18] sm:$0xff]  }
 0x27d   : > { %v926_v15 = vadd.f32 %v4659_v50, %v906_v27 }
 0x27f   : > { %v4740_v32 = vpack.c.bf16 %v926_v15, %v925_v31 }
 0x281   : > { %3759 = vmatmul.mubr.msk.bf16.gmra.mrb[12].mxu1 %vm677_vm0, %v4740_v32 }
 0x282   : > { %3766 = vmatprep.mubr.msk.bf16.mxu1 %vm677_vm0, %v4665_v5 }
 0x289   : > { %3767 = vmatmul.mubr.msk.bf16.vlgmr.msra.gmra.mrb[16].mxu1 %vm677_vm0, %v4677_v36 }
 0x28a   : > { %3783 = vmatpush3.bf16.msra.mxu1 %v4687_v26  ;;  %3770 = vmatprep.mubr.msk.bf16.mxu1 %vm677_vm0, %v4690_v1 }
 0x28b   : > { %3784 = vmatprep.subr.bf16.mxu1 %v4115_v47 }
 0x28e   : > { %3785 = vmatpush3.bf16.msra.mxu1 %v4115_v47 }
 0x28f   : > { %3834 = vmatprep.subr.bf16.mxu1 %v4116_v49 }
 0x291   : > { %3771 = vmatmul.mubr.msk.bf16.gmra.mrb[20].mxu1 %vm677_vm0, %v4701_v17 }
 0x292   : > { %3774 = vmatprep.mubr.msk.bf16.mxu1 %vm677_vm0, %v4711_v59 }
 0x299   : > { %3775 = vmatmul.mubr.msk.bf16.gmra.mrb[24].mxu1 %vm677_vm0, %v4721_v39 }
 0x29a   : > { %3778 = vmatprep.mubr.msk.bf16.mxu1 %vm677_vm0, %v4731_v19 }
 0x2a1   : > { %3779 = vmatmul.mubr.msk.bf16.gmra.mrb[28].mxu1 %vm677_vm0, %v4740_v32 }
 0x2a2   : > { %3786 = vmatprep.mubr.msk.bf16.mxu1 %vm677_vm0, %v4665_v5 }
 0x2a9   : > { %3787 = vmatmul.mubr.msk.bf16.vlgmr.msra.gmra.mrb[32].mxu1 %vm677_vm0, %v4677_v36 }
 0x2aa   : > { %3835 = vmatpush3.bf16.msra.mxu1 %v4116_v49  ;;  %3790 = vmatprep.mubr.msk.bf16.mxu1 %vm677_vm0, %v4690_v1  ;;  %v4118_v49 = vld [vmem:[%s4614_s8 + $0x40] sm:$0xff]  }
 0x2ab   : > { %3836 = vmatprep.subr.bf16.mxu1 %v4117_v22 }
 0x2ae   : > { %3837 = vmatpush3.bf16.msra.mxu1 %v4117_v22 }
 0x2b1   : > { %3791 = vmatmul.mubr.msk.bf16.gmra.mrb[36].mxu1 %vm677_vm0, %v4701_v17 }
 0x2b2   : > { %3794 = vmatprep.mubr.msk.bf16.mxu1 %vm677_vm0, %v4711_v59 }
 0x2b9   : > { %3795 = vmatmul.mubr.msk.bf16.gmra.mrb[40].mxu1 %vm677_vm0, %v4721_v39 }
 0x2ba   : > { %3798 = vmatprep.mubr.msk.bf16.mxu1 %vm677_vm0, %v4731_v19 }
 0x2c1   : > { %3799 = vmatmul.mubr.msk.bf16.gmra.mrb[44].mxu1 %vm677_vm0, %v4740_v32 }
 0x2c2   : > { %3838 = vmatprep.mubr.msk.bf16.mxu1 %vm677_vm0, %v4665_v5 }
 0x2c9   : > { %3839 = vmatmul.mubr.msk.bf16.vlgmr.msra.gmra.mrb[48].mxu1 %vm677_vm0, %v4677_v36 }
 0x2ca   : > { %3842 = vmatprep.mubr.msk.bf16.mxu1 %vm677_vm0, %v4690_v1 }
 0x2d1   : > { %3843 = vmatmul.mubr.msk.bf16.gmra.mrb[52].mxu1 %vm677_vm0, %v4701_v17 }
 0x2d2   : > { %3846 = vmatprep.mubr.msk.bf16.mxu1 %vm677_vm0, %v4711_v59 }
 0x2d9   : > { %3847 = vmatmul.mubr.msk.bf16.gmra.mrb[56].mxu1 %vm677_vm0, %v4721_v39 }
 0x2da   : > { %3850 = vmatprep.mubr.msk.bf16.mxu1 %vm677_vm0, %v4731_v19 }
 0x2e1   : > { %3851 = vmatmul.mubr.msk.bf16.gmra.mrb[60].mxu1 %vm677_vm0, %v4740_v32 }
 0x326   : > { %v3748_v50 = vpop.f32.mrb[0].mxu1 }
 0x327   : > { %v1005_v26 = vpop.f32.mrb[1].mxu1 }
 0x328   : > { %v3749_v34 = vpop.f32.mrb[2].mxu1 }
 0x329   : > { %v1069_v38 = vpack.c.bf16 %v3749_v34, %v3748_v50  ;;  %v1008_v56 = vpop.f32.mrb[3].mxu1 }
 0x32a   : > { %v1068_v40 = vpack.c.bf16 %v1008_v56, %v1005_v26 }
 0x32b   : > { %v1338_v48 = vsel %vm677_vm0, %v1069_v38, 0 }
 0x32c   : > { %4046 = vmatprep.subr.msk.bf16.mxu0 %vm677_vm0, %v1068_v40  ;;  %4054 = vmatprep.subr.msk.bf16.mxu1 %vm677_vm0, %v1068_v40  ;;  %v1335_v46 = vsel %vm677_vm0, %v1068_v40, 0 }
 0x32d   : > { %3803 = vmatpush3.bf16.xpose.msra.mxu0 %v1335_v46  ;;  %3875 = vmatpush3.bf16.xpose.msra.mxu1 %v1335_v46  ;;  %v4119_v46 = vld [vmem:[%s4614_s8 + $0x48] sm:$0xff]  }
 0x32e   : > { %4047 = vmatprep.subr.msk.bf16.mxu0 %vm677_vm0, %v1069_v38  ;;  %4055 = vmatprep.subr.msk.bf16.mxu1 %vm677_vm0, %v1069_v38 }
 0x334   : > { %v3752_v23 = vpop.f32.mrb[4].mxu1 }
 0x335   : > { %v1021_v51 = vpop.f32.mrb[5].mxu1  ;;  %3805 = vmatpush3.bf16.xpose.msra.mxu0 %v1338_v48  ;;  %3877 = vmatpush3.bf16.xpose.msra.mxu1 %v1338_v48 }
 0x336   : > { %v3753_v63 = vpop.f32.mrb[6].mxu1 }
 0x337   : > { %v1071_v53 = vpack.c.bf16 %v3753_v63, %v3752_v23  ;;  %v1024_v58 = vpop.f32.mrb[7].mxu1 }
 0x338   : > { %v1070_v61 = vpack.c.bf16 %v1024_v58, %v1021_v51 }
 0x339   : > { %v1344_v4 = vsel %vm677_vm0, %v1071_v53, 0 }
 0x33a   : > { %4048 = vmatprep.subr.msk.bf16.mxu0 %vm677_vm0, %v1070_v61  ;;  %4056 = vmatprep.subr.msk.bf16.mxu1 %vm677_vm0, %v1070_v61  ;;  %v1341_v2 = vsel %vm677_vm0, %v1070_v61, 0 }
 0x33d   : > { %3807 = vmatpush3.bf16.xpose.msra.mxu0 %v1341_v2  ;;  %3879 = vmatpush3.bf16.xpose.msra.mxu1 %v1341_v2 }
 0x33e   : > { %4049 = vmatprep.subr.msk.bf16.mxu0 %vm677_vm0, %v1071_v53  ;;  %4057 = vmatprep.subr.msk.bf16.mxu1 %vm677_vm0, %v1071_v53 }
 0x344   : > { %v3756_v3 = vpop.f32.mrb[8].mxu1 }
 0x345   : > { %v1037_v60 = vpop.f32.mrb[9].mxu1  ;;  %3809 = vmatpush3.bf16.xpose.msra.mxu0 %v1344_v4  ;;  %3881 = vmatpush3.bf16.xpose.msra.mxu1 %v1344_v4 }
 0x346   : > { %v3757_v6 = vpop.f32.mrb[10].mxu1 }
 0x347   : > { %v1073_v37 = vpack.c.bf16 %v3757_v6, %v3756_v3  ;;  %v1040_v35 = vpop.f32.mrb[11].mxu1 }
 0x348   : > { %v1072_v7 = vpack.c.bf16 %v1040_v35, %v1037_v60 }
 0x349   : > { %v1350_v13 = vsel %vm677_vm0, %v1073_v37, 0 }
 0x34a   : > { %4050 = vmatprep.subr.msk.bf16.mxu0 %vm677_vm0, %v1072_v7  ;;  %4058 = vmatprep.subr.msk.bf16.mxu1 %vm677_vm0, %v1072_v7  ;;  %v1347_v11 = vsel %vm677_vm0, %v1072_v7, 0 }
 0x34d   : > { %3811 = vmatpush3.bf16.xpose.msra.mxu0 %v1347_v11  ;;  %3883 = vmatpush3.bf16.xpose.msra.mxu1 %v1347_v11 }
 0x34e   : > { %4051 = vmatprep.subr.msk.bf16.mxu0 %vm677_vm0, %v1073_v37  ;;  %4059 = vmatprep.subr.msk.bf16.mxu1 %vm677_vm0, %v1073_v37 }
 0x354   : > { %v3760_v12 = vpop.f32.mrb[12].mxu1 }
 0x355   : > { %v1053_v9 = vpop.f32.mrb[13].mxu1  ;;  %3813 = vmatpush3.bf16.xpose.msra.mxu0 %v1350_v13  ;;  %3885 = vmatpush3.bf16.xpose.msra.mxu1 %v1350_v13 }
 0x356   : > { %v3761_v14 = vpop.f32.mrb[14].mxu1 }
 0x357   : > { %v1075_v43 = vpack.c.bf16 %v3761_v14, %v3760_v12  ;;  %v1056_v16 = vpop.f32.mrb[15].mxu1 }
 0x358   : > { %v1074_v24 = vpack.c.bf16 %v1056_v16, %v1053_v9 }
 0x359   : > { %v1356_v50 = vsel %vm677_vm0, %v1075_v43, 0 }
 0x35a   : > { %4052 = vmatprep.subr.msk.bf16.mxu0 %vm677_vm0, %v1074_v24  ;;  %4060 = vmatprep.subr.msk.bf16.mxu1 %vm677_vm0, %v1074_v24  ;;  %v1353_v25 = vsel %vm677_vm0, %v1074_v24, 0 }
 0x35c   : > { %v3768_v21 = vpop.f32.mrb[16].mxu1 }
 0x35d   : > { %v1122_v29 = vpop.f32.mrb[17].mxu1  ;;  %3815 = vmatpush3.bf16.xpose.msra.mxu0 %v1353_v25  ;;  %3887 = vmatpush3.bf16.xpose.msra.mxu1 %v1353_v25 }
 0x35e   : > { %v3769_v27 = vpop.f32.mrb[18].mxu1  ;;  %4053 = vmatprep.subr.msk.bf16.mxu0 %vm677_vm0, %v1075_v43  ;;  %4061 = vmatprep.subr.msk.bf16.mxu1 %vm677_vm0, %v1075_v43 }
 0x35f   : > { %v1186_v31 = vpack.c.bf16 %v3769_v27, %v3768_v21  ;;  %v1125_v15 = vpop.f32.mrb[19].mxu1 }
 0x360   : > { %v1185_v47 = vpack.c.bf16 %v1125_v15, %v1122_v29 }
 0x362   : > { %3818 = vmatprep.mubr.msk.bf16.mxu0 %vm677_vm0, %v1185_v47 }
 0x364   : > { %v3772_v22 = vpop.f32.mrb[20].mxu1 }
 0x365   : > { %v1138_v26 = vpop.f32.mrb[21].mxu1  ;;  %3817 = vmatpush3.bf16.xpose.msra.mxu0 %v1356_v50  ;;  %3889 = vmatpush3.bf16.xpose.msra.mxu1 %v1356_v50 }
 0x366   : > { %v3773_v34 = vpop.f32.mrb[22].mxu1  ;;  %3854 = vmatprep.subr.bf16.mxu0 %v4118_v49 }
 0x367   : > { %v1188_v38 = vpack.c.bf16 %v3773_v34, %v3772_v22  ;;  %v1141_v56 = vpop.f32.mrb[23].mxu1 }
 0x368   : > { %v1187_v40 = vpack.c.bf16 %v1141_v56, %v1138_v26 }
 0x36c   : > { %v3776_v23 = vpop.f32.mrb[24].mxu1  ;;  %3819 = vmatmul.mubr.msk.bf16.vlgmr.msra.gmra.mrb[32].mxu0 %vm677_vm0, %v1186_v31 }
 0x36d   : > { %v1154_v48 = vpop.f32.mrb[25].mxu1  ;;  %3822 = vmatprep.mubr.msk.bf16.mxu0 %vm677_vm0, %v1187_v40  ;;  %3855 = vmatpush3.bf16.msra.mxu0 %v4118_v49 }
 0x36e   : > { %v3777_v51 = vpop.f32.mrb[26].mxu1  ;;  %3856 = vmatprep.subr.bf16.mxu0 %v4119_v46 }
 0x36f   : > { %v1190_v63 = vpack.c.bf16 %v3777_v51, %v3776_v23  ;;  %v1157_v53 = vpop.f32.mrb[27].mxu1 }
 0x370   : > { %v1189_v58 = vpack.c.bf16 %v1157_v53, %v1154_v48 }
 0x371   : > { %3857 = vmatpush3.bf16.msra.mxu0 %v4119_v46 }
 0x374   : > { %v3780_v61 = vpop.f32.mrb[28].mxu1  ;;  %3823 = vmatmul.mubr.msk.bf16.gmra.mrb[36].mxu0 %vm677_vm0, %v1188_v38 }
 0x375   : > { %v1170_v2 = vpop.f32.mrb[29].mxu1  ;;  %3826 = vmatprep.mubr.msk.bf16.mxu0 %vm677_vm0, %v1189_v58 }
 0x376   : > { %v3781_v3 = vpop.f32.mrb[30].mxu1 }
 0x377   : > { %v1192_v4 = vpack.c.bf16 %v3781_v3, %v3780_v61  ;;  %v1173_v60 = vpop.f32.mrb[31].mxu1 }
 0x378   : > { %v1191_v6 = vpack.c.bf16 %v1173_v60, %v1170_v2 }
 0x37c   : > { %v3788_v37 = vpop.f32.mrb[32].mxu1  ;;  %3827 = vmatmul.mubr.msk.bf16.gmra.mrb[40].mxu0 %vm677_vm0, %v1190_v63 }
 0x37d   : > { %v1239_v35 = vpop.f32.mrb[33].mxu1  ;;  %3830 = vmatprep.mubr.msk.bf16.mxu0 %vm677_vm0, %v1191_v6 }
 0x37e   : > { %v3789_v7 = vpop.f32.mrb[34].mxu1 }
 0x37f   : > { %v4829_v11 = vpack.c.bf16 %v3789_v7, %v3788_v37  ;;  %v1242_v12 = vpop.f32.mrb[35].mxu1 }
 0x380   : > { %v4831_v13 = vpack.c.bf16 %v1242_v12, %v1239_v35 }
 0x384   : > { %v3792_v9 = vpop.f32.mrb[36].mxu1  ;;  %3831 = vmatmul.mubr.msk.bf16.gmra.mrb[44].mxu0 %vm677_vm0, %v1192_v4 }
 0x385   : > { %v1255_v14 = vpop.f32.mrb[37].mxu1  ;;  %3858 = vmatprep.mubr.msk.bf16.mxu0 %vm677_vm0, %v4665_v5 }
 0x386   : > { %v3793_v43 = vpop.f32.mrb[38].mxu1 }
 0x387   : > { %v4836_v16 = vpack.c.bf16 %v3793_v43, %v3792_v9  ;;  %v1258_v24 = vpop.f32.mrb[39].mxu1 }
 0x388   : > { %v4838_v21 = vpack.c.bf16 %v1258_v24, %v1255_v14 }
 0x38c   : > { %v3796_v25 = vpop.f32.mrb[40].mxu1  ;;  %3859 = vmatmul.mubr.msk.bf16.vlgmr.msra.gmra.mrb[48].mxu0 %vm677_vm0, %v4677_v36 }
 0x38d   : > { %v1271_v29 = vpop.f32.mrb[41].mxu1  ;;  %3862 = vmatprep.mubr.msk.bf16.mxu0 %vm677_vm0, %v4690_v1 }
 0x38e   : > { %v3797_v27 = vpop.f32.mrb[42].mxu1 }
 0x38f   : > { %v4844_v31 = vpack.c.bf16 %v3797_v27, %v3796_v25  ;;  %v1274_v15 = vpop.f32.mrb[43].mxu1 }
 0x390   : > { %v4846_v47 = vpack.c.bf16 %v1274_v15, %v1271_v29 }
 0x394   : > { %v3800_v5 = vpop.f32.mrb[44].mxu1  ;;  %3863 = vmatmul.mubr.msk.bf16.gmra.mrb[52].mxu0 %vm677_vm0, %v4701_v17 }
 0x395   : > { %v1287_v49 = vpop.f32.mrb[45].mxu1  ;;  %3866 = vmatprep.mubr.msk.bf16.mxu0 %vm677_vm0, %v4711_v59 }
 0x396   : > { %v3801_v22 = vpop.f32.mrb[46].mxu1 }
 0x397   : > { %v4852_v36 = vpack.c.bf16 %v3801_v22, %v3800_v5  ;;  %v1290_v50 = vpop.f32.mrb[47].mxu1 }
 0x398   : > { %v4854_v26 = vpack.c.bf16 %v1290_v50, %v1287_v49 }
 0x39c   : > { %v3840_v1 = vpop.f32.mrb[48].mxu1  ;;  %3867 = vmatmul.mubr.msk.bf16.gmra.mrb[56].mxu0 %vm677_vm0, %v4721_v39 }
 0x39d   : > { %v1653_v34 = vpop.f32.mrb[49].mxu1  ;;  %3870 = vmatprep.mubr.msk.bf16.mxu0 %vm677_vm0, %v4731_v19 }
 0x39e   : > { %v3841_v38 = vpop.f32.mrb[50].mxu1 }
 0x39f   : > { %v1717_v17 = vpack.c.bf16 %v3841_v38, %v3840_v1  ;;  %v1656_v56 = vpop.f32.mrb[51].mxu1 }
 0x3a0   : > { %v1716_v40 = vpack.c.bf16 %v1656_v56, %v1653_v34 }
 0x3a2   : > { %3890 = vmatprep.mubr.msk.bf16.mxu1 %vm677_vm0, %v1716_v40 }
 0x3a3   : > { %3891 = vmatmul.mubr.msk.bf16.vlgmr.msra.gmra.mrb[64].mxu1 %vm677_vm0, %v1717_v17 }
 0x3a4   : > { %v3844_v59 = vpop.f32.mrb[52].mxu1  ;;  %3871 = vmatmul.mubr.msk.bf16.gmra.mrb[60].mxu0 %vm677_vm0, %v4740_v32 }
 0x3a5   : > { %v1669_v46 = vpop.f32.mrb[53].mxu1 }
 0x3a6   : > { %v3845_v23 = vpop.f32.mrb[54].mxu1 }
 0x3a7   : > { %v1719_v48 = vpack.c.bf16 %v3845_v23, %v3844_v59  ;;  %v1672_v39 = vpop.f32.mrb[55].mxu1 }
 0x3a8   : > { %v1718_v51 = vpack.c.bf16 %v1672_v39, %v1669_v46 }
 0x3aa   : > { %3894 = vmatprep.mubr.msk.bf16.mxu1 %vm677_vm0, %v1718_v51 }
 0x3ab   : > { %3895 = vmatmul.mubr.msk.bf16.gmra.mrb[68].mxu1 %vm677_vm0, %v1719_v48 }
 0x3ac   : > { %v3848_v19 = vpop.f32.mrb[56].mxu1 }
 0x3ad   : > { %v1685_v63 = vpop.f32.mrb[57].mxu1 }
 0x3ae   : > { %v3849_v53 = vpop.f32.mrb[58].mxu1 }
 0x3af   : > { %v1721_v58 = vpack.c.bf16 %v3849_v53, %v3848_v19  ;;  %v1688_v61 = vpop.f32.mrb[59].mxu1 }
 0x3b0   : > { %v1720_v2 = vpack.c.bf16 %v1688_v61, %v1685_v63 }
 0x3b2   : > { %3898 = vmatprep.mubr.msk.bf16.mxu1 %vm677_vm0, %v1720_v2 }
 0x3b3   : > { %3899 = vmatmul.mubr.msk.bf16.gmra.mrb[72].mxu1 %vm677_vm0, %v1721_v58 }
 0x3b4   : > { %v3852_v32 = vpop.f32.mrb[60].mxu1 }
 0x3b5   : > { %v1701_v3 = vpop.f32.mrb[61].mxu1 }
 0x3b6   : > { %v3853_v4 = vpop.f32.mrb[62].mxu1 }
 0x3b7   : > { %v1723_v60 = vpack.c.bf16 %v3853_v4, %v3852_v32  ;;  %v1704_v6 = vpop.f32.mrb[63].mxu1  ;;  %v4909_v4 = vld [vmem:[%s4906_s11] sm:$0xff] }
 0x3b8   : > { %v1722_v37 = vpack.c.bf16 %v1704_v6, %v1701_v3 }
 0x3ba   : > { %3902 = vmatprep.mubr.msk.bf16.mxu1 %vm677_vm0, %v1722_v37 }
 0x3bb   : > { %3903 = vmatmul.mubr.msk.bf16.gmra.mrb[76].mxu1 %vm677_vm0, %v1723_v60 }
 0x43f   : > { %v4870_v35 = vpop.f32.mrb[32].mxu0 }
 0x440   : > { %v4872_v7 = vpop.f32.mrb[33].mxu0 }
 0x441   : > { %v4874_v12 = vpop.f32.mrb[34].mxu0 }
 0x442   : > { %v4876_v9 = vpop.f32.mrb[35].mxu0 }
 0x447   : > { %v4878_v14 = vpop.f32.mrb[36].mxu0 }
 0x448   : > { %v4880_v43 = vpop.f32.mrb[37].mxu0 }
 0x449   : > { %v4882_v24 = vpop.f32.mrb[38].mxu0 }
 0x44a   : > { %v4884_v25 = vpop.f32.mrb[39].mxu0 }
 0x44f   : > { %v4886_v29 = vpop.f32.mrb[40].mxu0 }
 0x450   : > { %v4888_v27 = vpop.f32.mrb[41].mxu0 }
 0x451   : > { %v4890_v15 = vpop.f32.mrb[42].mxu0 }
 0x452   : > { %v4892_v5 = vpop.f32.mrb[43].mxu0 }
 0x457   : > { %v4894_v49 = vpop.f32.mrb[44].mxu0 }
 0x458   : > { %v4896_v22 = vpop.f32.mrb[45].mxu0 }
 0x459   : > { %v4898_v50 = vpop.f32.mrb[46].mxu0 }
 0x45a   : > { %v4900_v1 = vpop.f32.mrb[47].mxu0 }
 0x45f   : > { %v3860_v34 = vpop.f32.mrb[48].mxu0 }
 0x460   : > { %v1770_v38 = vpop.f32.mrb[49].mxu0 }
 0x461   : > { %v3861_v17 = vpop.f32.mrb[50].mxu0 }
 0x462   : > { %v1834_v56 = vpack.c.bf16 %v3861_v17, %v3860_v34  ;;  %v1773_v40 = vpop.f32.mrb[51].mxu0  ;;  %v4915_v17 = vld [vmem:[%s4906_s11 + $0x8] sm:$0xff] }
 0x463   : > { %v1833_v59 = vpack.c.bf16 %v1773_v40, %v1770_v38 }
 0x465   : > { %3906 = vmatprep.subr.bf16.mxu0 %v1833_v59 }
 0x466   : > { %3907 = vmatpush3.bf16.msra.mxu0 %v1833_v59 }
 0x467   : > { %v3864_v46 = vpop.f32.mrb[52].mxu0  ;;  %3908 = vmatprep.subr.bf16.mxu0 %v1834_v56 }
 0x468   : > { %v1786_v23 = vpop.f32.mrb[53].mxu0 }
 0x469   : > { %v3865_v48 = vpop.f32.mrb[54].mxu0 }
 0x46a   : > { %v1836_v39 = vpack.c.bf16 %v3865_v48, %v3864_v46  ;;  %v1789_v51 = vpop.f32.mrb[55].mxu0  ;;  %3909 = vmatpush3.bf16.msra.mxu0 %v1834_v56  ;;  %v4922_v48 = vld [vmem:[%s4906_s11 + $0x10] sm:$0xff] }
 0x46b   : > { %v1835_v19 = vpack.c.bf16 %v1789_v51, %v1786_v23 }
 0x46d   : > { %3910 = vmatprep.subr.bf16.mxu0 %v1835_v19 }
 0x46e   : > { %3911 = vmatpush3.bf16.msra.mxu0 %v1835_v19  ;;  %v355_v19 = vld [vmem:[%s4906_s11 + $0x18] sm:$0xff] }
 0x46f   : > { %v3868_v63 = vpop.f32.mrb[56].mxu0  ;;  %3912 = vmatprep.subr.bf16.mxu0 %v1836_v39 }
 0x470   : > { %v1802_v53 = vpop.f32.mrb[57].mxu0 }
 0x471   : > { %v3869_v58 = vpop.f32.mrb[58].mxu0 }
 0x472   : > { %v1838_v61 = vpack.c.bf16 %v3869_v58, %v3868_v63  ;;  %v1805_v2 = vpop.f32.mrb[59].mxu0  ;;  %3913 = vmatpush3.bf16.msra.mxu0 %v1836_v39  ;;  %v356_v58 = vld [vmem:[%s4906_s11 + $0x20] sm:$0xff] }
 0x473   : > { %v1837_v32 = vpack.c.bf16 %v1805_v2, %v1802_v53 }
 0x475   : > { %3914 = vmatprep.subr.bf16.mxu0 %v1837_v32 }
 0x476   : > { %v3892_v3 = vpop.f32.mrb[64].mxu1  ;;  %3915 = vmatpush3.bf16.msra.mxu0 %v1837_v32 }
 0x477   : > { %v3872_v60 = vpop.f32.mrb[60].mxu0  ;;  %v1899_v6 = vpop.f32.mrb[65].mxu1  ;;  %3916 = vmatprep.subr.bf16.mxu0 %v1838_v61  ;;  %v4925_v51 = vadd.f32 %v3892_v3, %v4922_v48  ;;  %v357_v3 = vld [vmem:[%s4906_s11 + $0x28] sm:$0xff] }
 0x478   : > { %v4912_v37 = vadd.f32 %v1899_v6, %v4909_v4  ;;  %v1818_v34 = vpop.f32.mrb[61].mxu0  ;;  %v3893_v38 = vpop.f32.mrb[66].mxu1 }
 0x479   : > { %v3873_v56 = vpop.f32.mrb[62].mxu0  ;;  %v1902_v40 = vpop.f32.mrb[67].mxu1  ;;  %v4929_v63 = vadd.f32 %v3893_v38, %v355_v19 }
 0x47a   : > { %v1840_v59 = vpack.c.bf16 %v3873_v56, %v3872_v60  ;;  %v4918_v46 = vadd.f32 %v1902_v40, %v4915_v17  ;;  %1962 = vmax.xlane.f32.xlu0 %v4912_v37  ;;  %v1821_v23 = vpop.f32.mrb[63].mxu0  ;;  %3917 = vmatpush3.bf16.msra.mxu0 %v1838_v61  ;;  %v359_v56 = vld [vmem:[%s4906_s11 + $0x38] sm:$0xff] }
 0x47b   : > { %v1839_v39 = vpack.c.bf16 %v1821_v23, %v1818_v34  ;;  %v358_v34 = vld [vmem:[%s4906_s11 + $0x30] sm:$0xff] }
 0x47c   : > { %1964 = vmax.xlane.f32.xlu1 %v4918_v46 }
 0x47d   : > { %3918 = vmatprep.subr.bf16.mxu0 %v1839_v39 }
 0x47e   : > { %v3896_v53 = vpop.f32.mrb[68].mxu1  ;;  %1966 = vmax.xlane.f32.xlu0 %v4925_v51  ;;  %3919 = vmatpush3.bf16.msra.mxu0 %v1839_v39  ;;  %v360_v39 = vld [vmem:[%s4906_s11 + $0x40] sm:$0xff] }
 0x47f   : > { %v1915_v61 = vpop.f32.mrb[69].mxu1  ;;  %3920 = vmatprep.subr.bf16.mxu0 %v1840_v59  ;;  %v4942_v38 = vadd.f32 %v3896_v53, %v358_v34 }
 0x480   : > { %v4933_v2 = vadd.f32 %v1915_v61, %v356_v58  ;;  %v3897_v32 = vpop.f32.mrb[70].mxu1  ;;  %1968 = vmax.xlane.f32.xlu1 %v4929_v63 }
 0x481   : > { %v1918_v60 = vpop.f32.mrb[71].mxu1  ;;  %v4946_v40 = vadd.f32 %v3897_v32, %v359_v56  ;;  %v362_v32 = vld [vmem:[%s4906_s11 + $0x50] sm:$0xff] }
 0x482   : > { %v4937_v6 = vadd.f32 %v1918_v60, %v357_v3  ;;  %1970 = vmax.xlane.f32.xlu0 %v4933_v2  ;;  %3921 = vmatpush3.bf16.msra.mxu0 %v1840_v59 }
 0x483   : > { %3938 = vmatprep.subr.bf16.mxu0 %v4831_v13 }
 0x484   : > { %1972 = vmax.xlane.f32.xlu1 %v4937_v6 }
 0x486   : > { %v3900_v23 = vpop.f32.mrb[72].mxu1  ;;  %1974 = vmax.xlane.f32.xlu0 %v4942_v38 }
 0x487   : > { %v1931_v61 = vpop.f32.mrb[73].mxu1  ;;  %v4958_v55 = vadd.f32 %v3900_v23, %v362_v32 }
 0x488   : > { %v4950_v60 = vadd.f32 %v1931_v61, %v360_v39  ;;  %v3901_v59 = vpop.f32.mrb[74].mxu1  ;;  %1976 = vmax.xlane.f32.xlu1 %v4946_v40 }
 0x489   : > { %v1934_v53 = vpop.f32.mrb[75].mxu1  ;;  %v4962_v61 = vadd.f32 %v3901_v59, %v363_v41  ;;  %v367_v59 = vld [vmem:[%s4906_s11 + $0x78] sm:$0xff] }
 0x48a   : > { %v4954_v45 = vadd.f32 %v1934_v53, %v361_v57  ;;  %1978 = vmax.xlane.f32.xlu0 %v4950_v60 }
 0x48c   : > { %1980 = vmax.xlane.f32.xlu1 %v4954_v45 }
 0x48e   : > { %v3904_v30 = vpop.f32.mrb[76].mxu1  ;;  %1982 = vmax.xlane.f32.xlu0 %v4958_v55 }
 0x48f   : > { %v1947_v28 = vpop.f32.mrb[77].mxu1  ;;  %v4974_v62 = vadd.f32 %v3904_v30, %v366_v8  ;;  %v4993_v30 = vadd.f32 %v4870_v35, %v4922_v48  ;;  %v5009_v35 = vadd.f32 %v4878_v14, %v358_v34  ;;  %v5025_v14 = vadd.f32 %v4886_v29, %v362_v32 }
 0x490   : > { %v4966_v18 = vadd.f32 %v1947_v28, %v364_v20  ;;  %v3905_v53 = vpop.f32.mrb[78].mxu1  ;;  %1984 = vmax.xlane.f32.xlu1 %v4962_v61  ;;  %v4983_v28 = vadd.f32 %v4872_v7, %v4909_v4  ;;  %v5001_v7 = vadd.f32 %v4880_v43, %v356_v58  ;;  %v5017_v43 = vadd.f32 %v4888_v27, %v360_v39 }
 0x491   : > { %v1950_v0 = vpop.f32.mrb[79].mxu1  ;;  %v4978_v54 = vadd.f32 %v3905_v53, %v367_v59  ;;  %v4997_v53 = vadd.f32 %v4874_v12, %v355_v19  ;;  %v5013_v12 = vadd.f32 %v4882_v24, %v359_v56  ;;  %v5029_v24 = vadd.f32 %v4890_v15, %v363_v41 }
 0x492   : > { %v4970_v23 = vadd.f32 %v1950_v0, %v365_v10  ;;  %1986 = vmax.xlane.f32.xlu0 %v4966_v18  ;;  %v4988_v0 = vadd.f32 %v4876_v9, %v4915_v17  ;;  %v5005_v9 = vadd.f32 %v4884_v25, %v357_v3  ;;  %v5021_v25 = vadd.f32 %v4892_v5, %v361_v57 }
 0x493   : > { %v5033_v27 = vadd.f32 %v4896_v22, %v364_v20  ;;  %v5037_v57 = vadd.f32 %v4900_v1, %v365_v10  ;;  %v5041_v29 = vadd.f32 %v4894_v49, %v366_v8  ;;  %v5045_v41 = vadd.f32 %v4898_v50, %v367_v59 }
 0x494   : > { %1988 = vmax.xlane.f32.xlu1 %v4970_v23 }
 0x496   : > { %1990 = vmax.xlane.f32.xlu0 %v4974_v62 }
 0x498   : > { %1992 = vmax.xlane.f32.xlu1 %v4978_v54 }
 0x49a   : > { %1455 = vmax.xlane.f32.xlu0 %v4983_v28 }
 0x49c   : > { %1457 = vmax.xlane.f32.xlu1 %v4988_v0 }
 0x49e   : > { %1459 = vmax.xlane.f32.xlu0 %v4993_v30 }
 0x4a0   : > { %1461 = vmax.xlane.f32.xlu1 %v4997_v53 }
 0x4a2   : > { %1463 = vmax.xlane.f32.xlu0 %v5001_v7 }
 0x4a4   : > { %1465 = vmax.xlane.f32.xlu1 %v5005_v9 }
 0x4a6   : > { %1467 = vmax.xlane.f32.xlu0 %v5009_v35 }
 0x4a8   : > { %1469 = vmax.xlane.f32.xlu1 %v5013_v12 }
 0x4aa   : > { %1471 = vmax.xlane.f32.xlu0 %v5017_v43 }
 0x4ac   : > { %1473 = vmax.xlane.f32.xlu1 %v5021_v25 }
 0x4ae   : > { %1475 = vmax.xlane.f32.xlu0 %v5025_v14 }
 0x4b0   : > { %1477 = vmax.xlane.f32.xlu1 %v5029_v24 }
 0x4b2   : > { %1479 = vmax.xlane.f32.xlu0 %v5033_v27 }
 0x4b4   : > { %1481 = vmax.xlane.f32.xlu1 %v5037_v57 }
 0x4b6   : > { %1483 = vmax.xlane.f32.xlu0 %v5041_v29 }
 0x4b8   : > { %1485 = vmax.xlane.f32.xlu1 %v5045_v41 }
 0x507   : > { %v1963_v20 = vpop.xlane.xlu0 %1962 }
 0x508   : > { %v1994_v15 = vsub.f32 %v4912_v37, %v1963_v20 }
 0x509   : > { %v1965_v5 = vpop.xlane.xlu1 %1964 }
 0x50a   : > { %v2010_v10 = vmul.f32 1.442695, %v1994_v15  ;;  %v1995_v22 = vsub.f32 %v4918_v46, %v1965_v5 }
 0x50b   : > { %v1967_v1 = vpop.xlane.xlu0 %1966 }
 0x50c   : > { %4158 = vpow2.f32 %v2010_v10  ;;  %v2012_v8 = vmul.f32 1.442695, %v1995_v22  ;;  %v1996_v49 = vsub.f32 %v4925_v51, %v1967_v1 }
 0x50d   : > { %v1969_v4 = vpop.xlane.xlu1 %1968 }
 0x50e   : > { %4160 = vpow2.f32 %v2012_v8  ;;  %v2014_v50 = vmul.f32 1.442695, %v1996_v49  ;;  %v1997_v17 = vsub.f32 %v4929_v63, %v1969_v4 }
 0x50f   : > { %v1971_v48 = vpop.xlane.xlu0 %1970 }
 0x510   : > { %4162 = vpow2.f32 %v2014_v50  ;;  %v2016_v19 = vmul.f32 1.442695, %v1997_v17  ;;  %v1998_v58 = vsub.f32 %v4933_v2, %v1971_v48 }
 0x511   : > { %v1973_v37 = vpop.xlane.xlu1 %1972 }
 0x512   : > { %4164 = vpow2.f32 %v2016_v19  ;;  %v2018_v3 = vmul.f32 1.442695, %v1998_v58  ;;  %v1999_v46 = vsub.f32 %v4937_v6, %v1973_v37 }
 0x513   : > { %v1975_v34 = vpop.xlane.xlu0 %1974 }
 0x514   : > { %4166 = vpow2.f32 %v2018_v3  ;;  %v2020_v56 = vmul.f32 1.442695, %v1999_v46  ;;  %v2000_v51 = vsub.f32 %v4942_v38, %v1975_v34 }
 0x515   : > { %v1977_v39 = vpop.xlane.xlu1 %1976 }
 0x516   : > { %v5056_v32 = vpop.eup %4158  ;;  %4168 = vpow2.f32 %v2020_v56  ;;  %v2022_v63 = vmul.f32 1.442695, %v2000_v51  ;;  %v2001_v59 = vsub.f32 %v4946_v40, %v1977_v39 }
 0x517   : > { %v1979_v20 = vpop.xlane.xlu0 %1978  ;;  %2042 = vadd.xlane.f32.xlu0 %v5056_v32 }
 0x518   : > { %v5060_v2 = vpop.eup %4160  ;;  %4170 = vpow2.f32 %v2022_v63  ;;  %v2024_v15 = vmul.f32 1.442695, %v2001_v59  ;;  %v2002_v6 = vsub.f32 %v4950_v60, %v1979_v20 }
 0x519   : > { %v1981_v5 = vpop.xlane.xlu1 %1980  ;;  %2044 = vadd.xlane.f32.xlu1 %v5060_v2 }
 0x51a   : > { %v5064_v38 = vpop.eup %4162  ;;  %4172 = vpow2.f32 %v2024_v15  ;;  %v2026_v10 = vmul.f32 1.442695, %v2002_v6  ;;  %v2003_v22 = vsub.f32 %v4954_v45, %v1981_v5 }
 0x51b   : > { %v1983_v1 = vpop.xlane.xlu0 %1982  ;;  %2046 = vadd.xlane.f32.xlu0 %v5064_v38 }
 0x51c   : > { %v5068_v40 = vpop.eup %4164  ;;  %4174 = vpow2.f32 %v2026_v10  ;;  %v2028_v8 = vmul.f32 1.442695, %v2003_v22  ;;  %v2004_v49 = vsub.f32 %v4958_v55, %v1983_v1 }
 0x51d   : > { %v1985_v4 = vpop.xlane.xlu1 %1984  ;;  %2048 = vadd.xlane.f32.xlu1 %v5068_v40 }
 0x51e   : > { %v5072_v60 = vpop.eup %4166  ;;  %4176 = vpow2.f32 %v2028_v8  ;;  %v2030_v50 = vmul.f32 1.442695, %v2004_v49  ;;  %v2005_v17 = vsub.f32 %v4962_v61, %v1985_v4 }
 0x51f   : > { %v1987_v48 = vpop.xlane.xlu0 %1986  ;;  %2050 = vadd.xlane.f32.xlu0 %v5072_v60 }
 0x520   : > { %v5076_v45 = vpop.eup %4168  ;;  %4178 = vpow2.f32 %v2030_v50  ;;  %v2032_v19 = vmul.f32 1.442695, %v2005_v17  ;;  %v2006_v58 = vsub.f32 %v4966_v18, %v1987_v48 }
 0x521   : > { %v1989_v37 = vpop.xlane.xlu1 %1988  ;;  %2052 = vadd.xlane.f32.xlu1 %v5076_v45 }
 0x522   : > { %v5080_v55 = vpop.eup %4170  ;;  %4180 = vpow2.f32 %v2032_v19  ;;  %v2034_v3 = vmul.f32 1.442695, %v2006_v58  ;;  %v2007_v46 = vsub.f32 %v4970_v23, %v1989_v37 }
 0x523   : > { %v1991_v34 = vpop.xlane.xlu0 %1990  ;;  %2054 = vadd.xlane.f32.xlu0 %v5080_v55 }
 0x524   : > { %v5084_v61 = vpop.eup %4172  ;;  %4182 = vpow2.f32 %v2034_v3  ;;  %v2036_v56 = vmul.f32 1.442695, %v2007_v46  ;;  %v2008_v51 = vsub.f32 %v4974_v62, %v1991_v34 }
 0x525   : > { %v1993_v39 = vpop.xlane.xlu1 %1992  ;;  %2056 = vadd.xlane.f32.xlu1 %v5084_v61 }
 0x526   : > { %v5088_v18 = vpop.eup %4174  ;;  %4184 = vpow2.f32 %v2036_v56  ;;  %v2038_v63 = vmul.f32 1.442695, %v2008_v51  ;;  %v2009_v59 = vsub.f32 %v4978_v54, %v1993_v39 }
 0x527   : > { %2058 = vadd.xlane.f32.xlu0 %v5088_v18  ;;  %v1456_v23 = vpop.xlane.xlu0 %1455 }
 0x528   : > { %v5092_v20 = vpop.eup %4176  ;;  %4186 = vpow2.f32 %v2038_v63  ;;  %v2040_v15 = vmul.f32 1.442695, %v2009_v59  ;;  %v1487_v6 = vsub.f32 %v4983_v28, %v1456_v23 }
 0x529   : > { %2060 = vadd.xlane.f32.xlu1 %v5092_v20  ;;  %v1458_v62 = vpop.xlane.xlu1 %1457 }
 0x52a   : > { %v5096_v5 = vpop.eup %4178  ;;  %4188 = vpow2.f32 %v2040_v15  ;;  %v1503_v10 = vmul.f32 1.442695, %v1487_v6  ;;  %v1488_v22 = vsub.f32 %v4988_v0, %v1458_v62 }
 0x52b   : > { %2062 = vadd.xlane.f32.xlu0 %v5096_v5  ;;  %v1460_v54 = vpop.xlane.xlu0 %1459 }
 0x52c   : > { %v5100_v1 = vpop.eup %4180  ;;  %4190 = vpow2.f32 %v1503_v10  ;;  %v1505_v8 = vmul.f32 1.442695, %v1488_v22  ;;  %v1489_v49 = vsub.f32 %v4993_v30, %v1460_v54 }
 0x52d   : > { %2064 = vadd.xlane.f32.xlu1 %v5100_v1  ;;  %v1462_v28 = vpop.xlane.xlu1 %1461 }
 0x52e   : > { %v5104_v4 = vpop.eup %4182  ;;  %4192 = vpow2.f32 %v1505_v8  ;;  %v1507_v50 = vmul.f32 1.442695, %v1489_v49  ;;  %v1490_v17 = vsub.f32 %v4997_v53, %v1462_v28 }
 0x52f   : > { %2066 = vadd.xlane.f32.xlu0 %v5104_v4  ;;  %v1464_v0 = vpop.xlane.xlu0 %1463 }
 0x530   : > { %v5108_v48 = vpop.eup %4184  ;;  %4194 = vpow2.f32 %v1507_v50  ;;  %v1509_v19 = vmul.f32 1.442695, %v1490_v17  ;;  %v1491_v58 = vsub.f32 %v5001_v7, %v1464_v0 }
 0x531   : > { %2068 = vadd.xlane.f32.xlu1 %v5108_v48  ;;  %v1466_v30 = vpop.xlane.xlu1 %1465 }
 0x532   : > { %v5112_v37 = vpop.eup %4186  ;;  %4196 = vpow2.f32 %v1509_v19  ;;  %v1511_v3 = vmul.f32 1.442695, %v1491_v58  ;;  %v1492_v46 = vsub.f32 %v5005_v9, %v1466_v30 }
 0x533   : > { %2070 = vadd.xlane.f32.xlu0 %v5112_v37  ;;  %v1468_v53 = vpop.xlane.xlu0 %1467 }
 0x534   : > { %v5116_v34 = vpop.eup %4188  ;;  %4198 = vpow2.f32 %v1511_v3  ;;  %v1513_v56 = vmul.f32 1.442695, %v1492_v46  ;;  %v1493_v51 = vsub.f32 %v5009_v35, %v1468_v53 }
 0x535   : > { %2072 = vadd.xlane.f32.xlu1 %v5116_v34  ;;  %v1470_v7 = vpop.xlane.xlu1 %1469 }
 0x536   : > { %v5120_v39 = vpop.eup %4190  ;;  %4200 = vpow2.f32 %v1513_v56  ;;  %v1515_v63 = vmul.f32 1.442695, %v1493_v51  ;;  %v1494_v59 = vsub.f32 %v5013_v12, %v1470_v7 }
 0x537   : > { %1535 = vadd.xlane.f32.xlu0 %v5120_v39  ;;  %v1472_v9 = vpop.xlane.xlu0 %1471 }
 0x538   : > { %v5124_v23 = vpop.eup %4192  ;;  %4202 = vpow2.f32 %v1515_v63  ;;  %v1517_v15 = vmul.f32 1.442695, %v1494_v59  ;;  %v1495_v6 = vsub.f32 %v5017_v43, %v1472_v9 }
 0x539   : > { %1537 = vadd.xlane.f32.xlu1 %v5124_v23  ;;  %v1474_v35 = vpop.xlane.xlu1 %1473 }
 0x53a   : > { %v5128_v62 = vpop.eup %4194  ;;  %4204 = vpow2.f32 %v1517_v15  ;;  %v1519_v10 = vmul.f32 1.442695, %v1495_v6  ;;  %v1496_v22 = vsub.f32 %v5021_v25, %v1474_v35 }
 0x53b   : > { %1539 = vadd.xlane.f32.xlu0 %v5128_v62  ;;  %v1476_v12 = vpop.xlane.xlu0 %1475 }
 0x53c   : > { %v5132_v54 = vpop.eup %4196  ;;  %4206 = vpow2.f32 %v1519_v10  ;;  %v1521_v8 = vmul.f32 1.442695, %v1496_v22  ;;  %v1497_v49 = vsub.f32 %v5025_v14, %v1476_v12  ;;  %v4120_v22 = vld [vmem:[%s4614_s8 + $0x50] sm:$0xff]   ;;  %v4121_v12 = vld [vmem:[%s4614_s8 + $0x58] sm:$0xff]  }
 0x53d   : > { %1541 = vadd.xlane.f32.xlu1 %v5132_v54  ;;  %v1478_v43 = vpop.xlane.xlu1 %1477  ;;  %3970 = vmatprep.subr.bf16.mxu1 %v4120_v22 }
 0x53e   : > { %v5136_v28 = vpop.eup %4198  ;;  %4208 = vpow2.f32 %v1521_v8  ;;  %v1523_v50 = vmul.f32 1.442695, %v1497_v49  ;;  %v1498_v17 = vsub.f32 %v5029_v24, %v1478_v43  ;;  %3971 = vmatpush3.bf16.msra.mxu1 %v4120_v22 }
 0x53f   : > { %1543 = vadd.xlane.f32.xlu0 %v5136_v28  ;;  %v1480_v25 = vpop.xlane.xlu0 %1479  ;;  %3972 = vmatprep.subr.bf16.mxu1 %v4121_v12 }
 0x540   : > { %v5140_v0 = vpop.eup %4200  ;;  %4210 = vpow2.f32 %v1523_v50  ;;  %v1525_v19 = vmul.f32 1.442695, %v1498_v17  ;;  %v1499_v58 = vsub.f32 %v5033_v27, %v1480_v25 }
 0x541   : > { %1545 = vadd.xlane.f32.xlu1 %v5140_v0  ;;  %v1482_v14 = vpop.xlane.xlu1 %1481 }
 0x542   : > { %v5144_v30 = vpop.eup %4202  ;;  %4212 = vpow2.f32 %v1525_v19  ;;  %v1527_v3 = vmul.f32 1.442695, %v1499_v58  ;;  %v1500_v46 = vsub.f32 %v5037_v57, %v1482_v14  ;;  %3973 = vmatpush3.bf16.msra.mxu1 %v4121_v12 }
 0x543   : > { %1547 = vadd.xlane.f32.xlu0 %v5144_v30  ;;  %v1484_v24 = vpop.xlane.xlu0 %1483 }
 0x544   : > { %v5148_v53 = vpop.eup %4204  ;;  %4214 = vpow2.f32 %v1527_v3  ;;  %v1529_v56 = vmul.f32 1.442695, %v1500_v46  ;;  %v1501_v51 = vsub.f32 %v5041_v29, %v1484_v24 }
 0x545   : > { %1549 = vadd.xlane.f32.xlu1 %v5148_v53  ;;  %v1486_v27 = vpop.xlane.xlu1 %1485 }
 0x546   : > { %v5152_v7 = vpop.eup %4206  ;;  %4216 = vpow2.f32 %v1529_v56  ;;  %v1531_v63 = vmul.f32 1.442695, %v1501_v51  ;;  %v1502_v59 = vsub.f32 %v5045_v41, %v1486_v27 }
 0x547   : > { %1551 = vadd.xlane.f32.xlu0 %v5152_v7 }
 0x548   : > { %v5156_v57 = vpop.eup %4208  ;;  %4218 = vpow2.f32 %v1531_v63  ;;  %v1533_v9 = vmul.f32 1.442695, %v1502_v59 }
 0x549   : > { %1553 = vadd.xlane.f32.xlu1 %v5156_v57 }
 0x54a   : > { %v5159_v29 = vpop.eup %4210  ;;  %4220 = vpow2.f32 %v1533_v9 }
 0x54b   : > { %1555 = vadd.xlane.f32.xlu0 %v5159_v29 }
 0x54c   : > { %v5162_v15 = vpop.eup %4212 }
 0x54d   : > { %1557 = vadd.xlane.f32.xlu1 %v5162_v15 }
 0x54e   : > { %v5165_v41 = vpop.eup %4214 }
 0x54f   : > { %1559 = vadd.xlane.f32.xlu0 %v5165_v41 }
 0x550   : > { %v5168_v6 = vpop.eup %4216 }
 0x551   : > { %1561 = vadd.xlane.f32.xlu1 %v5168_v6 }
 0x552   : > { %v5171_v35 = vpop.eup %4218 }
 0x553   : > { %1563 = vadd.xlane.f32.xlu0 %v5171_v35 }
 0x554   : > { %v5174_v10 = vpop.eup %4220 }
 0x555   : > { %1565 = vadd.xlane.f32.xlu1 %v5174_v10 }
 0x5a4   : > { %v2043_v8 = vpop.xlane.xlu0 %2042 }
 0x5a5   : > { %4222 = vrcp.f32 %v2043_v8 }
 0x5a6   : > { %v2045_v49 = vpop.xlane.xlu1 %2044 }
 0x5a7   : > { %4224 = vrcp.f32 %v2045_v49 }
 0x5a8   : > { %v2047_v43 = vpop.xlane.xlu0 %2046 }
 0x5a9   : > { %4226 = vrcp.f32 %v2047_v43 }
 0x5aa   : > { %v2049_v50 = vpop.xlane.xlu1 %2048 }
 0x5ab   : > { %4228 = vrcp.f32 %v2049_v50 }
 0x5ac   : > { %v2051_v17 = vpop.xlane.xlu0 %2050 }
 0x5ad   : > { %4230 = vrcp.f32 %v2051_v17 }
 0x5ae   : > { %v2053_v25 = vpop.xlane.xlu1 %2052 }
 0x5af   : > { %v4223_v19 = vpop.eup %4222  ;;  %4232 = vrcp.f32 %v2053_v25 }
 0x5b0   : > { %v2055_v58 = vpop.xlane.xlu0 %2054  ;;  %v2090_v46 = vmul.f32 %v4223_v19, %v5056_v32 }
 0x5b1   : > { %v4225_v14 = vpop.eup %4224  ;;  %4234 = vrcp.f32 %v2055_v58 }
 0x5b2   : > { %v2057_v3 = vpop.xlane.xlu1 %2056  ;;  %v2091_v24 = vmul.f32 %v4225_v14, %v5060_v2 }
 0x5b3   : > { %v4227_v56 = vpop.eup %4226  ;;  %4236 = vrcp.f32 %v2057_v3 }
 0x5b4   : > { %v2059_v51 = vpop.xlane.xlu0 %2058  ;;  %v2106_v27 = vpack.c.bf16 %v2091_v24, %v2090_v46  ;;  %v2092_v59 = vmul.f32 %v4227_v56, %v5064_v38 }
 0x5b5   : > { %v4229_v63 = vpop.eup %4228  ;;  %4238 = vrcp.f32 %v2059_v51 }
 0x5b6   : > { %v2093_v9 = vmul.f32 %v4229_v63, %v5068_v40  ;;  %v2061_v22 = vpop.xlane.xlu1 %2060  ;;  %3922 = vmatprep.mubr.bf16.mxu0 %v2106_v27 }
 0x5b7   : > { %v4231_v12 = vpop.eup %4230  ;;  %4240 = vrcp.f32 %v2061_v22 }
 0x5b8   : > { %v2063_v8 = vpop.xlane.xlu0 %2062  ;;  %v2107_v49 = vpack.c.bf16 %v2093_v9, %v2092_v59  ;;  %v2094_v2 = vmul.f32 %v4231_v12, %v5072_v60 }
 0x5b9   : > { %v4233_v43 = vpop.eup %4232  ;;  %4242 = vrcp.f32 %v2063_v8 }
 0x5ba   : > { %v2065_v32 = vpop.xlane.xlu1 %2064  ;;  %3923 = vmatmul.mubr.bf16.vlgmr.msra.gmra.mrb[64].mxu0 %v2107_v49  ;;  %v2095_v50 = vmul.f32 %v4233_v43, %v5076_v45 }
 0x5bb   : > { %v4235_v17 = vpop.eup %4234  ;;  %4244 = vrcp.f32 %v2065_v32  ;;  %3939 = vmatpush3.bf16.msra.mxu0 %v4831_v13 }
 0x5bc   : > { %3940 = vmatprep.subr.bf16.mxu0 %v4829_v11  ;;  %v2067_v38 = vpop.xlane.xlu0 %2066  ;;  %v2108_v40 = vpack.c.bf16 %v2095_v50, %v2094_v2  ;;  %v2096_v58 = vmul.f32 %v4235_v17, %v5080_v55 }
 0x5bd   : > { %v4237_v25 = vpop.eup %4236  ;;  %4246 = vrcp.f32 %v2067_v38 }
 0x5be   : > { %v2069_v19 = vpop.xlane.xlu1 %2068  ;;  %3926 = vmatprep.mubr.bf16.mxu0 %v2108_v40  ;;  %v2097_v14 = vmul.f32 %v4237_v25, %v5084_v61 }
 0x5bf   : > { %v4239_v3 = vpop.eup %4238  ;;  %4248 = vrcp.f32 %v2069_v19  ;;  %3941 = vmatpush3.bf16.msra.mxu0 %v4829_v11 }
 0x5c0   : > { %3942 = vmatprep.subr.bf16.mxu0 %v4838_v21  ;;  %v2071_v60 = vpop.xlane.xlu0 %2070  ;;  %v2109_v13 = vpack.c.bf16 %v2097_v14, %v2096_v58  ;;  %v2098_v24 = vmul.f32 %v4239_v3, %v5088_v18 }
 0x5c1   : > { %v4241_v45 = vpop.eup %4240  ;;  %4250 = vrcp.f32 %v2071_v60 }
 0x5c2   : > { %v2073_v46 = vpop.xlane.xlu1 %2072  ;;  %3927 = vmatmul.mubr.bf16.gmra.mrb[68].mxu0 %v2109_v13  ;;  %v2099_v56 = vmul.f32 %v4241_v45, %v5092_v20 }
 0x5c3   : > { %v4243_v51 = vpop.eup %4242  ;;  %4252 = vrcp.f32 %v2073_v46  ;;  %3943 = vmatpush3.bf16.msra.mxu0 %v4838_v21 }
 0x5c4   : > { %3944 = vmatprep.subr.bf16.mxu0 %v4836_v16  ;;  %v1536_v55 = vpop.xlane.xlu0 %1535  ;;  %v2110_v11 = vpack.c.bf16 %v2099_v56, %v2098_v24  ;;  %v2100_v63 = vmul.f32 %v4243_v51, %v5096_v5 }
 0x5c5   : > { %v4245_v61 = vpop.eup %4244  ;;  %4254 = vrcp.f32 %v1536_v55 }
 0x5c6   : > { %v1538_v27 = vpop.xlane.xlu1 %1537  ;;  %3930 = vmatprep.mubr.bf16.mxu0 %v2110_v11  ;;  %v2101_v59 = vmul.f32 %v4245_v61, %v5100_v1 }
 0x5c7   : > { %v4247_v9 = vpop.eup %4246  ;;  %4256 = vrcp.f32 %v1538_v27  ;;  %3945 = vmatpush3.bf16.msra.mxu0 %v4836_v16 }
 0x5c8   : > { %3946 = vmatprep.subr.bf16.mxu0 %v4846_v47  ;;  %v1540_v18 = vpop.xlane.xlu0 %1539  ;;  %v2111_v21 = vpack.c.bf16 %v2101_v59, %v2100_v63  ;;  %v2102_v12 = vmul.f32 %v4247_v9, %v5104_v4 }
 0x5c9   : > { %v4249_v20 = vpop.eup %4248  ;;  %4258 = vrcp.f32 %v1540_v18 }
 0x5ca   : > { %v1542_v22 = vpop.xlane.xlu1 %1541  ;;  %3931 = vmatmul.mubr.bf16.gmra.mrb[72].mxu0 %v2111_v21  ;;  %v2103_v8 = vmul.f32 %v4249_v20, %v5108_v48 }
 0x5cb   : > { %v4251_v49 = vpop.eup %4250  ;;  %4260 = vrcp.f32 %v1542_v22  ;;  %3947 = vmatpush3.bf16.msra.mxu0 %v4846_v47 }
 0x5cc   : > { %3948 = vmatprep.subr.bf16.mxu0 %v4844_v31  ;;  %v1544_v5 = vpop.xlane.xlu0 %1543  ;;  %v2112_v16 = vpack.c.bf16 %v2103_v8, %v2102_v12  ;;  %v2104_v32 = vmul.f32 %v4251_v49, %v5112_v37 }
 0x5cd   : > { %v4253_v1 = vpop.eup %4252  ;;  %4262 = vrcp.f32 %v1544_v5 }
 0x5ce   : > { %v1546_v43 = vpop.xlane.xlu1 %1545  ;;  %3934 = vmatprep.mubr.bf16.mxu0 %v2112_v16  ;;  %v2105_v2 = vmul.f32 %v4253_v1, %v5116_v34 }
 0x5cf   : > { %v4255_v50 = vpop.eup %4254  ;;  %4264 = vrcp.f32 %v1546_v43  ;;  %3949 = vmatpush3.bf16.msra.mxu0 %v4844_v31 }
 0x5d0   : > { %3950 = vmatprep.subr.bf16.mxu0 %v4854_v26  ;;  %v1548_v4 = vpop.xlane.xlu0 %1547  ;;  %v2113_v47 = vpack.c.bf16 %v2105_v2, %v2104_v32  ;;  %v1583_v38 = vmul.f32 %v4255_v50, %v5120_v39 }
 0x5d1   : > { %v4257_v48 = vpop.eup %4256  ;;  %4266 = vrcp.f32 %v1548_v4 }
 0x5d2   : > { %v1550_v17 = vpop.xlane.xlu1 %1549  ;;  %3935 = vmatmul.mubr.bf16.gmra.mrb[76].mxu0 %v2113_v47  ;;  %v1584_v40 = vmul.f32 %v4257_v48, %v5124_v23 }
 0x5d3   : > { %v4259_v25 = vpop.eup %4258  ;;  %4268 = vrcp.f32 %v1550_v17  ;;  %3951 = vmatpush3.bf16.msra.mxu0 %v4854_v26 }
 0x5d4   : > { %3952 = vmatprep.subr.bf16.mxu0 %v4852_v36  ;;  %v1552_v37 = vpop.xlane.xlu0 %1551  ;;  %v1599_v31 = vpack.c.bf16 %v1584_v40, %v1583_v38  ;;  %v1585_v19 = vmul.f32 %v4259_v25, %v5128_v62 }
 0x5d5   : > { %v4261_v34 = vpop.eup %4260  ;;  %4270 = vrcp.f32 %v1552_v37 }
 0x5d6   : > { %v1586_v58 = vmul.f32 %v4261_v34, %v5132_v54  ;;  %v1554_v14 = vpop.xlane.xlu1 %1553  ;;  %3954 = vmatprep.mubr.bf16.mxu0 %v1599_v31 }
 0x5d7   : > { %v4263_v3 = vpop.eup %4262  ;;  %4272 = vrcp.f32 %v1554_v14  ;;  %3953 = vmatpush3.bf16.msra.mxu0 %v4852_v36 }
 0x5d8   : > { %v1556_v39 = vpop.xlane.xlu0 %1555  ;;  %v1600_v23 = vpack.c.bf16 %v1586_v58, %v1585_v19  ;;  %v1587_v13 = vmul.f32 %v4263_v3, %v5136_v28 }
 0x5d9   : > { %v4265_v60 = vpop.eup %4264  ;;  %4274 = vrcp.f32 %v1556_v39  ;;  %v2318_v39 = vsub.s32 3, %v4448_v33 }
 0x5da   : > { %v1558_v26 = vpop.xlane.xlu1 %1557  ;;  %3955 = vmatmul.mubr.bf16.vlgmr.msra.gmra.mrb[64].mxu0 %v1600_v23  ;;  %v1588_v45 = vmul.f32 %v4265_v60, %v5140_v0  ;;  %v5236_v23 = vld [vmem:[%s4453_s30] sm:$0xff] }
 0x5db   : > { %v4267_v46 = vpop.eup %4266  ;;  %4276 = vrcp.f32 %v1558_v26  ;;  %v5239_v60 = vrot.slane %v5236_v23, %v2318_v39 }
 0x5dc   : > { %v1560_v62 = vpop.xlane.xlu0 %1559  ;;  %v1601_v54 = vpack.c.bf16 %v1588_v45, %v1587_v13  ;;  %v1589_v36 = vmul.f32 %v4267_v46, %v5144_v30 }
 0x5dd   : > { %v4269_v24 = vpop.eup %4268  ;;  %4278 = vrcp.f32 %v1560_v62 }
 0x5de   : > { %v1562_v56 = vpop.xlane.xlu1 %1561  ;;  %3958 = vmatprep.mubr.bf16.mxu0 %v1601_v54  ;;  %v1590_v51 = vmul.f32 %v4269_v24, %v5148_v53 }
 0x5df   : > { %v4271_v55 = vpop.eup %4270  ;;  %4280 = vrcp.f32 %v1562_v56 }
 0x5e0   : > { %v1564_v11 = vpop.xlane.xlu0 %1563  ;;  %v1602_v61 = vpack.c.bf16 %v1590_v51, %v1589_v36  ;;  %v1591_v0 = vmul.f32 %v4271_v55, %v5152_v7 }
 0x5e1   : > { %v4273_v27 = vpop.eup %4272  ;;  %4282 = vrcp.f32 %v1564_v11 }
 0x5e2   : > { %v1566_v28 = vpop.xlane.xlu1 %1565  ;;  %3959 = vmatmul.mubr.bf16.gmra.mrb[68].mxu0 %v1602_v61  ;;  %v1592_v63 = vmul.f32 %v4273_v27, %v5156_v57  ;;  %v5732_v61 = vld [vmem:[#allocation2_spill] sm:$0xff] }
 0x5e3   : > { %v4275_v59 = vpop.eup %4274  ;;  %4284 = vrcp.f32 %v1566_v28 }
 0x5e4   : > { %v1603_v9 = vpack.c.bf16 %v1592_v63, %v1591_v0  ;;  %v1593_v30 = vmul.f32 %v4275_v59, %v5159_v29 }
 0x5e5   : > { %v4277_v18 = vpop.eup %4276 }
 0x5e6   : > { %3962 = vmatprep.mubr.bf16.mxu0 %v1603_v9  ;;  %v1594_v53 = vmul.f32 %v4277_v18, %v5162_v15  ;;  %v5733_v18 = vld [vmem:[#allocation3_spill] sm:$0xff] }
 0x5e7   : > { %v4279_v21 = vpop.eup %4278 }
 0x5e8   : > { %v1604_v20 = vpack.c.bf16 %v1594_v53, %v1593_v30  ;;  %v1595_v12 = vmul.f32 %v4279_v21, %v5165_v41 }
 0x5e9   : > { %v4281_v22 = vpop.eup %4280 }
 0x5ea   : > { %3963 = vmatmul.mubr.bf16.gmra.mrb[72].mxu0 %v1604_v20  ;;  %v1596_v8 = vmul.f32 %v4281_v22, %v5168_v6  ;;  %v5734_v22 = vld [vmem:[#allocation5_spill] sm:$0xff] }
 0x5eb   : > { %v4283_v7 = vpop.eup %4282 }
 0x5ec   : > { %v1605_v49 = vpack.c.bf16 %v1596_v8, %v1595_v12  ;;  %v1597_v5 = vmul.f32 %v4283_v7, %v5171_v35  ;;  %v5735_v8 = vld [vmem:[#allocation4_spill] sm:$0xff] }
 0x5ed   : > { %v4285_v57 = vpop.eup %4284 }
 0x5ee   : > { %3966 = vmatprep.mubr.bf16.mxu0 %v1605_v49  ;;  %v1598_v16 = vmul.f32 %v4285_v57, %v5174_v10  ;;  %v5736_v57 = vld [vmem:[#allocation6_spill] sm:$0xff] }
 0x5f0   : > { %v1606_v1 = vpack.c.bf16 %v1598_v16, %v1597_v5 }
 0x5f2   : > { %3967 = vmatmul.mubr.bf16.gmra.mrb[76].mxu0 %v1606_v1 }
 0x6ad   : > { %v3956_v29 = vpop.f32.mrb[64].mxu0 }
 0x6ae   : > { %v2245_v15 = vpop.f32.mrb[65].mxu0 }
 0x6af   : > { %v3957_v43 = vpop.f32.mrb[66].mxu0 }
 0x6b0   : > { %v2309_v32 = vpack.c.bf16 %v3957_v43, %v3956_v29  ;;  %v2248_v2 = vpop.f32.mrb[67].mxu0 }
 0x6b1   : > { %v2308_v50 = vpack.c.bf16 %v2248_v2, %v2245_v15 }
 0x6b3   : > { %3974 = vmatprep.mubr.msk.bf16.mxu1 %vm677_vm0, %v2308_v50 }
 0x6b4   : > { %3975 = vmatmul.mubr.msk.bf16.vlgmr.msra.gmra.mrb[80].mxu1 %vm677_vm0, %v2309_v32 }
 0x6b5   : > { %v3960_v41 = vpop.f32.mrb[68].mxu0 }
 0x6b6   : > { %v2261_v6 = vpop.f32.mrb[69].mxu0 }
 0x6b7   : > { %v3961_v4 = vpop.f32.mrb[70].mxu0 }
 0x6b8   : > { %v2311_v47 = vpack.c.bf16 %v3961_v4, %v3960_v41  ;;  %v2264_v48 = vpop.f32.mrb[71].mxu0  ;;  %v5737_v41 = vld [vmem:[#allocation7_spill] sm:$0xff] }
 0x6b9   : > { %v2310_v35 = vpack.c.bf16 %v2264_v48, %v2261_v6 }
 0x6bb   : > { %3978 = vmatprep.mubr.msk.bf16.mxu1 %vm677_vm0, %v2310_v35  ;;  %v5738_v35 = vld [vmem:[#allocation9_spill] sm:$0xff] }
 0x6bc   : > { %3979 = vmatmul.mubr.msk.bf16.gmra.mrb[84].mxu1 %vm677_vm0, %v2311_v47 }
 0x6bd   : > { %v3964_v10 = vpop.f32.mrb[72].mxu0 }
 0x6be   : > { %v2277_v17 = vpop.f32.mrb[73].mxu0 }
 0x6bf   : > { %v3965_v38 = vpop.f32.mrb[74].mxu0 }
 0x6c0   : > { %v2313_v40 = vpack.c.bf16 %v3965_v38, %v3964_v10  ;;  %v2280_v25 = vpop.f32.mrb[75].mxu0 }
 0x6c1   : > { %v2312_v37 = vpack.c.bf16 %v2280_v25, %v2277_v17  ;;  %v5739_v17 = vld [vmem:[#allocation8_spill] sm:$0xff]  ;;  %v5740_v25 = vld [vmem:[#allocation10_spill] sm:$0xff] }
 0x6c3   : > { %3982 = vmatprep.mubr.msk.bf16.mxu1 %vm677_vm0, %v2312_v37 }
 0x6c4   : > { %3983 = vmatmul.mubr.msk.bf16.gmra.mrb[88].mxu1 %vm677_vm0, %v2313_v40 }
 0x6c5   : > { %v3968_v31 = vpop.f32.mrb[76].mxu0 }
 0x6c6   : > { %v2293_v34 = vpop.f32.mrb[77].mxu0 }
 0x6c7   : > { %v3969_v19 = vpop.f32.mrb[78].mxu0 }
 0x6c8   : > { %v2315_v58 = vpack.c.bf16 %v3969_v19, %v3968_v31  ;;  %v2296_v14 = vpop.f32.mrb[79].mxu0 }
 0x6c9   : > { %v2314_v3 = vpack.c.bf16 %v2296_v14, %v2293_v34 }
 0x6cb   : > { %3986 = vmatprep.mubr.msk.bf16.mxu1 %vm677_vm0, %v2314_v3 }
 0x6cc   : > { %3987 = vmatmul.mubr.msk.bf16.gmra.mrb[92].mxu1 %vm677_vm0, %v2315_v58 }
 0x787   : > { %v3976_v26 = vpop.f32.mrb[80].mxu1 }
 0x788   : > { %v2390_v13 = vpop.f32.mrb[81].mxu1  ;;  %v2399_v45 = vadd.f32 %v3976_v26, %v5239_v60 }
 0x789   : > { %v2391_v46 = vadd.f32 %v2390_v13, %v5239_v60  ;;  %v3977_v62 = vpop.f32.mrb[82].mxu1  ;;  %v5741_v13 = vld [vmem:[#allocation11_spill] sm:$0xff] }
 0x78a   : > { %v2393_v54 = vpop.f32.mrb[83].mxu1  ;;  %v2402_v56 = vadd.f32 %v3977_v62, %v5239_v60  ;;  %v5249_v51 = vadd.f32 %v2399_v45, %v4473_v52 }
 0x78b   : > { %v5244_v24 = vadd.f32 %v2391_v46, %v4463_v42  ;;  %v2394_v36 = vadd.f32 %v2393_v54, %v5239_v60 }
 0x78c   : > { %v5257_v27 = vadd.f32 %v2402_v56, %v5732_v61  ;;  %v5742_v56 = vld [vmem:[#allocation13_spill] sm:$0xff] }
 0x78d   : > { %v5252_v55 = vadd.f32 %v2394_v36, %v4466_v44  ;;  %v2469_v11 = vsel %vm677_vm0, %v5244_v24, 0.0  ;;  %v2475_v44 = vsel %vm677_vm0, %v5249_v51, 0.0 }
 0x78e   : > { %2470 = vadd.xlane.f32.xlu0 %v2469_v11  ;;  %v2478_v20 = vsel %vm677_vm0, %v5257_v27, 0.0  ;;  %v5743_v11 = vld [vmem:[#allocation12_spill] sm:$0xff] }
 0x78f   : > { %v3980_v28 = vpop.f32.mrb[84].mxu1  ;;  %v2472_v42 = vsel %vm677_vm0, %v5252_v55, 0.0 }
 0x790   : > { %2473 = vadd.xlane.f32.xlu1 %v2472_v42  ;;  %v2406_v0 = vpop.f32.mrb[85].mxu1  ;;  %v2415_v63 = vadd.f32 %v3980_v28, %v5239_v60  ;;  %v5744_v42 = vld [vmem:[#allocation14_spill] sm:$0xff] }
 0x791   : > { %v2407_v52 = vadd.f32 %v2406_v0, %v5239_v60  ;;  %v3981_v59 = vpop.f32.mrb[86].mxu1 }
 0x792   : > { %2476 = vadd.xlane.f32.xlu0 %v2475_v44  ;;  %v2409_v9 = vpop.f32.mrb[87].mxu1  ;;  %v2418_v53 = vadd.f32 %v3981_v59, %v5239_v60  ;;  %v5273_v12 = vadd.f32 %v2415_v63, %v5734_v22  ;;  %v4122_v59 = vld [vmem:[%s4614_s8 + $0x60] sm:$0xff]  }
 0x793   : > { %v5266_v30 = vadd.f32 %v2407_v52, %v5733_v18  ;;  %v2410_v21 = vadd.f32 %v2409_v9, %v5239_v60  ;;  %3990 = vmatprep.subr.bf16.mxu0 %v4122_v59 }
 0x794   : > { %2479 = vadd.xlane.f32.xlu1 %v2478_v20  ;;  %v5281_v5 = vadd.f32 %v2418_v53, %v5736_v57  ;;  %v2487_v2 = vsel %vm677_vm0, %v5273_v12, 0.0  ;;  %3991 = vmatpush3.bf16.msra.mxu0 %v4122_v59 }
 0x795   : > { %v5276_v7 = vadd.f32 %v2410_v21, %v5735_v8  ;;  %v2481_v49 = vsel %vm677_vm0, %v5266_v30, 0.0 }
 0x796   : > { %2482 = vadd.xlane.f32.xlu0 %v2481_v49  ;;  %v2490_v48 = vsel %vm677_vm0, %v5281_v5, 0.0 }
 0x797   : > { %v3984_v16 = vpop.f32.mrb[88].mxu1  ;;  %v2484_v1 = vsel %vm677_vm0, %v5276_v7, 0.0 }
 0x798   : > { %2485 = vadd.xlane.f32.xlu1 %v2484_v1  ;;  %v2422_v29 = vpop.f32.mrb[89].mxu1  ;;  %v2431_v15 = vadd.f32 %v3984_v16, %v5239_v60 }
 0x799   : > { %v2423_v43 = vadd.f32 %v2422_v29, %v5239_v60  ;;  %v3985_v32 = vpop.f32.mrb[90].mxu1 }
 0x79a   : > { %2488 = vadd.xlane.f32.xlu0 %v2487_v2  ;;  %v2425_v50 = vpop.f32.mrb[91].mxu1  ;;  %v2434_v4 = vadd.f32 %v3985_v32, %v5239_v60  ;;  %v5297_v10 = vadd.f32 %v2431_v15, %v5738_v35 }
 0x79b   : > { %v5290_v6 = vadd.f32 %v2423_v43, %v5737_v41  ;;  %v2426_v47 = vadd.f32 %v2425_v50, %v5239_v60 }
 0x79c   : > { %2491 = vadd.xlane.f32.xlu1 %v2490_v48  ;;  %v5305_v37 = vadd.f32 %v2434_v4, %v5740_v25  ;;  %v2499_v39 = vsel %vm677_vm0, %v5297_v10, 0.0 }
 0x79d   : > { %v5300_v38 = vadd.f32 %v2426_v47, %v5739_v17  ;;  %v2493_v40 = vsel %vm677_vm0, %v5290_v6, 0.0 }
 0x79e   : > { %2494 = vadd.xlane.f32.xlu0 %v2493_v40  ;;  %v2502_v54 = vsel %vm677_vm0, %v5305_v37, 0.0 }
 0x79f   : > { %v3988_v31 = vpop.f32.mrb[92].mxu1  ;;  %v2496_v34 = vsel %vm677_vm0, %v5300_v38, 0.0 }
 0x7a0   : > { %2497 = vadd.xlane.f32.xlu1 %v2496_v34  ;;  %v2438_v19 = vpop.f32.mrb[93].mxu1  ;;  %v2447_v58 = vadd.f32 %v3988_v31, %v5239_v60 }
 0x7a1   : > { %v2439_v14 = vadd.f32 %v2438_v19, %v5239_v60  ;;  %v3989_v3 = vpop.f32.mrb[94].mxu1 }
 0x7a2   : > { %2500 = vadd.xlane.f32.xlu0 %v2499_v39  ;;  %v2441_v26 = vpop.f32.mrb[95].mxu1  ;;  %v2450_v46 = vadd.f32 %v3989_v3, %v5239_v60  ;;  %v5321_v36 = vadd.f32 %v2447_v58, %v5742_v56 }
 0x7a3   : > { %v5314_v45 = vadd.f32 %v2439_v14, %v5741_v13  ;;  %v2442_v62 = vadd.f32 %v2441_v26, %v5239_v60 }
 0x7a4   : > { %2503 = vadd.xlane.f32.xlu1 %v2502_v54  ;;  %v5329_v0 = vadd.f32 %v2450_v46, %v5744_v42  ;;  %v2511_v63 = vsel %vm677_vm0, %v5321_v36, 0.0 }
 0x7a5   : > { %v5324_v61 = vadd.f32 %v2442_v62, %v5743_v11  ;;  %v2505_v28 = vsel %vm677_vm0, %v5314_v45, 0.0 }
 0x7a6   : > { %2506 = vadd.xlane.f32.xlu0 %v2505_v28  ;;  %v2514_v52 = vsel %vm677_vm0, %v5329_v0, 0.0 }
 0x7a7   : > { %v2508_v60 = vsel %vm677_vm0, %v5324_v61, 0.0 }
 0x7a8   : > { %2509 = vadd.xlane.f32.xlu1 %v2508_v60 }
 0x7aa   : > { %2512 = vadd.xlane.f32.xlu0 %v2511_v63 }
 0x7ac   : > { %2515 = vadd.xlane.f32.xlu1 %v2514_v52 }
 0x81b   : > { %v2471_v44 = vpop.xlane.xlu0 %2470 }
 0x81c   : > { %v2517_v9 = vmul.f32 0.03125, %v2471_v44 }
 0x81d   : > { %v2474_v18 = vpop.xlane.xlu1 %2473 }
 0x81e   : > { %v5339_v53 = vsub.f32 %v5244_v24, %v2517_v9  ;;  %v2518_v21 = vmul.f32 0.03125, %v2474_v18 }
 0x81f   : > { %v2477_v20 = vpop.xlane.xlu0 %2476 }
 0x820   : > { %v5342_v22 = vsub.f32 %v5252_v55, %v2518_v21  ;;  %v2519_v8 = vmul.f32 0.03125, %v2477_v20  ;;  %v2549_v49 = vmul.f32 %v5339_v53, %v5339_v53 }
 0x821   : > { %v2480_v57 = vpop.xlane.xlu1 %2479 }
 0x822   : > { %v5347_v16 = vsub.f32 %v5249_v51, %v2519_v8  ;;  %v2520_v1 = vmul.f32 0.03125, %v2480_v57  ;;  %v2565_v29 = vsel %vm677_vm0, %v2549_v49, 0.0  ;;  %v2550_v15 = vmul.f32 %v5342_v22, %v5342_v22 }
 0x823   : > { %2566 = vadd.xlane.f32.xlu0 %v2565_v29  ;;  %v2483_v43 = vpop.xlane.xlu0 %2482 }
 0x824   : > { %v5353_v32 = vsub.f32 %v5257_v27, %v2520_v1  ;;  %v2521_v2 = vmul.f32 0.03125, %v2483_v43  ;;  %v2568_v50 = vsel %vm677_vm0, %v2550_v15, 0.0  ;;  %v2551_v41 = vmul.f32 %v5347_v16, %v5347_v16 }
 0x825   : > { %v2486_v4 = vpop.xlane.xlu1 %2485  ;;  %2569 = vadd.xlane.f32.xlu1 %v2568_v50 }
 0x826   : > { %v5359_v47 = vsub.f32 %v5266_v30, %v2521_v2  ;;  %v2522_v48 = vmul.f32 0.03125, %v2486_v4  ;;  %v2571_v35 = vsel %vm677_vm0, %v2551_v41, 0.0  ;;  %v2552_v17 = vmul.f32 %v5353_v32, %v5353_v32 }
 0x827   : > { %2572 = vadd.xlane.f32.xlu0 %v2571_v35  ;;  %v2489_v40 = vpop.xlane.xlu0 %2488 }
 0x828   : > { %v5365_v25 = vsub.f32 %v5276_v7, %v2522_v48  ;;  %v2523_v31 = vmul.f32 0.03125, %v2489_v40  ;;  %v2574_v34 = vsel %vm677_vm0, %v2552_v17, 0.0  ;;  %v2553_v19 = vmul.f32 %v5359_v47, %v5359_v47 }
 0x829   : > { %v2492_v58 = vpop.xlane.xlu1 %2491  ;;  %2575 = vadd.xlane.f32.xlu1 %v2574_v34 }
 0x82a   : > { %v5371_v14 = vsub.f32 %v5273_v12, %v2523_v31  ;;  %v2524_v3 = vmul.f32 0.03125, %v2492_v58  ;;  %v2577_v39 = vsel %vm677_vm0, %v2553_v19, 0.0  ;;  %v2554_v26 = vmul.f32 %v5365_v25, %v5365_v25 }
 0x82b   : > { %2578 = vadd.xlane.f32.xlu0 %v2577_v39  ;;  %v2495_v13 = vpop.xlane.xlu0 %2494 }
 0x82c   : > { %v5377_v46 = vsub.f32 %v5281_v5, %v2524_v3  ;;  %v2525_v62 = vmul.f32 0.03125, %v2495_v13  ;;  %v2580_v54 = vsel %vm677_vm0, %v2554_v26, 0.0  ;;  %v2555_v56 = vmul.f32 %v5371_v14, %v5371_v14 }
 0x82d   : > { %v2498_v11 = vpop.xlane.xlu1 %2497  ;;  %2581 = vadd.xlane.f32.xlu1 %v2580_v54 }
 0x82e   : > { %v5383_v28 = vsub.f32 %v5290_v6, %v2525_v62  ;;  %v2526_v42 = vmul.f32 0.03125, %v2498_v11  ;;  %v2583_v60 = vsel %vm677_vm0, %v2555_v56, 0.0  ;;  %v2556_v63 = vmul.f32 %v5377_v46, %v5377_v46 }
 0x82f   : > { %2584 = vadd.xlane.f32.xlu0 %v2583_v60  ;;  %v2501_v52 = vpop.xlane.xlu0 %2500 }
 0x830   : > { %v5389_v59 = vsub.f32 %v5300_v38, %v2526_v42  ;;  %v2527_v44 = vmul.f32 0.03125, %v2501_v52  ;;  %v2586_v9 = vsel %vm677_vm0, %v2556_v63, 0.0  ;;  %v2557_v18 = vmul.f32 %v5383_v28, %v5383_v28  ;;  %v4123_v63 = vld [vmem:[%s4614_s8 + $0x68] sm:$0xff]  }
 0x831   : > { %v2504_v21 = vpop.xlane.xlu1 %2503  ;;  %2587 = vadd.xlane.f32.xlu1 %v2586_v9  ;;  %3992 = vmatprep.subr.bf16.mxu0 %v4123_v63 }
 0x832   : > { %v5395_v20 = vsub.f32 %v5297_v10, %v2527_v44  ;;  %v2528_v8 = vmul.f32 0.03125, %v2504_v21  ;;  %v2589_v49 = vsel %vm677_vm0, %v2557_v18, 0.0  ;;  %v2558_v57 = vmul.f32 %v5389_v59, %v5389_v59  ;;  %3993 = vmatpush3.bf16.msra.mxu0 %v4123_v63 }
 0x833   : > { %2590 = vadd.xlane.f32.xlu0 %v2589_v49  ;;  %v2507_v1 = vpop.xlane.xlu0 %2506 }
 0x834   : > { %v5401_v29 = vsub.f32 %v5305_v37, %v2528_v8  ;;  %v2529_v15 = vmul.f32 0.03125, %v2507_v1  ;;  %v2592_v43 = vsel %vm677_vm0, %v2558_v57, 0.0  ;;  %v2559_v2 = vmul.f32 %v5395_v20, %v5395_v20 }
 0x835   : > { %2593 = vadd.xlane.f32.xlu1 %v2592_v43  ;;  %v2510_v50 = vpop.xlane.xlu1 %2509 }
 0x836   : > { %v5407_v41 = vsub.f32 %v5314_v45, %v2529_v15  ;;  %v2530_v4 = vmul.f32 0.03125, %v2510_v50  ;;  %v2595_v48 = vsel %vm677_vm0, %v2559_v2, 0.0  ;;  %v2560_v35 = vmul.f32 %v5401_v29, %v5401_v29 }
 0x837   : > { %2596 = vadd.xlane.f32.xlu0 %v2595_v48  ;;  %v2513_v17 = vpop.xlane.xlu0 %2512  ;;  %v2679_v48 = vsub.s32 4, %v4448_v33 }
 0x838   : > { %v5413_v40 = vsub.f32 %v5324_v61, %v2530_v4  ;;  %v2531_v31 = vmul.f32 0.03125, %v2513_v17  ;;  %v2598_v34 = vsel %vm677_vm0, %v2560_v35, 0.0  ;;  %v2561_v19 = vmul.f32 %v5407_v41, %v5407_v41 }
 0x839   : > { %2599 = vadd.xlane.f32.xlu1 %v2598_v34  ;;  %v2516_v58 = vpop.xlane.xlu1 %2515 }
 0x83a   : > { %v5419_v3 = vsub.f32 %v5321_v36, %v2531_v31  ;;  %v2532_v39 = vmul.f32 0.03125, %v2516_v58  ;;  %v2601_v26 = vsel %vm677_vm0, %v2561_v19, 0.0  ;;  %v2562_v13 = vmul.f32 %v5413_v40, %v5413_v40 }
 0x83b   : > { %2602 = vadd.xlane.f32.xlu0 %v2601_v26  ;;  %v2699_v26 = vsub.s32 5, %v4448_v33 }
 0x83c   : > { %v5425_v62 = vsub.f32 %v5329_v0, %v2532_v39  ;;  %v2604_v54 = vsel %vm677_vm0, %v2562_v13, 0.0  ;;  %v2563_v56 = vmul.f32 %v5419_v3, %v5419_v3  ;;  %v5437_v39 = vrot.slane %v5236_v23, %v2679_v48 }
 0x83d   : > { %2605 = vadd.xlane.f32.xlu1 %v2604_v54 }
 0x83e   : > { %v2607_v11 = vsel %vm677_vm0, %v2563_v56, 0.0  ;;  %v2564_v42 = vmul.f32 %v5425_v62, %v5425_v62 }
 0x83f   : > { %2608 = vadd.xlane.f32.xlu0 %v2607_v11 }
 0x840   : > { %v2610_v60 = vsel %vm677_vm0, %v2564_v42, 0.0 }
 0x841   : > { %2611 = vadd.xlane.f32.xlu1 %v2610_v60 }
 0x8b0   : > { %v2567_v52 = vpop.xlane.xlu0 %2566 }
 0x8b1   : > { %v2613_v44 = vmul.f32 0.03125, %v2567_v52 }
 0x8b2   : > { %v2570_v9 = vpop.xlane.xlu1 %2569 }
 0x8b3   : > { %v2629_v18 = vadd.f32 1e-05, %v2613_v44  ;;  %v2614_v21 = vmul.f32 0.03125, %v2570_v9 }
 0x8b4   : > { %v2573_v8 = vpop.xlane.xlu0 %2572 }
 0x8b5   : > { %4286 = vrsqrt.f32 %v2629_v18  ;;  %v2630_v49 = vadd.f32 1e-05, %v2614_v21  ;;  %v2615_v57 = vmul.f32 0.03125, %v2573_v8  ;;  %v5443_v18 = vrot.slane %v5236_v23, %v2699_v26 }
 0x8b6   : > { %v2576_v1 = vpop.xlane.xlu1 %2575 }
 0x8b7   : > { %4288 = vrsqrt.f32 %v2630_v49  ;;  %v2631_v15 = vadd.f32 1e-05, %v2615_v57  ;;  %v2616_v43 = vmul.f32 0.03125, %v2576_v1 }
 0x8b8   : > { %v2579_v2 = vpop.xlane.xlu0 %2578 }
 0x8b9   : > { %4290 = vrsqrt.f32 %v2631_v15  ;;  %v2632_v50 = vadd.f32 1e-05, %v2616_v43  ;;  %v2617_v4 = vmul.f32 0.03125, %v2579_v2 }
 0x8ba   : > { %v2582_v35 = vpop.xlane.xlu1 %2581 }
 0x8bb   : > { %4292 = vrsqrt.f32 %v2632_v50  ;;  %v2633_v17 = vadd.f32 1e-05, %v2617_v4  ;;  %v2618_v31 = vmul.f32 0.03125, %v2582_v35 }
 0x8bc   : > { %v2585_v34 = vpop.xlane.xlu0 %2584 }
 0x8bd   : > { %4294 = vrsqrt.f32 %v2633_v17  ;;  %v2634_v19 = vadd.f32 1e-05, %v2618_v31  ;;  %v2619_v58 = vmul.f32 0.03125, %v2585_v34 }
 0x8be   : > { %v2588_v13 = vpop.xlane.xlu1 %2587 }
 0x8bf   : > { %v4287_v54 = vpop.eup %4286  ;;  %4296 = vrsqrt.f32 %v2634_v19  ;;  %v2635_v56 = vadd.f32 1e-05, %v2619_v58  ;;  %v2620_v11 = vmul.f32 0.03125, %v2588_v13 }
 0x8c0   : > { %v2661_v42 = vmul.f32 %v4287_v54, %v5339_v53  ;;  %v2591_v60 = vpop.xlane.xlu0 %2590 }
 0x8c1   : > { %v4289_v63 = vpop.eup %4288  ;;  %4298 = vrsqrt.f32 %v2635_v56  ;;  %v2636_v52 = vadd.f32 1e-05, %v2620_v11  ;;  %v2621_v44 = vmul.f32 0.03125, %v2591_v60 }
 0x8c2   : > { %v2662_v9 = vmul.f32 %v4289_v63, %v5342_v22  ;;  %v2594_v21 = vpop.xlane.xlu1 %2593  ;;  %v2681_v8 = vmul.f32 %v5437_v39, %v2661_v42 }
 0x8c3   : > { %v4291_v49 = vpop.eup %4290  ;;  %4300 = vrsqrt.f32 %v2636_v52  ;;  %v2637_v57 = vadd.f32 1e-05, %v2621_v44  ;;  %v2622_v1 = vmul.f32 0.03125, %v2594_v21 }
 0x8c4   : > { %v2663_v15 = vmul.f32 %v4291_v49, %v5347_v16  ;;  %v2597_v53 = vpop.xlane.xlu0 %2596  ;;  %v2682_v43 = vmul.f32 %v5437_v39, %v2662_v9  ;;  %v2701_v17 = vadd.f32 %v5443_v18, %v2681_v8 }
 0x8c5   : > { %v4293_v2 = vpop.eup %4292  ;;  %4302 = vrsqrt.f32 %v2637_v57  ;;  %v2638_v50 = vadd.f32 1e-05, %v2622_v1  ;;  %v2623_v4 = vmul.f32 0.03125, %v2597_v53 }
 0x8c6   : > { %v2683_v22 = vmul.f32 %v5437_v39, %v2663_v15  ;;  %v2664_v48 = vmul.f32 %v4293_v2, %v5353_v32  ;;  %v2600_v35 = vpop.xlane.xlu1 %2599  ;;  %v2702_v31 = vadd.f32 %v5443_v18, %v2682_v43 }
 0x8c7   : > { %v4295_v34 = vpop.eup %4294  ;;  %4304 = vrsqrt.f32 %v2638_v50  ;;  %v2639_v19 = vadd.f32 1e-05, %v2623_v4  ;;  %v2624_v16 = vmul.f32 0.03125, %v2600_v35 }
 0x8c8   : > { %v2684_v58 = vmul.f32 %v5437_v39, %v2664_v48  ;;  %v2665_v26 = vmul.f32 %v4295_v34, %v5359_v47  ;;  %v2603_v13 = vpop.xlane.xlu0 %2602  ;;  %v2717_v54 = vpack.c.bf16 %v2702_v31, %v2701_v17  ;;  %v2703_v32 = vadd.f32 %v5443_v18, %v2683_v22 }
 0x8c9   : > { %v4297_v56 = vpop.eup %4296  ;;  %4306 = vrsqrt.f32 %v2639_v19  ;;  %v2640_v11 = vadd.f32 1e-05, %v2624_v16  ;;  %v2625_v42 = vmul.f32 0.03125, %v2603_v13 }
 0x8ca   : > { %v2704_v60 = vadd.f32 %v5443_v18, %v2684_v58  ;;  %v2666_v63 = vmul.f32 %v4297_v56, %v5365_v25  ;;  %v2606_v52 = vpop.xlane.xlu1 %2605  ;;  %3994 = vmatprep.mubr.msk.bf16.mxu0 %vm677_vm0, %v2717_v54  ;;  %v2685_v44 = vmul.f32 %v5437_v39, %v2665_v26 }
 0x8cb   : > { %v4299_v9 = vpop.eup %4298  ;;  %4308 = vrsqrt.f32 %v2640_v11  ;;  %v2641_v47 = vadd.f32 1e-05, %v2625_v42  ;;  %v2626_v21 = vmul.f32 0.03125, %v2606_v52 }
 0x8cc   : > { %v2667_v8 = vmul.f32 %v4299_v9, %v5371_v14  ;;  %v2609_v49 = vpop.xlane.xlu0 %2608  ;;  %v2718_v57 = vpack.c.bf16 %v2704_v60, %v2703_v32  ;;  %v2686_v1 = vmul.f32 %v5437_v39, %v2666_v63  ;;  %v2705_v50 = vadd.f32 %v5443_v18, %v2685_v44 }
 0x8cd   : > { %v4301_v15 = vpop.eup %4300  ;;  %4310 = vrsqrt.f32 %v2641_v47  ;;  %v2642_v53 = vadd.f32 1e-05, %v2626_v21  ;;  %v2627_v43 = vmul.f32 0.03125, %v2609_v49 }
 0x8ce   : > { %v2668_v25 = vmul.f32 %v4301_v15, %v5377_v46  ;;  %v2612_v2 = vpop.xlane.xlu1 %2611  ;;  %3995 = vmatmul.mubr.msk.bf16.vlgmr.msra.gmra.mrb[80].mxu0 %vm677_vm0, %v2718_v57  ;;  %v2706_v4 = vadd.f32 %v5443_v18, %v2686_v1  ;;  %v2687_v22 = vmul.f32 %v5437_v39, %v2667_v8 }
 0x8cf   : > { %v4303_v14 = vpop.eup %4302  ;;  %4312 = vrsqrt.f32 %v2642_v53  ;;  %v2643_v48 = vadd.f32 1e-05, %v2627_v43  ;;  %v2628_v35 = vmul.f32 0.03125, %v2612_v2 }
 0x8d0   : > { %v2669_v17 = vmul.f32 %v4303_v14, %v5383_v28  ;;  %v2719_v31 = vpack.c.bf16 %v2706_v4, %v2705_v50  ;;  %v2688_v34 = vmul.f32 %v5437_v39, %v2668_v25  ;;  %v2707_v58 = vadd.f32 %v5443_v18, %v2687_v22 }
 0x8d1   : > { %v4305_v19 = vpop.eup %4304  ;;  %4314 = vrsqrt.f32 %v2643_v48  ;;  %v2644_v46 = vadd.f32 1e-05, %v2628_v35  ;;  %v4125_v48 = vld [vmem:[%s4614_s8 + $0x78] sm:$0xff]   ;;  %v2727_v35 = vsub.s32 6, %v4448_v33 }
 0x8d2   : > { %v2670_v16 = vmul.f32 %v4305_v19, %v5389_v59  ;;  %3998 = vmatprep.mubr.msk.bf16.mxu0 %vm677_vm0, %v2719_v31  ;;  %v2708_v26 = vadd.f32 %v5443_v18, %v2688_v34  ;;  %v2689_v13 = vmul.f32 %v5437_v39, %v2669_v17 }
 0x8d3   : > { %v4307_v54 = vpop.eup %4306  ;;  %4316 = vrsqrt.f32 %v2644_v46  ;;  %v5503_v17 = vrot.slane %v5236_v23, %v2727_v35 }
 0x8d4   : > { %v2671_v28 = vmul.f32 %v4307_v54, %v5395_v20  ;;  %v2720_v56 = vpack.c.bf16 %v2708_v26, %v2707_v58  ;;  %v2690_v11 = vmul.f32 %v5437_v39, %v2670_v16  ;;  %v2709_v59 = vadd.f32 %v5443_v18, %v2689_v13 }
 0x8d5   : > { %v4309_v42 = vpop.eup %4308 }
 0x8d6   : > { %v2672_v32 = vmul.f32 %v4309_v42, %v5401_v29  ;;  %3999 = vmatmul.mubr.msk.bf16.gmra.mrb[84].mxu0 %vm677_vm0, %v2720_v56  ;;  %v2710_v60 = vadd.f32 %v5443_v18, %v2690_v11  ;;  %v2691_v63 = vmul.f32 %v5437_v39, %v2671_v28 }
 0x8d7   : > { %v4311_v52 = vpop.eup %4310 }
 0x8d8   : > { %v2673_v44 = vmul.f32 %v4311_v52, %v5407_v41  ;;  %v2721_v9 = vpack.c.bf16 %v2710_v60, %v2709_v59  ;;  %v2692_v20 = vmul.f32 %v5437_v39, %v2672_v32  ;;  %v2711_v29 = vadd.f32 %v5443_v18, %v2691_v63 }
 0x8d9   : > { %v4313_v47 = vpop.eup %4312 }
 0x8da   : > { %v2674_v21 = vmul.f32 %v4313_v47, %v5413_v40  ;;  %4002 = vmatprep.mubr.msk.bf16.mxu0 %vm677_vm0, %v2721_v9  ;;  %v2712_v8 = vadd.f32 %v5443_v18, %v2692_v20  ;;  %v2693_v49 = vmul.f32 %v5437_v39, %v2673_v44 }
 0x8db   : > { %v4315_v57 = vpop.eup %4314 }
 0x8dc   : > { %v2675_v1 = vmul.f32 %v4315_v57, %v5419_v3  ;;  %v2722_v15 = vpack.c.bf16 %v2712_v8, %v2711_v29  ;;  %v2694_v41 = vmul.f32 %v5437_v39, %v2674_v21  ;;  %v2713_v40 = vadd.f32 %v5443_v18, %v2693_v49 }
 0x8dd   : > { %v4317_v53 = vpop.eup %4316 }
 0x8de   : > { %v2676_v43 = vmul.f32 %v4317_v53, %v5425_v62  ;;  %4003 = vmatmul.mubr.msk.bf16.gmra.mrb[88].mxu0 %vm677_vm0, %v2722_v15  ;;  %v2714_v25 = vadd.f32 %v5443_v18, %v2694_v41  ;;  %v2695_v2 = vmul.f32 %v5437_v39, %v2675_v1  ;;  %v4124_v62 = vld [vmem:[%s4614_s8 + $0x70] sm:$0xff]  }
 0x8df   : > { %4010 = vmatprep.subr.bf16.mxu1 %v4124_v62 }
 0x8e0   : > { %v2723_v50 = vpack.c.bf16 %v2714_v25, %v2713_v40  ;;  %v2696_v4 = vmul.f32 %v5437_v39, %v2676_v43  ;;  %v2715_v3 = vadd.f32 %v5443_v18, %v2695_v2  ;;  %4011 = vmatpush3.bf16.msra.mxu1 %v4124_v62 }
 0x8e1   : > { %4012 = vmatprep.subr.bf16.mxu1 %v4125_v48 }
 0x8e2   : > { %4006 = vmatprep.mubr.msk.bf16.mxu0 %vm677_vm0, %v2723_v50  ;;  %v2716_v22 = vadd.f32 %v5443_v18, %v2696_v4 }
 0x8e4   : > { %v2724_v14 = vpack.c.bf16 %v2716_v22, %v2715_v3  ;;  %4013 = vmatpush3.bf16.msra.mxu1 %v4125_v48 }
 0x8e6   : > { %4007 = vmatmul.mubr.msk.bf16.gmra.mrb[92].mxu0 %vm677_vm0, %v2724_v14 }
 0x9a1   : > { %v3996_v39 = vpop.f32.mrb[80].mxu0 }
 0x9a2   : > { %v2808_v31 = vadd.f32 %v3996_v39, %v5503_v17  ;;  %v2799_v34 = vpop.f32.mrb[81].mxu0 }
 0x9a3   : > { %v2800_v18 = vadd.f32 %v2799_v34, %v5503_v17  ;;  %v3997_v19 = vpop.f32.mrb[82].mxu0 }
 0x9a4   : > { %v2880_v46 = vmul.f32 0.044715, %v2808_v31  ;;  %v2811_v16 = vadd.f32 %v3997_v19, %v5503_v17  ;;  %v2802_v58 = vpop.f32.mrb[83].mxu0  ;;  %v5509_v63 = vmul.f32 0.5, %v2808_v31 }
 0x9a5   : > { %v2878_v26 = vmul.f32 0.044715, %v2800_v18  ;;  %v2803_v13 = vadd.f32 %v2802_v58, %v5503_v17  ;;  %v5515_v49 = vmul.f32 0.5, %v2800_v18 }
 0x9a6   : > { %v2896_v54 = vmul.f32 %v2880_v46, %v2808_v31  ;;  %v2881_v28 = vmul.f32 0.044715, %v2811_v16  ;;  %v5524_v48 = vmul.f32 0.5, %v2811_v16 }
 0x9a7   : > { %v2894_v56 = vmul.f32 %v2878_v26, %v2800_v18  ;;  %v2879_v11 = vmul.f32 0.044715, %v2803_v13  ;;  %v5528_v19 = vmul.f32 0.5, %v2803_v13 }
 0x9a8   : > { %v2912_v23 = vmul.f32 %v2896_v54, %v2808_v31  ;;  %v2897_v42 = vmul.f32 %v2881_v28, %v2811_v16 }
 0x9a9   : > { %v2910_v32 = vmul.f32 %v2894_v56, %v2800_v18  ;;  %v2895_v59 = vmul.f32 %v2879_v11, %v2803_v13  ;;  %v4000_v60 = vpop.f32.mrb[84].mxu0 }
 0x9aa   : > { %v2928_v52 = vadd.f32 %v2912_v23, %v2808_v31  ;;  %v2913_v44 = vmul.f32 %v2897_v42, %v2811_v16  ;;  %v5512_v9 = vadd.f32 %v4000_v60, %v5503_v17  ;;  %v2815_v20 = vpop.f32.mrb[85].mxu0 }
 0x9ab   : > { %v2926_v47 = vadd.f32 %v2910_v32, %v2800_v18  ;;  %v2911_v21 = vmul.f32 %v2895_v59, %v2803_v13  ;;  %v2816_v29 = vadd.f32 %v2815_v20, %v5503_v17  ;;  %v4001_v8 = vpop.f32.mrb[86].mxu0 }
 0x9ac   : > { %v2944_v57 = vmul.f32 0.7978846, %v2928_v52  ;;  %v2929_v1 = vadd.f32 %v2913_v44, %v2811_v16  ;;  %v2884_v15 = vmul.f32 0.044715, %v5512_v9  ;;  %v5519_v41 = vadd.f32 %v4001_v8, %v5503_v17  ;;  %v2818_v53 = vpop.f32.mrb[87].mxu0 }
 0x9ad   : > { %v2942_v43 = vmul.f32 0.7978846, %v2926_v47  ;;  %v2927_v40 = vadd.f32 %v2911_v21, %v2803_v13  ;;  %v2882_v25 = vmul.f32 0.044715, %v2816_v29  ;;  %v2819_v2 = vadd.f32 %v2818_v53, %v5503_v17 }
 0x9ae   : > { %4318 = vtanh.f32 %v2944_v57  ;;  %v2945_v50 = vmul.f32 0.7978846, %v2929_v1  ;;  %v2900_v4 = vmul.f32 %v2884_v15, %v5512_v9  ;;  %v2885_v3 = vmul.f32 0.044715, %v5519_v41 }
 0x9af   : > { %4320 = vtanh.f32 %v2942_v43  ;;  %v2943_v22 = vmul.f32 0.7978846, %v2927_v40  ;;  %v2898_v14 = vmul.f32 %v2882_v25, %v2816_v29  ;;  %v2883_v62 = vmul.f32 0.044715, %v2819_v2 }
 0x9b0   : > { %4322 = vtanh.f32 %v2945_v50  ;;  %v2916_v35 = vmul.f32 %v2900_v4, %v5512_v9  ;;  %v2901_v39 = vmul.f32 %v2885_v3, %v5519_v41  ;;  %v5530_v46 = vmul.f32 0.5, %v2816_v29 }
 0x9b1   : > { %v2914_v31 = vmul.f32 %v2898_v14, %v2816_v29  ;;  %v2899_v34 = vmul.f32 %v2883_v62, %v2819_v2  ;;  %v4004_v18 = vpop.f32.mrb[88].mxu0  ;;  %4324 = vtanh.f32 %v2943_v22  ;;  %v5540_v42 = vmul.f32 0.5, %v2819_v2 }
 0x9b2   : > { %v2932_v58 = vadd.f32 %v2916_v35, %v5512_v9  ;;  %v2917_v26 = vmul.f32 %v2901_v39, %v5519_v41  ;;  %v5535_v16 = vadd.f32 %v4004_v18, %v5503_v17  ;;  %v2831_v54 = vpop.f32.mrb[89].mxu0 }
 0x9b3   : > { %v2930_v28 = vadd.f32 %v2914_v31, %v2816_v29  ;;  %v2915_v56 = vmul.f32 %v2899_v34, %v2819_v2  ;;  %v5538_v11 = vadd.f32 %v2831_v54, %v5503_v17  ;;  %v4005_v23 = vpop.f32.mrb[90].mxu0 }
 0x9b4   : > { %v2948_v13 = vmul.f32 0.7978846, %v2932_v58  ;;  %v2933_v32 = vadd.f32 %v2917_v26, %v5519_v41  ;;  %v2888_v59 = vmul.f32 0.044715, %v5535_v16  ;;  %v5545_v60 = vadd.f32 %v4005_v23, %v5503_v17  ;;  %v2834_v52 = vpop.f32.mrb[91].mxu0 }
 0x9b5   : > { %v2946_v44 = vmul.f32 0.7978846, %v2930_v28  ;;  %v2931_v20 = vadd.f32 %v2915_v56, %v2819_v2  ;;  %v2886_v47 = vmul.f32 0.044715, %v5538_v11  ;;  %v5549_v21 = vadd.f32 %v2834_v52, %v5503_v17 }
 0x9b6   : > { %4326 = vtanh.f32 %v2948_v13  ;;  %v2949_v29 = vmul.f32 0.7978846, %v2933_v32  ;;  %v2904_v8 = vmul.f32 %v2888_v59, %v5535_v16  ;;  %v2889_v57 = vmul.f32 0.044715, %v5545_v60 }
 0x9b7   : > { %4328 = vtanh.f32 %v2946_v44  ;;  %v2947_v1 = vmul.f32 0.7978846, %v2931_v20  ;;  %v2902_v15 = vmul.f32 %v2886_v47, %v5538_v11  ;;  %v2887_v53 = vmul.f32 0.044715, %v5549_v21 }
 0x9b8   : > { %v4319_v43 = vpop.eup %4318  ;;  %4330 = vtanh.f32 %v2949_v29  ;;  %v2920_v40 = vmul.f32 %v2904_v8, %v5535_v16  ;;  %v2905_v25 = vmul.f32 %v2889_v57, %v5545_v60  ;;  %v5558_v2 = vmul.f32 0.5, %v5512_v9 }
 0x9b9   : > { %v4321_v50 = vpop.eup %4320  ;;  %v2976_v4 = vadd.f32 1.0, %v4319_v43  ;;  %4332 = vtanh.f32 %v2947_v1  ;;  %v2918_v3 = vmul.f32 %v2902_v15, %v5538_v11  ;;  %v2903_v22 = vmul.f32 %v2887_v53, %v5549_v21  ;;  %v4008_v14 = vpop.f32.mrb[92].mxu0 }
 0x9ba   : > { %v4323_v62 = vpop.eup %4322  ;;  %v2936_v35 = vadd.f32 %v2920_v40, %v5535_v16  ;;  %v2921_v39 = vmul.f32 %v2905_v25, %v5545_v60  ;;  %v5565_v31 = vadd.f32 %v4008_v14, %v5503_v17  ;;  %v2847_v34 = vpop.f32.mrb[93].mxu0  ;;  %v2974_v18 = vadd.f32 1.0, %v4321_v50 }
 0x9bb   : > { %v5568_v9 = vmul.f32 %v2976_v4, %v5509_v63  ;;  %v2977_v58 = vadd.f32 1.0, %v4323_v62  ;;  %v2934_v26 = vadd.f32 %v2918_v3, %v5538_v11  ;;  %v2919_v54 = vmul.f32 %v2903_v22, %v5549_v21  ;;  %v4009_v28 = vpop.f32.mrb[94].mxu0  ;;  %v4325_v56 = vpop.eup %4324 }
 0x9bc   : > { %v2952_v23 = vmul.f32 0.7978846, %v2936_v35  ;;  %v2937_v13 = vadd.f32 %v2921_v39, %v5545_v60  ;;  %v2892_v32 = vmul.f32 0.044715, %v5565_v31  ;;  %v5575_v59 = vadd.f32 %v2847_v34, %v5503_v17  ;;  %v2850_v52 = vpop.f32.mrb[95].mxu0 }
 0x9bd   : > { %v2993_v44 = vmul.f32 %v2977_v58, %v5524_v48  ;;  %v2950_v63 = vmul.f32 0.7978846, %v2934_v26  ;;  %v2935_v20 = vadd.f32 %v2919_v54, %v5549_v21  ;;  %v5580_v47 = vadd.f32 %v4009_v28, %v5503_v17 }
 0x9be   : > { %4334 = vtanh.f32 %v2952_v23  ;;  %v2953_v29 = vmul.f32 0.7978846, %v2937_v13  ;;  %v2908_v8 = vmul.f32 %v2892_v32, %v5565_v31  ;;  %v2890_v57 = vmul.f32 0.044715, %v5575_v59 }
 0x9bf   : > { %v3007_v1 = vpack.c.bf16 %v2993_v44, %v5568_v9  ;;  %4336 = vtanh.f32 %v2950_v63  ;;  %v2951_v15 = vmul.f32 0.7978846, %v2935_v20  ;;  %v2893_v53 = vmul.f32 0.044715, %v5580_v47 }
 0x9c0   : > { %v4327_v43 = vpop.eup %4326  ;;  %4338 = vtanh.f32 %v2953_v29  ;;  %v2924_v48 = vmul.f32 %v2908_v8, %v5565_v31  ;;  %v2906_v40 = vmul.f32 %v2890_v57, %v5575_v59  ;;  %v5589_v25 = vadd.f32 %v2850_v52, %v5503_v17 }
 0x9c1   : > { %v4329_v50 = vpop.eup %4328  ;;  %4340 = vtanh.f32 %v2951_v15  ;;  %v2909_v4 = vmul.f32 %v2893_v53, %v5580_v47  ;;  %v2975_v3 = vadd.f32 1.0, %v4325_v56  ;;  %v2990_v22 = vmul.f32 %v2974_v18, %v5515_v49 }
 0x9c2   : > { %v4331_v14 = vpop.eup %4330  ;;  %v2940_v62 = vadd.f32 %v2924_v48, %v5565_v31  ;;  %v2922_v35 = vmul.f32 %v2906_v40, %v5575_v59  ;;  %v2891_v39 = vmul.f32 0.044715, %v5589_v25  ;;  %v2978_v34 = vadd.f32 1.0, %v4329_v50 }
 0x9c3   : > { %v4333_v9 = vpop.eup %4332  ;;  %v2925_v58 = vmul.f32 %v2909_v4, %v5580_v47  ;;  %v2991_v17 = vmul.f32 %v2975_v3, %v5528_v19  ;;  %v2980_v26 = vadd.f32 1.0, %v4327_v43  ;;  %v2981_v54 = vadd.f32 1.0, %v4331_v14 }
 0x9c4   : > { %v2956_v28 = vmul.f32 0.7978846, %v2940_v62  ;;  %v2938_v56 = vadd.f32 %v2922_v35, %v5575_v59  ;;  %v2907_v49 = vmul.f32 %v2891_v39, %v5589_v25  ;;  %v2979_v18 = vadd.f32 1.0, %v4333_v9 }
 0x9c5   : > { %v2941_v23 = vadd.f32 %v2925_v58, %v5580_v47  ;;  %v3006_v13 = vpack.c.bf16 %v2991_v17, %v2990_v22  ;;  %v2994_v32 = vmul.f32 %v2978_v34, %v5530_v46  ;;  %v2869_v52 = vmul.f32 0.5, %v5519_v41 }
 0x9c6   : > { %4342 = vtanh.f32 %v2956_v28  ;;  %v2954_v44 = vmul.f32 0.7978846, %v2938_v56  ;;  %v2923_v63 = vmul.f32 %v2907_v49, %v5589_v25  ;;  %v2995_v19 = vmul.f32 %v2979_v18, %v5540_v42 }
 0x9c7   : > { %v2957_v20 = vmul.f32 0.7978846, %v2941_v23  ;;  %4014 = vmatprep.mubr.msk.bf16.mxu1 %vm677_vm0, %v3006_v13  ;;  %v2996_v29 = vmul.f32 %v2980_v26, %v5558_v2  ;;  %v2997_v8 = vmul.f32 %v2981_v54, %v2869_v52  ;;  %v2872_v2 = vmul.f32 0.5, %v5535_v16 }
 0x9c8   : > { %v4335_v57 = vpop.eup %4334  ;;  %4344 = vtanh.f32 %v2954_v44  ;;  %v2939_v15 = vadd.f32 %v2923_v63, %v5589_v25  ;;  %4015 = vmatmul.mubr.msk.bf16.vlgmr.msra.gmra.mrb[96].mxu1 %vm677_vm0, %v3007_v1  ;;  %v3008_v46 = vpack.c.bf16 %v2995_v19, %v2994_v32  ;;  %v2873_v4 = vmul.f32 0.5, %v5545_v60  ;;  %v4351_v19 = vld [vmem:[%s4453_s30] sm:$0xff] }
 0x9c9   : > { %v4337_v41 = vpop.eup %4336  ;;  %4346 = vtanh.f32 %v2957_v20  ;;  %v3009_v53 = vpack.c.bf16 %v2997_v8, %v2996_v29  ;;  %v2984_v43 = vadd.f32 1.0, %v4335_v57  ;;  %v2870_v22 = vmul.f32 0.5, %v5538_v11 }
 0x9ca   : > { %v4339_v48 = vpop.eup %4338  ;;  %v2955_v40 = vmul.f32 0.7978846, %v2939_v15  ;;  %4018 = vmatprep.mubr.msk.bf16.mxu1 %vm677_vm0, %v3008_v46  ;;  %v2982_v42 = vadd.f32 1.0, %v4337_v41  ;;  %v2871_v1 = vmul.f32 0.5, %v5549_v21  ;;  %v2876_v54 = vmul.f32 0.5, %v5565_v31 }
 0x9cb   : > { %v4341_v50 = vpop.eup %4340  ;;  %v2985_v3 = vadd.f32 1.0, %v4339_v48  ;;  %v3000_v62 = vmul.f32 %v2984_v43, %v2872_v2  ;;  %v2877_v11 = vmul.f32 0.5, %v5580_v47  ;;  %v2874_v23 = vmul.f32 0.5, %v5575_v59 }
 0x9cc   : > { %4348 = vtanh.f32 %v2955_v40  ;;  %v2983_v14 = vadd.f32 1.0, %v4341_v50  ;;  %v2998_v39 = vmul.f32 %v2982_v42, %v2870_v22  ;;  %v2875_v13 = vmul.f32 0.5, %v5589_v25 }
 0x9cd   : > { %v3001_v35 = vmul.f32 %v2985_v3, %v2873_v4  ;;  %v3016_v47 = vsub.s32 7, %v4448_v33 }
 0x9ce   : > { %v2999_v34 = vmul.f32 %v2983_v14, %v2871_v1 }
 0x9cf   : > { %v3011_v9 = vpack.c.bf16 %v3001_v35, %v3000_v62  ;;  %v5625_v20 = vrot.slane %v4351_v19, %v3016_v47 }
 0x9d0   : > { %v4343_v58 = vpop.eup %4342  ;;  %4019 = vmatmul.mubr.msk.bf16.gmra.mrb[100].mxu1 %vm677_vm0, %v3009_v53  ;;  %v3010_v17 = vpack.c.bf16 %v2999_v34, %v2998_v39 }
 0x9d1   : > { %v2988_v16 = vadd.f32 1.0, %v4343_v58 }
 0x9d2   : > { %v4345_v26 = vpop.eup %4344  ;;  %4022 = vmatprep.mubr.msk.bf16.mxu1 %vm677_vm0, %v3010_v17 }
 0x9d3   : > { %v4347_v60 = vpop.eup %4346  ;;  %v2986_v28 = vadd.f32 1.0, %v4345_v26  ;;  %v3004_v49 = vmul.f32 %v2988_v16, %v2876_v54 }
 0x9d4   : > { %v2989_v21 = vadd.f32 1.0, %v4347_v60 }
 0x9d5   : > { %v3002_v44 = vmul.f32 %v2986_v28, %v2874_v23 }
 0x9d6   : > { %v4349_v56 = vpop.eup %4348  ;;  %v3005_v18 = vmul.f32 %v2989_v21, %v2877_v11 }
 0x9d7   : > { %v2987_v32 = vadd.f32 1.0, %v4349_v56 }
 0x9d8   : > { %4023 = vmatmul.mubr.msk.bf16.gmra.mrb[104].mxu1 %vm677_vm0, %v3011_v9  ;;  %v3013_v52 = vpack.c.bf16 %v3005_v18, %v3004_v49 }
 0x9d9   : > { %v3003_v63 = vmul.f32 %v2987_v32, %v2875_v13 }
 0x9db   : > { %v3012_v31 = vpack.c.bf16 %v3003_v63, %v3002_v44 }
 0x9dd   : > { %4026 = vmatprep.mubr.msk.bf16.mxu1 %vm677_vm0, %v3012_v31 }
 0x9e0   : > { %4027 = vmatmul.mubr.msk.bf16.gmra.mrb[108].mxu1 %vm677_vm0, %v3013_v52 }
 0xa9b   : > { %v4016_v29 = vpop.f32.mrb[96].mxu1 }
 0xa9c   : > { %v3097_v59 = vadd.f32 %v4016_v29, %v5625_v20  ;;  %v3088_v25 = vpop.f32.mrb[97].mxu1 }
 0xa9d   : > { %v3089_v8 = vadd.f32 %v3088_v25, %v5625_v20  ;;  %v4017_v57 = vpop.f32.mrb[98].mxu1 }
 0xa9e   : > { %v3153_v15 = vadd.f32 %v3097_v59, %v5249_v51  ;;  %v3100_v46 = vadd.f32 %v4017_v57, %v5625_v20  ;;  %v3091_v41 = vpop.f32.mrb[99].mxu1 }
 0xa9f   : > { %v3151_v33 = vadd.f32 %v3089_v8, %v5244_v24  ;;  %v3092_v53 = vadd.f32 %v3091_v41, %v5625_v20 }
 0xaa0   : > { %v3520_v43 = vpack.c.bf16 %v3153_v15, %v3153_v15  ;;  %v3154_v51 = vadd.f32 %v3100_v46, %v5257_v27 }
 0xaa1   : > { %v3518_v48 = vpack.c.bf16 %v3151_v33, %v3151_v33  ;;  %v3152_v40 = vadd.f32 %v3092_v53, %v5252_v55 }
 0xaa2   : > { %3234 = vst.msk [vmem:[%s5635_s15 + $0x8] sm:$0xf] %vm3231_vm1, %v3520_v43  ;;  %v3521_v42 = vpack.c.bf16 %v3154_v51, %v3154_v51 }
 0xaa3   : > { %3232 = vst.msk [vmem:[%s5635_s15] sm:$0xf] %vm3231_vm1, %v3518_v48  ;;  %v3519_v50 = vpack.c.bf16 %v3152_v40, %v3152_v40  ;;  %v4020_v2 = vpop.f32.mrb[100].mxu1 }
 0xaa4   : > { %3235 = vst.msk [vmem:[%s5635_s15 + $0xc] sm:$0xf] %vm3231_vm1, %v3521_v42  ;;  %v3113_v24 = vadd.f32 %v4020_v2, %v5625_v20  ;;  %v3104_v4 = vpop.f32.mrb[101].mxu1 }
 0xaa5   : > { %3233 = vst.msk [vmem:[%s5635_s15 + $0x4] sm:$0xf] %vm3231_vm1, %v3519_v50  ;;  %v3105_v27 = vadd.f32 %v3104_v4, %v5625_v20  ;;  %v4021_v55 = vpop.f32.mrb[102].mxu1 }
 0xaa6   : > { %v3157_v3 = vadd.f32 %v3113_v24, %v5273_v12  ;;  %v3116_v22 = vadd.f32 %v4021_v55, %v5625_v20  ;;  %v3107_v1 = vpop.f32.mrb[103].mxu1 }
 0xaa7   : > { %v3155_v14 = vadd.f32 %v3105_v27, %v5266_v30  ;;  %v3108_v62 = vadd.f32 %v3107_v1, %v5625_v20 }
 0xaa8   : > { %v3524_v35 = vpack.c.bf16 %v3157_v3, %v3157_v3  ;;  %v3158_v39 = vadd.f32 %v3116_v22, %v5281_v5 }
 0xaa9   : > { %v3522_v34 = vpack.c.bf16 %v3155_v14, %v3155_v14  ;;  %v3156_v9 = vadd.f32 %v3108_v62, %v5276_v7 }
 0xaaa   : > { %3238 = vst.msk [vmem:[%s5635_s15 + $0x18] sm:$0xf] %vm3231_vm1, %v3524_v35  ;;  %v3525_v58 = vpack.c.bf16 %v3158_v39, %v3158_v39 }
 0xaab   : > { %3236 = vst.msk [vmem:[%s5635_s15 + $0x10] sm:$0xf] %vm3231_vm1, %v3522_v34  ;;  %v3523_v12 = vpack.c.bf16 %v3156_v9, %v3156_v9  ;;  %v4024_v17 = vpop.f32.mrb[104].mxu1 }
 0xaac   : > { %3239 = vst.msk [vmem:[%s5635_s15 + $0x1c] sm:$0xf] %vm3231_vm1, %v3525_v58  ;;  %v3129_v30 = vadd.f32 %v4024_v17, %v5625_v20  ;;  %v3120_v26 = vpop.f32.mrb[105].mxu1 }
 0xaad   : > { %3237 = vst.msk [vmem:[%s5635_s15 + $0x14] sm:$0xf] %vm3231_vm1, %v3523_v12  ;;  %v3121_v5 = vadd.f32 %v3120_v26, %v5625_v20  ;;  %v4025_v7 = vpop.f32.mrb[106].mxu1 }
 0xaae   : > { %v3161_v16 = vadd.f32 %v3129_v30, %v5297_v10  ;;  %v3132_v60 = vadd.f32 %v4025_v7, %v5625_v20  ;;  %v3123_v54 = vpop.f32.mrb[107].mxu1 }
 0xaaf   : > { %v3159_v11 = vadd.f32 %v3121_v5, %v5290_v6  ;;  %v3124_v21 = vadd.f32 %v3123_v54, %v5625_v20 }
 0xab0   : > { %v3528_v28 = vpack.c.bf16 %v3161_v16, %v3161_v16  ;;  %v3162_v56 = vadd.f32 %v3132_v60, %v5305_v37 }
 0xab1   : > { %v3526_v49 = vpack.c.bf16 %v3159_v11, %v3159_v11  ;;  %v3160_v18 = vadd.f32 %v3124_v21, %v5300_v38 }
 0xab2   : > { %3242 = vst.msk [vmem:[%s5635_s15 + $0x28] sm:$0xf] %vm3231_vm1, %v3528_v28  ;;  %v3529_v23 = vpack.c.bf16 %v3162_v56, %v3162_v56 }
 0xab3   : > { %3240 = vst.msk [vmem:[%s5635_s15 + $0x20] sm:$0xf] %vm3231_vm1, %v3526_v49  ;;  %v3527_v10 = vpack.c.bf16 %v3160_v18, %v3160_v18  ;;  %v4028_v13 = vpop.f32.mrb[108].mxu1 }
 0xab4   : > { %3243 = vst.msk [vmem:[%s5635_s15 + $0x2c] sm:$0xf] %vm3231_vm1, %v3529_v23  ;;  %v3145_v6 = vadd.f32 %v4028_v13, %v5625_v20  ;;  %v3136_v32 = vpop.f32.mrb[109].mxu1 }
 0xab5   : > { %3241 = vst.msk [vmem:[%s5635_s15 + $0x24] sm:$0xf] %vm3231_vm1, %v3527_v10  ;;  %v3137_v37 = vadd.f32 %v3136_v32, %v5625_v20  ;;  %v4029_v38 = vpop.f32.mrb[110].mxu1 }
 0xab6   : > { %v3165_v52 = vadd.f32 %v3145_v6, %v5321_v36  ;;  %v3148_v44 = vadd.f32 %v4029_v38, %v5625_v20  ;;  %v3139_v63 = vpop.f32.mrb[111].mxu1 }
 0xab7   : > { %v3163_v31 = vadd.f32 %v3137_v37, %v5314_v45  ;;  %v3140_v47 = vadd.f32 %v3139_v63, %v5625_v20 }
 0xab8   : > { %v3532_v19 = vpack.c.bf16 %v3165_v52, %v3165_v52  ;;  %v3166_v29 = vadd.f32 %v3148_v44, %v5329_v0 }
 0xab9   : > { %v3530_v59 = vpack.c.bf16 %v3163_v31, %v3163_v31  ;;  %v3164_v25 = vadd.f32 %v3140_v47, %v5324_v61 }
 0xaba   : > { %3246 = vst.msk [vmem:[%s5635_s15 + $0x38] sm:$0xf] %vm3231_vm1, %v3532_v19  ;;  %v3533_v8 = vpack.c.bf16 %v3166_v29, %v3166_v29 }
 0xabb   : > { %3244 = vst.msk [vmem:[%s5635_s15 + $0x30] sm:$0xf] %vm3231_vm1, %v3530_v59  ;;  %v3531_v57 = vpack.c.bf16 %v3164_v25, %v3164_v25 }
 0xabc   : > { %3247 = vst.msk [vmem:[%s5635_s15 + $0x3c] sm:$0xf] %vm3231_vm1, %v3533_v8 }
 0xabd   : > { %3245 = vst.msk [vmem:[%s5635_s15 + $0x34] sm:$0xf] %vm3231_vm1, %v3531_v57 }
 0xabe PF: > { %s15_s18 = sadd.s32 1, %s4358_s18  }
 0xabf   : > { %p12_p4 = scmp.ge.s32.totalorder %s15_s18, 5  }
 0xac1   :  { %14 = sbr.rel (!%p12_p4) target bundleno = 1 (0x1), region = 82 }

// kernel: multi_scale_cross_attn.3
= control target key start
LH: loop header
LB: loop body
LE: loop exit
PB: predicated region body
PF: predicated region fallthrough
CT: control target
= control target key end

     0   :  { %10 = vsyncpa [#allocation3], 0  ;;  %s1942_s0 = inlined_call_operand.vmem [shape: bf16[2,4,32], index: 0, kind: input, shape index: {}]   ;;  %s1943_s1 = inlined_call_operand.vmem [shape: bf16[2,80,32], index: 1, kind: input, shape index: {}]   ;;  %s1944_s2 = inlined_call_operand.vmem [shape: f32[4,80], index: 2, kind: input, shape index: {}]   ;;  %s1945_s3 = inlined_call_operand.vmem [shape: bf16[6,32,32], index: 3, kind: input, shape index: {}]   ;;  %s1946_s4 = inlined_call_operand.vmem [shape: f32[10,32], index: 4, kind: input, shape index: {}]   ;;  %s1947_s5 = inlined_call_operand.hbm [shape: f32[2,4,32], index: 5, kind: output, shape index: {}]  }
   0x1   :  { %12 = vsyncpa [#allocation3 + $0x1], 0  ;;  %s1540_s18 = smov 0   ;;  %s1542_s19 = smov 0  }
   0x2   :  { %s1544_s20 = smov 0   ;;  %s1546_s21 = smov 0  }
   0x3 LB: > { %s1561_s22 = sadd.s32 4294967295, %s1505_s21   ;;  %s1150_s23 = sadd.s32 4294967294, %s1505_s21   ;;  %s1505_s21 = sphi %s1546_s21, %s1953_s21   ;;  %s1501_s20 = sphi %s1544_s20, %s1952_s20   ;;  %s1497_s19 = sphi %s1542_s19, %s1951_s19   ;;  %s1493_s18 = sphi %s1540_s18, %s1950_s18  }
   0x4   : > { %s1565_s24 = sadd.s32 1, %s1505_s21   ;;  %s140_s25 = sadd.s32 1, %s1501_s20 }
   0x5   : > { %s137_s26 = ssub.s32 %s1505_s21, %s1565_s24  ;;  %p150_p0 = scmp.ne.s32.totalorder %s1501_s20, %s1497_s19 }
   0x6   : > { %p138_p1 = scmp.eq.s32.totalorder %s137_s26, 0  ;;  %p151_p2 = scmp.eq.s32.totalorder %s1561_s22, 1 }
   0x7   : > { %p156_p3 = scmp.ne.s32.totalorder %s1497_s19, %s1493_s18  ;;  %p157_p4 = scmp.eq.s32.totalorder %s1150_s23, 1 }
   0x8   : > { %s1576_s27 = scalar_select %p138_p1, %s1501_s20, %s140_s25  }
   0x9   : > { %p1578_p5 = por %p151_p2, %p150_p0  ;;  %p1582_p6 = por %p157_p4, %p156_p3 }
   0xa   : > { %p1153_p7 = scmp.ge.s32.totalorder %s1505_s21, 1  ;;  %p199_p8 = scmp.lt.s32.totalorder %s1505_s21, 3 }
   0xc   : > { %p200_p9 = pnand %p1153_p7, %p199_p8 }
   0xd   : > { %p231_p10 = scmp.lt.s32.totalorder (!%p200_p9), %s1561_s22, 1  ;;  %vm315_vm0 = vcmask (!%p200_p9), 261120   ;;  %vm289_vm1 = vcmask (!%p200_p9), 257024   ;;  %vm1508_vm2 = vmmov (!%p200_p9), 0   ;;  %vm788_vm3 = vcmask (!%p200_p9), 650240   ;;  %s228_s12 = sand.u32 (!%p200_p9), 1, %s1497_s19  }
   0xe   : > { %203 = sbr.rel (%p200_p9) target bundleno = 2352 (0x930), region = 40  ;;  %vm806_vm4 = vcmask (!%p200_p9), 654336   ;;  %s1186_s14 = sshll.u32 (!%p200_p9), %s1561_s22, 6 }
   0xf   : > { %s1899_s25 = scalar_lea.hbm (!%p200_p9), %s1947_s5, %s1186_s14 }
  0x15   : > { %s1590_s30 = scalar_select %p231_p10, %s1561_s22, 1 }
  0x16   : > { %s1066_s22 = scalar_lea.sflag [#allocation3], %s228_s12 }
  0x17   : > { %s1359_s6 = smul.u32 40, %s1590_s30  ;;  %s1155_s10 = sshll.u32 %s1590_s30, 1 }
  0x18   : > { %s234_s13 = scalar_lea.vmem %s1942_s0, %s1155_s10  ;;  %s1509_s30 = smov [#allocation2]  }
  0x19   : > { %s239_s9 = scalar_lea.vmem %s1943_s1, %s1359_s6  ;;  %v241_v23 = vld [vmem:[%s234_s13] sm:$0x3]  ;;  %s1154_s13 = sshll.u32 %s228_s12, 2 }
  0x1a   : > { %v1190_v0 = vld [vmem:[%s239_s9] sm:$0xff]   ;;  %v1209_v1 = vld [vmem:[%s239_s9 + $0x8] sm:$0xff]   ;;  %v1210_v6 = vld [vmem:[%s239_s9 + $0x10] sm:$0xff]   ;;  %v1618_v26 = vunpack.c.l.bf16 %v241_v23  ;;  %s230_s15 = scalar_lea.vmem [#allocation2], %s1154_s13  ;;  %s1447_s6 = sshll.u32 %s1509_s30, 4  ;;  %s1448_s6 = int_to_ptr.vmem [resolvable:$false] %s1447_s6 }
  0x1b   : > { %v1191_v2 = vunpack.c.l.bf16 %v1190_v0  ;;  %v1195_v3 = vunpack.c.l.bf16 %v1209_v1  ;;  %v1192_v4 = vunpack.c.h.bf16 %v1190_v0  ;;  %v1196_v5 = vunpack.c.h.bf16 %v1209_v1  ;;  %v1600_v13 = vld [vmem:[%s239_s9 + $0x18] sm:$0xff]   ;;  %v1607_v18 = vld [vmem:[%s239_s9 + $0x20] sm:$0xff]   ;;  %v1404_v23 = vld [vmem:[%s1945_s3 + $0x8] sm:$0xff]   ;;  %s1079_s16 = sshll.u32 %s230_s15, 4  ;;  %s1449_s7 = scalar_lea.vmem %s1448_s6, 128  ;;  %s1901_s16 = int_to_ptr.vmem [resolvable:$true] %s1079_s16 }
  0x1c   : > { %v1199_v11 = vunpack.c.l.bf16 %v1210_v6  ;;  %v1200_v12 = vunpack.c.h.bf16 %v1210_v6  ;;  %v1203_v16 = vunpack.c.l.bf16 %v1600_v13  ;;  %v1204_v17 = vunpack.c.h.bf16 %v1600_v13  ;;  %s1443_s26 = scalar_lea.vmem %s1901_s16, 64  ;;  %p1450_p0 = scmp.lt.s32.totalorder %s1901_s16, %s1448_s6 }
  0x1d   : > { %v316_v7 = vsel %vm315_vm0, %v1191_v2, 0.0  ;;  %v322_v8 = vsel %vm315_vm0, %v1195_v3, 0.0  ;;  %v319_v9 = vsel %vm315_vm0, %v1192_v4, 0.0  ;;  %v325_v10 = vsel %vm315_vm0, %v1196_v5, 0.0  ;;  %p1444_p11 = scmp.ne.s32.totalorder %s1901_s16, %s1443_s26  ;;  %p1451_p1 = scmp.lt.s32.totalorder %s1449_s7, %s1443_s26 }
  0x1e   : > { %317 = vadd.xlane.f32.xlu0 %v316_v7  ;;  %323 = vadd.xlane.f32.xlu1 %v322_v8  ;;  %v328_v14 = vsel %vm315_vm0, %v1199_v11, 0.0  ;;  %v331_v15 = vsel %vm315_vm0, %v1200_v12, 0.0  ;;  %v334_v19 = vsel %vm315_vm0, %v1203_v16, 0.0  ;;  %v337_v20 = vsel %vm315_vm0, %v1204_v17, 0.0 }
  0x1f   : > { %v1207_v21 = vunpack.c.l.bf16 %v1607_v18  ;;  %v1208_v22 = vunpack.c.h.bf16 %v1607_v18  ;;  %v290_v27 = vsel %vm289_vm1, %v1618_v26, 0.0  ;;  %p1445_p12 = pnand %p1444_p11, %p1578_p5  ;;  %p1452_p2 = por %p1451_p1, %p1450_p0 }
  0x21   : > { %v340_v24 = vsel %vm315_vm0, %v1207_v21, 0.0  ;;  %v343_v25 = vsel %vm315_vm0, %v1208_v22, 0.0  ;;  %p1446_p13 = pneg %p1445_p12 }
  0x22   : > { %320 = vadd.xlane.f32.xlu0 %v319_v9  ;;  %326 = vadd.xlane.f32.xlu1 %v325_v10 }
  0x23   : > { %p1453_p3 = pnand %p1452_p2, %p1446_p13 }
  0x26   : > { %329 = vadd.xlane.f32.xlu0 %v328_v14  ;;  %332 = vadd.xlane.f32.xlu1 %v331_v15 }
  0x2a   : > { %335 = vadd.xlane.f32.xlu0 %v334_v19  ;;  %338 = vadd.xlane.f32.xlu1 %v337_v20  ;;  %v1401_v19 = vld [vmem:[%s1945_s3 + $0x10] sm:$0xff]   ;;  %v1507_v20 = vmov 0.0  }
  0x2b   : > { %1259 = vmatprep.subr.bf16.mxu1 %v1507_v20  ;;  %1251 = vmatprep.subr.bf16.mxu0 %v1507_v20 }
  0x2c   : > { %1260 = vmatpush3.bf16.msra.mxu1 %v1401_v19  ;;  %1263 = vmatprep.mubr.msk.bf16.mxu1 %vm1508_vm2, %v1507_v20 }
  0x2d   : > { %1261 = vmatprep.subr.bf16.mxu1 %v1507_v20  ;;  %1255 = vmatprep.mubr.msk.bf16.mxu0 %vm1508_vm2, %v1507_v20 }
  0x2e   : > { %341 = vadd.xlane.f32.xlu0 %v340_v24  ;;  %344 = vadd.xlane.f32.xlu1 %v343_v25 }
  0x32   : > { %291 = vadd.xlane.f32.xlu0 %v290_v27 }
  0xab   : > { %v318_v28 = vpop.xlane.xlu0 %317  ;;  %v324_v29 = vpop.xlane.xlu1 %323 }
  0xac   : > { %v346_v30 = vmul.f32 0.03125, %v318_v28  ;;  %v348_v31 = vmul.f32 0.03125, %v324_v29 }
  0xae   : > { %v1622_v32 = vsub.f32 %v1191_v2, %v346_v30  ;;  %v1624_v33 = vsub.f32 %v1195_v3, %v348_v31 }
  0xaf   : > { %v321_v34 = vpop.xlane.xlu0 %320  ;;  %v327_v35 = vpop.xlane.xlu1 %326 }
  0xb0   : > { %v347_v36 = vmul.f32 0.03125, %v321_v34  ;;  %v349_v37 = vmul.f32 0.03125, %v327_v35  ;;  %v366_v38 = vmul.f32 %v1622_v32, %v1622_v32  ;;  %v368_v39 = vmul.f32 %v1624_v33, %v1624_v33 }
  0xb1   : > { %v304_v34 = vlaneseq }
  0xb2   : > { %v1630_v40 = vsub.f32 %v1192_v4, %v347_v36  ;;  %v1632_v41 = vsub.f32 %v1196_v5, %v349_v37  ;;  %v376_v42 = vsel %vm315_vm0, %v366_v38, 0.0  ;;  %v382_v45 = vsel %vm315_vm0, %v368_v39, 0.0 }
  0xb3   : > { %377 = vadd.xlane.f32.xlu1 %v376_v42  ;;  %v330_v43 = vpop.xlane.xlu0 %329  ;;  %v333_v44 = vpop.xlane.xlu1 %332  ;;  %v1700_v42 = vshrl.u32 %v304_v34, 7 }
  0xb4   : > { %v350_v46 = vmul.f32 0.03125, %v330_v43  ;;  %v351_v47 = vmul.f32 0.03125, %v333_v44  ;;  %v367_v48 = vmul.f32 %v1630_v40, %v1630_v40  ;;  %v369_v49 = vmul.f32 %v1632_v41, %v1632_v41 }
  0xb6   : > { %v1640_v50 = vsub.f32 %v1199_v11, %v350_v46  ;;  %v1642_v51 = vsub.f32 %v1200_v12, %v351_v47  ;;  %v379_v52 = vsel %vm315_vm0, %v367_v48, 0.0  ;;  %v385_v55 = vsel %vm315_vm0, %v369_v49, 0.0  ;;  %v1706_v49 = vld [vmem:[%s1946_s4] sm:$0xff] }
  0xb7   : > { %383 = vadd.xlane.f32.xlu1 %v382_v45  ;;  %v336_v53 = vpop.xlane.xlu0 %335  ;;  %380 = vadd.xlane.f32.xlu0 %v379_v52  ;;  %v339_v54 = vpop.xlane.xlu1 %338  ;;  %v306_v48 = vsub.s32 0, %v1700_v42 }
  0xb8   : > { %v352_v56 = vmul.f32 0.03125, %v336_v53  ;;  %v353_v57 = vmul.f32 0.03125, %v339_v54  ;;  %v370_v58 = vmul.f32 %v1640_v50, %v1640_v50  ;;  %v371_v59 = vmul.f32 %v1642_v51, %v1642_v51 }
  0xba   : > { %v1650_v60 = vsub.f32 %v1203_v16, %v352_v56  ;;  %v1652_v61 = vsub.f32 %v1204_v17, %v353_v57  ;;  %v388_v62 = vsel %vm315_vm0, %v370_v58, 0.0  ;;  %v391_v1 = vsel %vm315_vm0, %v371_v59, 0.0 }
  0xbb   : > { %389 = vadd.xlane.f32.xlu1 %v388_v62  ;;  %v342_v63 = vpop.xlane.xlu0 %341  ;;  %386 = vadd.xlane.f32.xlu0 %v385_v55  ;;  %v345_v0 = vpop.xlane.xlu1 %344  ;;  %v1712_v58 = vrot.slane %v1706_v49, %v306_v48  ;;  %v311_v59 = vsub.s32 1, %v1700_v42 }
  0xbc   : > { %v354_v2 = vmul.f32 0.03125, %v342_v63  ;;  %v355_v3 = vmul.f32 0.03125, %v345_v0  ;;  %v372_v4 = vmul.f32 %v1650_v60, %v1650_v60  ;;  %v373_v5 = vmul.f32 %v1652_v61, %v1652_v61 }
  0xbe   : > { %v1660_v6 = vsub.f32 %v1207_v21, %v354_v2  ;;  %v1662_v7 = vsub.f32 %v1208_v22, %v355_v3  ;;  %v394_v8 = vsel %vm315_vm0, %v372_v4, 0.0  ;;  %v397_v12 = vsel %vm315_vm0, %v373_v5, 0.0  ;;  %v1402_v21 = vld [vmem:[%s1945_s3 + $0x18] sm:$0xff]   ;;  %v1403_v22 = vld [vmem:[%s1945_s3] sm:$0xff]  }
  0xbf   : > { %395 = vadd.xlane.f32.xlu1 %v394_v8  ;;  %392 = vadd.xlane.f32.xlu0 %v391_v1  ;;  %v292_v9 = vpop.xlane.xlu0 %291 }
  0xc0   : > { %v294_v10 = vmul.f32 0.03125, %v292_v9  ;;  %v374_v11 = vmul.f32 %v1660_v6, %v1660_v6  ;;  %v375_v13 = vmul.f32 %v1662_v7, %v1662_v7  ;;  %1262 = vmatpush3.bf16.msra.mxu1 %v1402_v21  ;;  %1252 = vmatpush3.bf16.msra.mxu0 %v1403_v22 }
  0xc1   : > { %1307 = vmatprep.subr.bf16.mxu1 %v1507_v20  ;;  %1253 = vmatprep.subr.bf16.mxu0 %v1507_v20 }
  0xc2   : > { %v1671_v14 = vsub.f32 %v1618_v26, %v294_v10  ;;  %v400_v15 = vsel %vm315_vm0, %v374_v11, 0.0  ;;  %v403_v16 = vsel %vm315_vm0, %v375_v13, 0.0 }
  0xc3   : > { %401 = vadd.xlane.f32.xlu1 %v400_v15  ;;  %398 = vadd.xlane.f32.xlu0 %v397_v12 }
  0xc4   : > { %v296_v17 = vmul.f32 %v1671_v14, %v1671_v14  ;;  %1254 = vmatpush3.bf16.msra.mxu0 %v1404_v23 }
  0xc5   : > { %1283 = vmatprep.subr.bf16.mxu0 %v1507_v20 }
  0xc6   : > { %v297_v18 = vsel %vm289_vm1, %v296_v17, 0.0 }
  0xc7   : > { %404 = vadd.xlane.f32.xlu0 %v403_v16  ;;  %298 = vadd.xlane.f32.xlu1 %v297_v18 }
 0x140   : > { %v378_v24 = vpop.xlane.xlu1 %377 }
 0x141   : > { %v406_v25 = vmul.f32 0.03125, %v378_v24 }
 0x143   : > { %v416_v27 = vadd.f32 1e-05, %v406_v25 }
 0x144   : > { %v384_v28 = vpop.xlane.xlu1 %383  ;;  %v381_v29 = vpop.xlane.xlu0 %380 }
 0x145   : > { %1413 = vrsqrt.f32 %v416_v27  ;;  %v408_v30 = vmul.f32 0.03125, %v384_v28  ;;  %v407_v31 = vmul.f32 0.03125, %v381_v29 }
 0x147   : > { %v418_v35 = vadd.f32 1e-05, %v408_v30  ;;  %v417_v36 = vadd.f32 1e-05, %v407_v31 }
 0x148   : > { %v390_v37 = vpop.xlane.xlu1 %389  ;;  %v387_v38 = vpop.xlane.xlu0 %386 }
 0x149   : > { %v409_v39 = vmul.f32 0.03125, %v387_v38  ;;  %1415 = vrsqrt.f32 %v417_v36  ;;  %v410_v44 = vmul.f32 0.03125, %v390_v37 }
 0x14a   : > { %1417 = vrsqrt.f32 %v418_v35 }
 0x14b   : > { %v419_v43 = vadd.f32 1e-05, %v409_v39  ;;  %v420_v54 = vadd.f32 1e-05, %v410_v44 }
 0x14c   : > { %v396_v45 = vpop.xlane.xlu1 %395  ;;  %v393_v46 = vpop.xlane.xlu0 %392 }
 0x14d   : > { %v411_v47 = vmul.f32 0.03125, %v393_v46  ;;  %1419 = vrsqrt.f32 %v419_v43  ;;  %v412_v0 = vmul.f32 0.03125, %v396_v45  ;;  %v1405_v46 = vld [vmem:[%s1945_s3 + $0x20] sm:$0xff]  }
 0x14f   : > { %v1414_v52 = vpop.eup %1413  ;;  %v421_v53 = vadd.f32 1e-05, %v411_v47  ;;  %v422_v15 = vadd.f32 1e-05, %v412_v0 }
 0x150   : > { %v402_v55 = vpop.xlane.xlu1 %401  ;;  %v399_v56 = vpop.xlane.xlu0 %398  ;;  %v436_v57 = vmul.f32 %v1414_v52, %v1622_v32  ;;  %v1719_v32 = vrot.slane %v1706_v49, %v311_v59 }
 0x151   : > { %1421 = vrsqrt.f32 %v421_v53  ;;  %v413_v62 = vmul.f32 0.03125, %v399_v56  ;;  %v414_v23 = vmul.f32 0.03125, %v402_v55 }
 0x152   : > { %1423 = vrsqrt.f32 %v420_v54  ;;  %v446_v5 = vmul.f32 %v436_v57, %v1712_v58 }
 0x153   : > { %v1416_v63 = vpop.eup %1415  ;;  %v423_v8 = vadd.f32 1e-05, %v413_v62  ;;  %v424_v28 = vadd.f32 1e-05, %v414_v23 }
 0x154   : > { %v299_v1 = vpop.xlane.xlu1 %298  ;;  %v1418_v2 = vpop.eup %1417  ;;  %v437_v3 = vmul.f32 %v1416_v63, %v1630_v40  ;;  %v456_v40 = vadd.f32 %v446_v5, %v1719_v32 }
 0x155   : > { %v300_v4 = vmul.f32 0.03125, %v299_v1  ;;  %v405_v10 = vpop.xlane.xlu0 %404  ;;  %v438_v13 = vmul.f32 %v1418_v2, %v1624_v33 }
 0x156   : > { %v447_v11 = vmul.f32 %v437_v3, %v1712_v58  ;;  %v415_v18 = vmul.f32 0.03125, %v405_v10 }
 0x157   : > { %v301_v9 = vadd.f32 1e-05, %v300_v4  ;;  %v1420_v12 = vpop.eup %1419  ;;  %v448_v33 = vmul.f32 %v438_v13, %v1712_v58 }
 0x158   : > { %v439_v16 = vmul.f32 %v1420_v12, %v1632_v41  ;;  %v457_v17 = vadd.f32 %v447_v11, %v1719_v32  ;;  %v425_v25 = vadd.f32 1e-05, %v415_v18 }
 0x159   : > { %1425 = vrsqrt.f32 %v301_v9  ;;  %v458_v30 = vadd.f32 %v448_v33, %v1719_v32 }
 0x15a   : > { %1427 = vrsqrt.f32 %v423_v8  ;;  %v466_v19 = vpack.c.bf16 %v457_v17, %v456_v40  ;;  %v449_v21 = vmul.f32 %v439_v16, %v1712_v58 }
 0x15b   : > { %v1422_v22 = vpop.eup %1421  ;;  %1429 = vrsqrt.f32 %v422_v15 }
 0x15c   : > { %1264 = vmatmul.mubr.msk.bf16.vlgmr.msra.gmra.mrb[0].mxu1 %vm315_vm0, %v466_v19  ;;  %v1424_v24 = vpop.eup %1423  ;;  %v441_v41 = vmul.f32 %v1422_v22, %v1642_v51  ;;  %v459_v27 = vadd.f32 %v449_v21, %v1719_v32  ;;  %1431 = vrsqrt.f32 %v425_v25 }
 0x15d   : > { %1267 = vmatprep.mubr.msk.bf16.mxu1 %vm1508_vm2, %v1507_v20  ;;  %v440_v29 = vmul.f32 %v1424_v24, %v1640_v50  ;;  %1433 = vrsqrt.f32 %v424_v28 }
 0x15e   : > { %v467_v34 = vpack.c.bf16 %v459_v27, %v458_v30  ;;  %v451_v35 = vmul.f32 %v441_v41, %v1712_v58 }
 0x15f   : > { %v450_v51 = vmul.f32 %v440_v29, %v1712_v58  ;;  %v636_v29 = vsub.s32 4, %v1700_v42 }
 0x160   : > { %v461_v43 = vadd.f32 %v451_v35, %v1719_v32 }
 0x163   : > { %v1426_v31 = vpop.eup %1425 }
 0x164   : > { %v1428_v36 = vpop.eup %1427  ;;  %v303_v37 = vmul.f32 %v1426_v31, %v1671_v14  ;;  %1268 = vmatmul.mubr.msk.bf16.gmra.mrb[4].mxu1 %vm315_vm0, %v467_v34  ;;  %v460_v14 = vadd.f32 %v450_v51, %v1719_v32 }
 0x165   : > { %v1430_v38 = vpop.eup %1429  ;;  %1271 = vmatprep.mubr.msk.bf16.mxu1 %vm1508_vm2, %v1507_v20  ;;  %v443_v39 = vmul.f32 %v1428_v36, %v1652_v61  ;;  %v1809_v36 = vrot.slane %v1706_v49, %v636_v29 }
 0x166   : > { %v308_v50 = vmul.f32 %v1712_v58, %v303_v37  ;;  %v442_v45 = vmul.f32 %v1430_v38, %v1650_v60  ;;  %v468_v52 = vpack.c.bf16 %v461_v43, %v460_v14  ;;  %v1432_v54 = vpop.eup %1431  ;;  %v1406_v60 = vld [vmem:[%s1945_s3 + $0x28] sm:$0xff]  }
 0x167   : > { %v453_v53 = vmul.f32 %v443_v39, %v1712_v58  ;;  %v1434_v55 = vpop.eup %1433  ;;  %v445_v56 = vmul.f32 %v1432_v54, %v1662_v7 }
 0x168   : > { %v313_v44 = vadd.f32 %v1719_v32, %v308_v50  ;;  %v452_v61 = vmul.f32 %v442_v45, %v1712_v58  ;;  %v444_v62 = vmul.f32 %v1434_v55, %v1660_v6 }
 0x169   : > { %v463_v57 = vadd.f32 %v453_v53, %v1719_v32  ;;  %v455_v1 = vmul.f32 %v445_v56, %v1712_v58 }
 0x16a   : > { %v314_v47 = vpack.c.bf16 %v313_v44, %v313_v44  ;;  %v462_v63 = vadd.f32 %v452_v61, %v1719_v32  ;;  %v454_v7 = vmul.f32 %v444_v62, %v1712_v58  ;;  %v532_v58 = vsub.s32 3, %v1700_v42 }
 0x16b   : > { %v465_v6 = vadd.f32 %v455_v1, %v1719_v32  ;;  %v473_v62 = vsub.s32 2, %v1700_v42 }
 0x16c   : > { %1256 = vmatmul.mubr.msk.bf16.vlgmr.msra.gmra.mrb[0].mxu0 %vm315_vm0, %v314_v47  ;;  %1272 = vmatmul.mubr.msk.bf16.gmra.mrb[8].mxu1 %vm315_vm0, %v468_v52  ;;  %v469_v0 = vpack.c.bf16 %v463_v57, %v462_v63  ;;  %v464_v2 = vadd.f32 %v454_v7, %v1719_v32  ;;  %v1795_v4 = vrot.slane %v1706_v49, %v532_v58 }
 0x16d   : > { %1284 = vmatpush3.bf16.msra.mxu0 %v1405_v46  ;;  %1275 = vmatprep.mubr.msk.bf16.mxu1 %vm1508_vm2, %v1507_v20 }
 0x16e   : > { %1285 = vmatprep.subr.bf16.mxu0 %v1507_v20  ;;  %1287 = vmatprep.mubr.msk.bf16.mxu0 %vm1508_vm2, %v1507_v20  ;;  %v470_v3 = vpack.c.bf16 %v465_v6, %v464_v2 }
 0x171   : > { %1286 = vmatpush3.bf16.msra.mxu0 %v1406_v60 }
 0x172   : > { %1321 = vmatprep.subr.bf16.mxu0 %v1507_v20 }
 0x174   : > { %1288 = vmatmul.mubr.msk.bf16.vlgmr.msra.gmra.mrb[4].mxu0 %vm315_vm0, %v466_v19  ;;  %1276 = vmatmul.mubr.msk.bf16.gmra.mrb[12].mxu1 %vm315_vm0, %v469_v0 }
 0x175   : > { %1291 = vmatprep.mubr.msk.bf16.mxu0 %vm1508_vm2, %v1507_v20  ;;  %1279 = vmatprep.mubr.msk.bf16.mxu1 %vm1508_vm2, %v1507_v20 }
 0x17c   : > { %1292 = vmatmul.mubr.msk.bf16.gmra.mrb[8].mxu0 %vm315_vm0, %v467_v34  ;;  %1280 = vmatmul.mubr.msk.bf16.gmra.mrb[16].mxu1 %vm315_vm0, %v470_v3 }
 0x17d   : > { %1295 = vmatprep.mubr.msk.bf16.mxu0 %vm1508_vm2, %v1507_v20  ;;  %1317 = vmatprep.mubr.msk.bf16.mxu1 %vm1508_vm2, %v1507_v20 }
 0x184   : > { %1296 = vmatmul.mubr.msk.bf16.gmra.mrb[12].mxu0 %vm315_vm0, %v468_v52 }
 0x185   : > { %1299 = vmatprep.mubr.msk.bf16.mxu0 %vm1508_vm2, %v1507_v20 }
 0x18c   : > { %1300 = vmatmul.mubr.msk.bf16.gmra.mrb[16].mxu0 %vm315_vm0, %v469_v0 }
 0x18d   : > { %1303 = vmatprep.mubr.msk.bf16.mxu0 %vm1508_vm2, %v1507_v20 }
 0x194   : > { %1304 = vmatmul.mubr.msk.bf16.gmra.mrb[20].mxu0 %vm315_vm0, %v470_v3 }
 0x195   : > { %1331 = vmatprep.mubr.msk.bf16.mxu0 %vm1508_vm2, %v1507_v20 }
 0x22f   : > { %v595_v32 = vpop.f32.mrb[0].mxu1 }
 0x230   : > { %v1265_v5 = vpop.f32.mrb[1].mxu1  ;;  %v596_v9 = vadd.f32 %v595_v32, %v1795_v4 }
 0x231   : > { %v598_v8 = vpop.f32.mrb[2].mxu1 }
 0x232   : > { %v599_v10 = vadd.f32 %v598_v8, %v1795_v4  ;;  %v1266_v11 = vpop.f32.mrb[3].mxu1  ;;  %v474_v8 = vrot.slane %v1706_v49, %v473_v62 }
 0x234   : > { %v724_v12 = vpack.c.bf16 %v599_v10, %v596_v9 }
 0x236   : > { %v734_v13 = vsel %vm315_vm0, %v724_v12, 0 }
 0x237   : > { %v603_v15 = vpop.f32.mrb[4].mxu1  ;;  %1308 = vmatpush3.bf16.xpose.msra.mxu1 %v734_v13 }
 0x238   : > { %v1269_v16 = vpop.f32.mrb[5].mxu1  ;;  %1309 = vmatprep.subr.bf16.mxu1 %v1507_v20  ;;  %v604_v17 = vadd.f32 %v603_v15, %v1795_v4 }
 0x239   : > { %v606_v40 = vpop.f32.mrb[6].mxu1 }
 0x23a   : > { %v607_v18 = vadd.f32 %v606_v40, %v1795_v4  ;;  %v1270_v19 = vpop.f32.mrb[7].mxu1 }
 0x23c   : > { %v725_v21 = vpack.c.bf16 %v607_v18, %v604_v17 }
 0x23e   : > { %v737_v23 = vsel %vm315_vm0, %v725_v21, 0 }
 0x23f   : > { %v524_v22 = vpop.f32.mrb[0].mxu0  ;;  %v611_v33 = vpop.f32.mrb[8].mxu1  ;;  %1310 = vmatpush3.bf16.xpose.msra.mxu1 %v737_v23 }
 0x240   : > { %v1257_v24 = vpop.f32.mrb[1].mxu0  ;;  %v1273_v25 = vpop.f32.mrb[9].mxu1  ;;  %1311 = vmatprep.subr.bf16.mxu1 %v1507_v20  ;;  %v612_v30 = vadd.f32 %v611_v33, %v1795_v4  ;;  %v525_v13 = vadd.f32 %v524_v22, %v474_v8 }
 0x241   : > { %v527_v41 = vpop.f32.mrb[2].mxu0  ;;  %v614_v27 = vpop.f32.mrb[10].mxu1 }
 0x242   : > { %v1258_v28 = vpop.f32.mrb[3].mxu0  ;;  %v615_v31 = vadd.f32 %v614_v27, %v1795_v4  ;;  %v1274_v34 = vpop.f32.mrb[11].mxu1  ;;  %v723_v18 = vpack.c.bf16 %v525_v13, %v525_v13  ;;  %v1409_v13 = vld [vmem:[%s1945_s3 + $0x40] sm:$0xff]  }
 0x244   : > { %v726_v35 = vpack.c.bf16 %v615_v31, %v612_v30 }
 0x246   : > { %v740_v51 = vsel %vm315_vm0, %v726_v35, 0  ;;  %v729_v35 = vld [vmem:[%s1944_s2] sm:$0xf] }
 0x247   : > { %v684_v37 = vpop.f32.mrb[4].mxu0  ;;  %v619_v38 = vpop.f32.mrb[12].mxu1  ;;  %1312 = vmatpush3.bf16.xpose.msra.mxu1 %v740_v51 }
 0x248   : > { %v1289_v50 = vpop.f32.mrb[5].mxu0  ;;  %v1277_v39 = vpop.f32.mrb[13].mxu1  ;;  %1313 = vmatprep.subr.bf16.mxu1 %v1507_v20  ;;  %v685_v44 = vadd.f32 %v684_v37, %v1809_v36  ;;  %v620_v47 = vadd.f32 %v619_v38, %v1795_v4 }
 0x249   : > { %v687_v43 = vpop.f32.mrb[6].mxu0  ;;  %v622_v45 = vpop.f32.mrb[14].mxu1 }
 0x24a   : > { %v688_v14 = vadd.f32 %v687_v43, %v1809_v36  ;;  %v1290_v46 = vpop.f32.mrb[7].mxu0  ;;  %v623_v52 = vadd.f32 %v622_v45, %v1795_v4  ;;  %v1278_v53 = vpop.f32.mrb[15].mxu1 }
 0x24c   : > { %v801_v54 = vpack.c.bf16 %v688_v14, %v685_v44  ;;  %v727_v60 = vpack.c.bf16 %v623_v52, %v620_v47  ;;  %v1407_v47 = vld [vmem:[%s1945_s3 + $0x30] sm:$0xff]  }
 0x24e   : > { %1322 = vmatpush3.bf16.msra.mxu0 %v801_v54  ;;  %v743_v55 = vsel %vm315_vm0, %v727_v60, 0 }
 0x24f   : > { %v692_v61 = vpop.f32.mrb[8].mxu0  ;;  %1323 = vmatprep.subr.bf16.mxu0 %v1507_v20  ;;  %v627_v56 = vpop.f32.mrb[16].mxu1  ;;  %1314 = vmatpush3.bf16.xpose.msra.mxu1 %v743_v55 }
 0x250   : > { %v1293_v57 = vpop.f32.mrb[9].mxu0  ;;  %v1281_v63 = vpop.f32.mrb[17].mxu1  ;;  %1315 = vmatprep.subr.bf16.mxu1 %v1507_v20  ;;  %v693_v1 = vadd.f32 %v692_v61, %v1809_v36  ;;  %v628_v3 = vadd.f32 %v627_v56, %v1795_v4  ;;  %v1408_v61 = vld [vmem:[%s1945_s3 + $0x38] sm:$0xff]  }
 0x251   : > { %v695_v0 = vpop.f32.mrb[10].mxu0  ;;  %v630_v7 = vpop.f32.mrb[18].mxu1 }
 0x252   : > { %v696_v6 = vadd.f32 %v695_v0, %v1809_v36  ;;  %v1294_v2 = vpop.f32.mrb[11].mxu0  ;;  %v631_v58 = vadd.f32 %v630_v7, %v1795_v4  ;;  %v1282_v32 = vpop.f32.mrb[19].mxu1  ;;  %v853_v0 = vsub.s32 5, %v1700_v42 }
 0x254   : > { %v802_v5 = vpack.c.bf16 %v696_v6, %v693_v1  ;;  %v728_v9 = vpack.c.bf16 %v631_v58, %v628_v3  ;;  %v854_v1 = vrot.slane %v1706_v49, %v853_v0 }
 0x256   : > { %1324 = vmatpush3.bf16.msra.mxu0 %v802_v5  ;;  %v746_v11 = vsel %vm315_vm0, %v728_v9, 0 }
 0x257   : > { %v700_v10 = vpop.f32.mrb[12].mxu0  ;;  %1325 = vmatprep.subr.bf16.mxu0 %v1507_v20  ;;  %1316 = vmatpush3.bf16.xpose.msra.mxu1 %v746_v11 }
 0x258   : > { %v1297_v12 = vpop.f32.mrb[13].mxu0  ;;  %1335 = vmatprep.subr.bf16.mxu1 %v1507_v20  ;;  %v701_v16 = vadd.f32 %v700_v10, %v1809_v36 }
 0x259   : > { %v703_v15 = vpop.f32.mrb[14].mxu0 }
 0x25a   : > { %v704_v4 = vadd.f32 %v703_v15, %v1809_v36  ;;  %v1298_v40 = vpop.f32.mrb[15].mxu0 }
 0x25b   : > { %v926_v40 = vsub.s32 6, %v1700_v42 }
 0x25c   : > { %v803_v17 = vpack.c.bf16 %v704_v4, %v701_v16 }
 0x25e   : > { %1326 = vmatpush3.bf16.msra.mxu0 %v803_v17  ;;  %1318 = vmatmul.mubr.msk.bf16.vlgmr.msra.gmra.mrb[20].mxu1 %vm315_vm0, %v723_v18  ;;  %v931_v17 = vsub.s32 7, %v1700_v42  ;;  %v927_v18 = vrot.slane %v1706_v49, %v926_v40 }
 0x25f   : > { %v708_v19 = vpop.f32.mrb[16].mxu0  ;;  %1327 = vmatprep.subr.bf16.mxu0 %v1507_v20  ;;  %1339 = vmatprep.mubr.msk.bf16.mxu1 %vm1508_vm2, %v1507_v20 }
 0x260   : > { %v1301_v21 = vpop.f32.mrb[17].mxu0  ;;  %v709_v23 = vadd.f32 %v708_v19, %v1809_v36  ;;  %1336 = vmatpush3.bf16.msra.mxu1 %v1407_v47 }
 0x261   : > { %v711_v22 = vpop.f32.mrb[18].mxu0  ;;  %1337 = vmatprep.subr.bf16.mxu1 %v1507_v20 }
 0x262   : > { %v712_v33 = vadd.f32 %v711_v22, %v1809_v36  ;;  %v1302_v24 = vpop.f32.mrb[19].mxu0  ;;  %v932_v22 = vrot.slane %v1706_v49, %v931_v17  ;;  %v288_v49 = vld [vmem:[%s1946_s4 + $0x8] sm:$0x3] }
 0x264   : > { %v804_v25 = vpack.c.bf16 %v712_v33, %v709_v23  ;;  %1338 = vmatpush3.bf16.msra.mxu1 %v1408_v61 }
 0x265   : > { %1351 = vmatprep.subr.bf16.mxu1 %v1507_v20 }
 0x266   : > { %1328 = vmatpush3.bf16.msra.mxu0 %v804_v25  ;;  %v1411_v25 = vld [vmem:[%s1945_s3 + $0x50] sm:$0xff]  }
 0x267   : > { %v716_v41 = vpop.f32.mrb[20].mxu0  ;;  %1329 = vmatprep.subr.bf16.mxu0 %v1507_v20 }
 0x268   : > { %v1305_v27 = vpop.f32.mrb[21].mxu0  ;;  %v717_v29 = vadd.f32 %v716_v41, %v1809_v36  ;;  %v1412_v41 = vld [vmem:[%s1945_s3 + $0x58] sm:$0xff]  }
 0x269   : > { %v719_v28 = vpop.f32.mrb[22].mxu0  ;;  %v938_v27 = vrot.slane %v288_v49, %v306_v48  ;;  %v1007_v48 = vrot.slane %v288_v49, %v311_v59 }
 0x26a   : > { %v720_v30 = vadd.f32 %v719_v28, %v1809_v36  ;;  %v1306_v31 = vpop.f32.mrb[23].mxu0 }
 0x26c   : > { %v805_v34 = vpack.c.bf16 %v720_v30, %v717_v29 }
 0x26e   : > { %1330 = vmatpush3.bf16.msra.mxu0 %v805_v34 }
 0x26f   : > { %1343 = vmatprep.subr.bf16.mxu0 %v1507_v20 }
 0x331   : > { %v782_v37 = vpop.f32.mrb[20].mxu1 }
 0x332   : > { %v783_v51 = vadd.f32 %v782_v37, %v729_v35  ;;  %v1319_v38 = vpop.f32.mrb[21].mxu1 }
 0x333   : > { %v785_v50 = vpop.f32.mrb[22].mxu1 }
 0x334   : > { %v1320_v39 = vpop.f32.mrb[23].mxu1  ;;  %v789_v43 = vsel %vm788_vm3, %v783_v51, -inf }
 0x335   : > { %790 = vmax.xlane.f32.xlu0 %v789_v43 }
 0x3c2   : > { %v791_v44 = vpop.xlane.xlu0 %790 }
 0x3c3   : > { %v792_v45 = vsub.f32 %v783_v51, %v791_v44 }
 0x3c5   : > { %v793_v36 = vmul.f32 1.442695, %v792_v45 }
 0x3c7   : > { %1435 = vpow2.f32 %v793_v36 }
 0x3d1   : > { %v1436_v14 = vpop.eup %1435 }
 0x3d2   : > { %v795_v46 = vsel %vm788_vm3, %v1436_v14, 0.0 }
 0x3d3   : > { %796 = vadd.xlane.f32.xlu1 %v795_v46 }
 0x460   : > { %v797_v52 = vpop.xlane.xlu1 %796 }
 0x461   : > { %1437 = vrcp.f32 %v797_v52 }
 0x46b   : > { %v1438_v53 = vpop.eup %1437 }
 0x46c   : > { %v799_v54 = vmul.f32 %v1438_v53, %v1436_v14 }
 0x46e   : > { %v800_v60 = vpack.c.bf16 %v799_v54, %v799_v54 }
 0x470   : > { %1332 = vmatmul.mubr.msk.bf16.vlgmr.msra.gmra.mrb[24].mxu0 %vm806_vm4, %v800_v60 }
 0x471   : > { %1347 = vmatprep.mubr.msk.bf16.mxu0 %vm1508_vm2, %v1507_v20  ;;  %1344 = vmatpush3.bf16.msra.mxu0 %v1409_v13 }
 0x472   : > { %1345 = vmatprep.subr.bf16.mxu0 %v1507_v20 }
 0x543   : > { %v844_v55 = vpop.f32.mrb[24].mxu0 }
 0x544   : > { %v850_v56 = vpack.c.bf16 %v844_v55, %v844_v55  ;;  %v1333_v57 = vpop.f32.mrb[25].mxu0 }
 0x545   : > { %v847_v62 = vpop.f32.mrb[26].mxu0 }
 0x546   : > { %v1334_v63 = vpop.f32.mrb[27].mxu0  ;;  %1340 = vmatmul.mubr.msk.bf16.vlgmr.msra.gmra.mrb[24].mxu1 %vm315_vm0, %v850_v56 }
 0x547   : > { %1355 = vmatprep.mubr.msk.bf16.mxu1 %vm1508_vm2, %v1507_v20  ;;  %1352 = vmatpush3.bf16.msra.mxu1 %v1411_v25 }
 0x548   : > { %1353 = vmatprep.subr.bf16.mxu1 %v1507_v20 }
 0x54b   : > { %1354 = vmatpush3.bf16.msra.mxu1 %v1412_v41 }
 0x619   : > { %v904_v7 = vpop.f32.mrb[24].mxu1 }
 0x61a   : > { %v905_v6 = vadd.f32 %v904_v7, %v854_v1  ;;  %v1341_v2 = vpop.f32.mrb[25].mxu1 }
 0x61b   : > { %v907_v3 = vpop.f32.mrb[26].mxu1 }
 0x61c   : > { %v1860_v58 = vadd.f32 %v905_v6, %v1618_v26  ;;  %v1342_v32 = vpop.f32.mrb[27].mxu1  ;;  %v1410_v26 = vld [vmem:[%s1945_s3 + $0x48] sm:$0xff]  }
 0x61d   : > { %1346 = vmatpush3.bf16.msra.mxu0 %v1410_v26 }
 0x61e   : > { %v911_v5 = vsel %vm289_vm1, %v1860_v58, 0.0 }
 0x61f   : > { %912 = vadd.xlane.f32.xlu0 %v911_v5 }
 0x6ac   : > { %v913_v8 = vpop.xlane.xlu0 %912 }
 0x6ad   : > { %v914_v9 = vmul.f32 0.03125, %v913_v8 }
 0x6af   : > { %v915_v10 = vsub.f32 %v1860_v58, %v914_v9 }
 0x6b1   : > { %v916_v11 = vmul.f32 %v915_v10, %v915_v10 }
 0x6b3   : > { %v917_v12 = vsel %vm289_vm1, %v916_v11, 0.0 }
 0x6b4   : > { %918 = vadd.xlane.f32.xlu1 %v917_v12 }
 0x741   : > { %v919_v15 = vpop.xlane.xlu1 %918 }
 0x742   : > { %v920_v16 = vmul.f32 0.03125, %v919_v15 }
 0x744   : > { %v921_v4 = vadd.f32 1e-05, %v920_v16 }
 0x746   : > { %1439 = vrsqrt.f32 %v921_v4 }
 0x750   : > { %v1440_v19 = vpop.eup %1439 }
 0x751   : > { %v923_v21 = vmul.f32 %v1440_v19, %v915_v10 }
 0x753   : > { %v928_v23 = vmul.f32 %v927_v18, %v923_v21 }
 0x755   : > { %v933_v33 = vadd.f32 %v932_v22, %v928_v23 }
 0x757   : > { %v934_v24 = vpack.c.bf16 %v933_v33, %v933_v33 }
 0x759   : > { %1348 = vmatmul.mubr.msk.bf16.vlgmr.msra.gmra.mrb[28].mxu0 %vm315_vm0, %v934_v24 }
 0x82c   : > { %v988_v28 = vpop.f32.mrb[28].mxu0 }
 0x82d   : > { %v989_v29 = vadd.f32 %v988_v28, %v938_v27  ;;  %v1349_v30 = vpop.f32.mrb[29].mxu0 }
 0x82e   : > { %v991_v31 = vpop.f32.mrb[30].mxu0 }
 0x82f   : > { %v995_v34 = vmul.f32 0.044715, %v989_v29  ;;  %v1350_v35 = vpop.f32.mrb[31].mxu0  ;;  %v994_v39 = vmul.f32 0.5, %v989_v29 }
 0x831   : > { %v996_v37 = vmul.f32 %v995_v34, %v989_v29 }
 0x833   : > { %v997_v51 = vmul.f32 %v996_v37, %v989_v29 }
 0x835   : > { %v998_v38 = vadd.f32 %v997_v51, %v989_v29 }
 0x837   : > { %v999_v20 = vmul.f32 0.7978846, %v998_v38 }
 0x839   : > { %1441 = vtanh.f32 %v999_v20 }
 0x843   : > { %v1442_v50 = vpop.eup %1441 }
 0x844   : > { %v1001_v43 = vadd.f32 1.0, %v1442_v50 }
 0x846   : > { %v1002_v44 = vmul.f32 %v1001_v43, %v994_v39 }
 0x848   : > { %v1003_v45 = vpack.c.bf16 %v1002_v44, %v1002_v44 }
 0x84a   : > { %1356 = vmatmul.mubr.msk.bf16.vlgmr.msra.gmra.mrb[28].mxu1 %vm315_vm0, %v1003_v45 }
 0x91d   : > { %v1057_v36 = vpop.f32.mrb[28].mxu1 }
 0x91e   : > { %v1058_v14 = vadd.f32 %v1057_v36, %v1007_v48  ;;  %v1357_v46 = vpop.f32.mrb[29].mxu1 }
 0x91f   : > { %v1060_v47 = vpop.f32.mrb[30].mxu1 }
 0x920   : > { %v1063_v52 = vadd.f32 %v1058_v14, %v1860_v58  ;;  %v1358_v53 = vpop.f32.mrb[31].mxu1 }
 0x922   : > { %1064 = vst.msk [vmem:[%s230_s15] sm:$0xf] %vm289_vm1, %v1063_v52 }
 0x923   : > { %1456 = shalt.err (!%p1453_p3)
}
 0x924   : > { %s1457_s8 = scalar_lea.hbm %s1899_s25, 64  ;;  %s1461_s11 = scalar_lea.hbm %s1947_s5, 128 }
 0x925   : > { %p1458_p4 = scmp.ne.s32.totalorder %s1899_s25, %s1457_s8  ;;  %p1462_p9 = scmp.lt.u32.totalorder %s1899_s25, %s1947_s5 }
 0x926   : > { %p1463_p10 = scmp.lt.u32.totalorder %s1461_s11, %s1457_s8  ;;  %p1465_p12 = scmp.lt.u32.totalorder %s1457_s8, %s1899_s25 }
 0x927   : > { %p1459_p7 = pnand %p1458_p4, %p1578_p5 }
 0x928   : > { %p1464_p11 = por %p1463_p10, %p1462_p9 }
 0x929   : > { %p1460_p8 = pneg %p1459_p7 }
 0x92a   : > { %p1466_p13 = por %p1465_p12, %p1464_p11 }
 0x92c   : > { %p1467_p0 = pnand %p1466_p13, %p1460_p8 }
 0x92e   : > { %1470 = shalt.err (!%p1467_p0)
}
 0x92f   : > { %1360 = dma.vmem_to_hbm [thread:$0]  (%p1578_p5), %s1901_s16, 64, %s1899_s25, %s1066_s22  }
 0x930 PF: > { %p1366_p1 = scmp.ge.s32.totalorder %s1505_s21, 2  ;;  %s1091_s14 = sand.u32 1, %s1493_s18  }
 0x931   : > { %s1092_s15 = scalar_lea.sflag [#allocation3], %s1091_s14 }
 0x932   : > { %p1363_p2 = pnand %p1366_p1, %p1582_p6 }
 0x934   : > { %1488 = dma.done.wait (!%p1363_p2), %s1092_s15, 64  }
 0x935   : > { %1490 = vsyncadd (!%p1363_p2), %s1092_s15, 4294967232  ;;  %p15_p3 = scmp.ge.s32.totalorder %s1565_s24, 4   ;;  %s1950_s18 = smov %s1497_s19 }
 0x936   : > { %s1951_s19 = smov %s1501_s20  ;;  %s1952_s20 = smov %s1576_s27 }
 0x937   : > { %s1953_s21 = smov %s1565_s24  ;;  %17 = sbr.rel (!%p15_p3) target bundleno = 3 (0x3), region = 78 }
 0x93e   :  { %1097 = vsyncpa [#allocation3], 1 }
 0x93f   :  { %1099 = vsyncpa [#allocation3 + $0x1], 1 }

</bundles_post_ra>
